<compile_context>
chip_gen: v6e
topology: v6e:2x2x1
jax: 0.10.0
libtpu: 0.0.40
codegen_flags: <defaults>
</compile_context>

<pallas_src>
import jax
import jax.numpy as jnp
from jax.experimental import pallas as pl
from jax.experimental.pallas import tpu as pltpu

# ---- model configuration (small, consistent with the module) ----------------
BATCH = 2
IMG_H = 16
IMG_W = 16
P = IMG_H * IMG_W          # spatial positions per image (256)
BOTTLENECK = 32            # params.bottleneck_dim
B = BOTTLENECK
ENC_CH = 512               # encoder output channels (ResNet-18 final block)
DEC_CH = 128               # dec_input -> view(-1, 128, 7, 7)
DEC_HW = 7
DEC_FLAT = DEC_CH * DEC_HW * DEC_HW     # 6272 (= 49 * 128, lane dense)
IN_CH_PAD = 16             # rgb(3)+depth(1)=4 zero-padded to 16 (bf16 tiling)
NEWZ_PAD = 128             # lane-dense new_z output slab width

# ---- packed small-weight slab column offsets (bf16, shape (2B, WMAT_COLS)) ---
WM_F2 = 0                    # (B, 128)  fuse_maps layer 2, out-lanes padded to 128
WM_P1 = WM_F2 + NEWZ_PAD     # (B, B)    projection Linear 1
WM_P2 = WM_P1 + B            # (B, B)    projection Linear 2
WM_Z1 = WM_P2 + B            # (2B, B)   z_transform Linear 1 (prev_z ‖ T_z stacked)
WM_Z2 = WM_Z1 + B            # (B, B)    z_transform Linear 2
WM_F1 = WM_Z2 + B            # (2B, B)   fuse_maps Linear 1 (curr_z ‖ prev_z_t stacked)
WMAT_COLS = WM_F1 + B        # 288

# ---- packed bias slab offsets (f32, shape (1, BIAS_COLS)) --------------------
BI_D = 0                     # (1, DEC_FLAT)  dec_input bias (128-aligned slice)
BI_F2 = BI_D + DEC_FLAT      # (1, 128)       fuse_maps bias 2 (padded, 128-aligned)
BI_P1 = BI_F2 + NEWZ_PAD
BI_P2 = BI_P1 + B
BI_Z1 = BI_P2 + B
BI_Z2 = BI_Z1 + B
BI_F1 = BI_Z2 + B
BIAS_COLS = BI_F1 + B        # 6560


def resnet_depth_map_kernel(
    # inputs
    x_ref,       # (N*P, IN_CH_PAD) bf16   concat(rgb, depth) channels-last, zero padded
    pztz_ref,    # (N, 2B) bf16            cat(prev_z, T_z) zero-padded to 2B lanes
    w_enc_ref,   # (IN_CH_PAD, 512) bf16   encoder stand-in 1x1 conv
    w_proj_ref,  # (512, B) bf16           projection 1x1 conv (bias=False), pre-scaled by 1/P
    wmat_ref,    # (2B, WMAT_COLS) bf16    packed small weight matrices
    bias_ref,    # (1, BIAS_COLS) f32      packed biases (incl. dec_input bias)
    w_d_hbm,     # (B, DEC_FLAT) bf16      dec_input weight (HBM, manual DMA)
    # outputs
    dec_ref,     # (N, DEC_FLAT) f32
    newz_ref,    # (N, NEWZ_PAD) f32       lane-dense; first B lanes = new_z
    # scratch
    wd_vmem,     # (B, DEC_FLAT) bf16      landing buffer for w_d
    wd_sem,      # DMA semaphore
):
    f32 = jnp.float32
    bf16 = jnp.bfloat16
    N = pztz_ref.shape[0]

    # --- dec_input weight: start the dominant HBM->VMEM DMA immediately; it
    # hides behind the encoder matmul + MLP chain, waited right before use.
    wd_copy = pltpu.make_async_copy(w_d_hbm, wd_vmem, wd_sem)
    wd_copy.start()

    def wm(col, rows=B, width=B):          # packed small weight matrices (bf16)
        return wmat_ref[pl.ds(0, rows), pl.ds(col, width)]

    def bv(col, width=B):                  # packed biases (f32)
        return bias_ref[:, pl.ds(col, width)]

    # --- encoder + adaptive average pool: ONE matmul + in-register pooling ---
    # TODO(synk): RGBDepthResnet is not defined in the provided source; this is
    # a 1x1-conv + ReLU stand-in producing the expected 512-channel features.
    feat = jnp.dot(x_ref[...], w_enc_ref[...], preferred_element_type=f32)  # (N*P, 512)
    feat = jnp.maximum(feat, 0.0)                                           # encoder ReLU
    # per-image pooled sum (the 1/P scale is folded into w_proj)
    pooled_sum = jnp.concatenate(
        [jnp.sum(feat[n * P:(n + 1) * P, :], axis=0, keepdims=True) for n in range(N)],
        axis=0)                                                             # (N, 512) f32

    # --- projection: Conv2d(512->B, 1x1, bias=False) -> AvgPool -> Flatten ->
    #     Linear+ReLU -> Linear+ReLU.  Pool-before-project (conv is linear).
    pooled = jnp.dot(pooled_sum.astype(bf16), w_proj_ref[...],
                     preferred_element_type=f32)                            # (N, B)
    h = jnp.maximum(jnp.dot(pooled.astype(bf16), wm(WM_P1),
                            preferred_element_type=f32) + bv(BI_P1), 0.0)
    curr_z = jnp.maximum(jnp.dot(h.astype(bf16), wm(WM_P2),
                                 preferred_element_type=f32) + bv(BI_P2), 0.0)

    # --- z_transform on cat(prev_z, T_z): single K=2B matmul (stacked weights)
    h = jnp.maximum(jnp.dot(pztz_ref[...], wm(WM_Z1, rows=2 * B),
                            preferred_element_type=f32) + bv(BI_Z1), 0.0)
    prev_z_t = jnp.maximum(jnp.dot(h.astype(bf16), wm(WM_Z2),
                                   preferred_element_type=f32) + bv(BI_Z2), 0.0)

    # --- fuse_maps on cat(curr_z, prev_z_t): lane concat + single K=2B matmul
    zz = jnp.concatenate([curr_z, prev_z_t], axis=1).astype(bf16)           # (N, 2B)
    h = jnp.maximum(jnp.dot(zz, wm(WM_F1, rows=2 * B),
                            preferred_element_type=f32) + bv(BI_F1), 0.0)
    # w_f2 / b_f2 are zero-padded to 128 output lanes -> lanes [B:128) are 0 and
    # the store below is a single lane-dense full-slab store.
    new_z_wide = jnp.maximum(
        jnp.dot(h.astype(bf16), wm(WM_F2, width=NEWZ_PAD),
                preferred_element_type=f32) + bv(BI_F2, NEWZ_PAD), 0.0)     # (N, 128)
    newz_ref[...] = new_z_wide

    # --- dec_input: Linear(B -> 7*7*128) + ReLU (uses the prefetched w_d) -----
    wd_copy.wait()
    new_z = new_z_wide[:, :B].astype(bf16)                                  # (N, B)
    dec = jnp.dot(new_z, wd_vmem[...], preferred_element_type=f32)
    dec_ref[...] = jnp.maximum(dec + bv(BI_D, DEC_FLAT), 0.0)


def _full_spec(shape):
    n = len(shape)
    return pl.BlockSpec(shape, lambda i, n=n: (0,) * n)


def init_params(key, dtype=jnp.float32):
    ks = jax.random.split(key, 18)
    s = 0.02
    p = {}
    p['w_enc'] = jax.random.normal(ks[0], (4, ENC_CH), dtype) * s      # rgbd -> 512 (stand-in)
    p['w_proj'] = jax.random.normal(ks[1], (ENC_CH, B), dtype) * s
    p['w_p1'] = jax.random.normal(ks[2], (B, B), dtype) * s
    p['b_p1'] = jax.random.normal(ks[3], (1, B), dtype) * s
    p['w_p2'] = jax.random.normal(ks[4], (B, B), dtype) * s
    p['b_p2'] = jax.random.normal(ks[5], (1, B), dtype) * s
    p['w_z1a'] = jax.random.normal(ks[6], (B, B), dtype) * s           # prev_z part of Linear(B+3,B)
    p['w_z1b'] = jax.random.normal(ks[7], (3, B), dtype) * s           # T_z part
    p['b_z1'] = jax.random.normal(ks[8], (1, B), dtype) * s
    p['w_z2'] = jax.random.normal(ks[9], (B, B), dtype) * s
    p['b_z2'] = jax.random.normal(ks[10], (1, B), dtype) * s
    p['w_f1a'] = jax.random.normal(ks[11], (B, B), dtype) * s          # curr_z part of Linear(2B,B)
    p['w_f1b'] = jax.random.normal(ks[12], (B, B), dtype) * s          # prev_z part
    p['b_f1'] = jax.random.normal(ks[13], (1, B), dtype) * s
    p['w_f2'] = jax.random.normal(ks[14], (B, B), dtype) * s
    p['b_f2'] = jax.random.normal(ks[15], (1, B), dtype) * s
    p['w_d'] = jax.random.normal(ks[16], (B, DEC_FLAT), dtype) * s
    p['b_d'] = jax.random.normal(ks[17], (1, DEC_FLAT), dtype) * s
    return p


def _pack_params(params):
    """bf16-cast the MXU operands and pack the small weights/biases into slabs."""
    f32 = jnp.float32
    bf16 = jnp.bfloat16

    w_enc = jnp.pad(params['w_enc'],
                    ((0, IN_CH_PAD - params['w_enc'].shape[0]), (0, 0))).astype(bf16)
    # fold the adaptive-average-pool 1/P scale into the bias-free projection conv
    w_proj = (params['w_proj'] * (1.0 / float(P))).astype(bf16)

    def pad_rows(w, rows=2 * B):
        return jnp.pad(w, ((0, rows - w.shape[0]), (0, 0)))

    w_z1 = jnp.concatenate([params['w_z1a'], params['w_z1b']], axis=0)   # (B+3, B)
    w_f1 = jnp.concatenate([params['w_f1a'], params['w_f1b']], axis=0)   # (2B, B)
    w_f2w = jnp.pad(params['w_f2'], ((0, 0), (0, NEWZ_PAD - B)))         # (B, 128)
    wmat = jnp.concatenate(
        [pad_rows(w_f2w), pad_rows(params['w_p1']), pad_rows(params['w_p2']),
         pad_rows(w_z1), pad_rows(params['w_z2']), pad_rows(w_f1)],
        axis=1).astype(bf16)                                             # (2B, 288)

    b_f2w = jnp.pad(params['b_f2'], ((0, 0), (0, NEWZ_PAD - B)))         # (1, 128)
    bias = jnp.concatenate(
        [params['b_d'], b_f2w, params['b_p1'], params['b_p2'],
         params['b_z1'], params['b_z2'], params['b_f1']],
        axis=1).astype(f32)                                              # (1, 6560)

    w_d = params['w_d'].astype(bf16)                                     # (B, DEC_FLAT)
    return w_enc, w_proj, wmat, bias, w_d


def resnet_depth_map_forward(rgb_img, depth_img, dx, dy, dtheta, prev_z, params):
    """rgb_img: (N,3,H,W), depth_img: (N,1,H,W)  (NCHW, like PyTorch)."""
    N = rgb_img.shape[0]
    Pn = rgb_img.shape[2] * rgb_img.shape[3]
    assert Pn == P

    # NCHW -> flat channels-last (N*P, C), zero-pad channels 4 -> IN_CH_PAD, bf16
    x = jnp.concatenate([rgb_img, depth_img], axis=1)               # (N,4,H,W)
    x = jnp.transpose(x, (0, 2, 3, 1)).reshape(N * Pn, 4)
    x = jnp.pad(x, ((0, 0), (0, IN_CH_PAD - 4))).astype(jnp.bfloat16)

    # cat(prev_z, T_z) with T_z = stack((dx,dy,dtheta),1), zero-padded to 2B lanes
    tz = jnp.stack([dx, dy, dtheta], axis=1)                        # (N, 3)
    pztz = jnp.concatenate([prev_z, tz], axis=1)                    # (N, B+3)
    pztz = jnp.pad(pztz, ((0, 0), (0, 2 * B - (B + 3)))).astype(jnp.bfloat16)

    w_enc, w_proj, wmat, bias, w_d = _pack_params(params)

    ins = [x, pztz, w_enc, w_proj, wmat, bias, w_d]
    in_specs = ([_full_spec(a.shape) for a in ins[:-1]]
                + [pl.BlockSpec(memory_space=pl.ANY)])      # w_d: manual DMA

    dec, newz_wide = pl.pallas_call(
        resnet_depth_map_kernel,
        out_shape=(
            jax.ShapeDtypeStruct((N, DEC_FLAT), jnp.float32),
            jax.ShapeDtypeStruct((N, NEWZ_PAD), jnp.float32),
        ),
        grid=(1,),
        in_specs=in_specs,
        out_specs=(
            _full_spec((N, DEC_FLAT)),
            _full_spec((N, NEWZ_PAD)),
        ),
        scratch_shapes=[
            pltpu.VMEM((B, DEC_FLAT), jnp.bfloat16),   # w_d landing buffer
            pltpu.SemaphoreType.DMA(()),
        ],
        compiler_params=pltpu.CompilerParams(
            dimension_semantics=("arbitrary",)),
    )(*ins)

    new_z = newz_wide[:, :B]
    # x = x.view(-1, 128, 7, 7)
    x_dec = dec.reshape(N, DEC_CH, DEC_HW, DEC_HW)
    # TODO(synk): MapDecoder is not defined in the provided source; returning
    # the decoder-input feature map (N, 128, 7, 7) in its place.
    return x_dec, new_z


if __name__ == "__main__":
    key = jax.random.PRNGKey(0)
    k_rgb, k_depth, k_dx, k_dy, k_dt, k_pz, k_params = jax.random.split(key, 7)

    rgb_img = jax.random.normal(k_rgb, (BATCH, 3, IMG_H, IMG_W), jnp.float32)
    depth_img = jax.random.normal(k_depth, (BATCH, 1, IMG_H, IMG_W), jnp.float32)
    dx = jax.random.normal(k_dx, (BATCH,), jnp.float32)
    dy = jax.random.normal(k_dy, (BATCH,), jnp.float32)
    dtheta = jax.random.normal(k_dt, (BATCH,), jnp.float32)
    prev_z = jax.random.normal(k_pz, (BATCH, BOTTLENECK), jnp.float32)

    params = init_params(k_params)

    x_out, new_z = resnet_depth_map_forward(
        rgb_img, depth_img, dx, dy, dtheta, prev_z, params)
    jax.block_until_ready((x_out, new_z))

    assert x_out.shape == (BATCH, DEC_CH, DEC_HW, DEC_HW)
    assert new_z.shape == (BATCH, BOTTLENECK)
    print("KERNEL_OK")
</pallas_src>

<mosaic_0001>
module attributes {stable_mosaic.version = 11 : i64} {
  func.func @resnet_depth_map_kernel(%arg0: i32, %arg1: memref<512x16xbf16, #tpu.memory_space<vmem>>, %arg2: memref<2x64xbf16, #tpu.memory_space<vmem>>, %arg3: memref<16x512xbf16, #tpu.memory_space<vmem>>, %arg4: memref<512x32xbf16, #tpu.memory_space<vmem>>, %arg5: memref<64x288xbf16, #tpu.memory_space<vmem>>, %arg6: memref<1x6560xf32, #tpu.memory_space<vmem>>, %arg7: memref<32x6272xbf16, #tpu.memory_space<any>>, %arg8: memref<2x6272xf32, #tpu.memory_space<vmem>>, %arg9: memref<2x128xf32, #tpu.memory_space<vmem>>, %arg10: memref<32x6272xbf16, #tpu.memory_space<vmem>>, %arg11: memref<!tpu.dma_semaphore, #tpu.memory_space<semaphore_mem>>) attributes {dimension_semantics = [#tpu.dimension_semantics<arbitrary>], iteration_bounds = array<i64: 1>, scalar_prefetch = 0 : i64, scratch_operands = 2 : i64, tpu.core_type = #tpu.core_type<tc>, window_params = [{pipeline_mode = #tpu.pipeline_mode<synchronous>, transform_indices = @transform_0, window_bounds = array<i64: 512, 16>}, {pipeline_mode = #tpu.pipeline_mode<synchronous>, transform_indices = @transform_1, window_bounds = array<i64: 2, 64>}, {pipeline_mode = #tpu.pipeline_mode<synchronous>, transform_indices = @transform_2, window_bounds = array<i64: 16, 512>}, {pipeline_mode = #tpu.pipeline_mode<synchronous>, transform_indices = @transform_3, window_bounds = array<i64: 512, 32>}, {pipeline_mode = #tpu.pipeline_mode<synchronous>, transform_indices = @transform_4, window_bounds = array<i64: 64, 288>}, {pipeline_mode = #tpu.pipeline_mode<synchronous>, transform_indices = @transform_5, window_bounds = array<i64: 1, 6560>}, {}, {pipeline_mode = #tpu.pipeline_mode<synchronous>, transform_indices = @transform_7, window_bounds = array<i64: 2, 6272>}, {pipeline_mode = #tpu.pipeline_mode<synchronous>, transform_indices = @transform_8, window_bounds = array<i64: 2, 128>}]} {
    tpu.enqueue_dma source(%arg7 : memref<32x6272xbf16, #tpu.memory_space<any>>) target(%arg10 : memref<32x6272xbf16, #tpu.memory_space<vmem>>) target_semaphore(%arg11 : memref<!tpu.dma_semaphore, #tpu.memory_space<semaphore_mem>>)
    %c0 = arith.constant 0 : index
    %c0_0 = arith.constant 0 : index
    %0 = vector.load %arg1[%c0, %c0_0] : memref<512x16xbf16, #tpu.memory_space<vmem>>, vector<512x16xbf16>
    %c0_1 = arith.constant 0 : index
    %c0_2 = arith.constant 0 : index
    %1 = vector.load %arg3[%c0_1, %c0_2] : memref<16x512xbf16, #tpu.memory_space<vmem>>, vector<16x512xbf16>
    %cst = arith.constant dense<0.000000e+00> : vector<512x512xf32>
    %2 = tpu.matmul %0, %1, %cst {dimension_numbers = #tpu.dot_dimension_numbers<[1], [0], [0], [1], [0, 0, 1, 1], [], []>} : vector<512x16xbf16>, vector<16x512xbf16>, vector<512x512xf32> -> vector<512x512xf32>
    %cst_3 = arith.constant 0.000000e+00 : f32
    %3 = vector.broadcast %cst_3 : f32 to vector<512x512xf32>
    %4 = arith.maximumf %2, %3 : vector<512x512xf32>
    %5 = vector.extract_strided_slice %4 {offsets = [0, 0], sizes = [256, 512], strides = [1, 1]} : vector<512x512xf32> to vector<256x512xf32>
    %cst_4 = arith.constant dense<0.000000e+00> : vector<512xf32>
    %6 = vector.multi_reduction <add>, %5, %cst_4 [0] : vector<256x512xf32> to vector<512xf32>
    %7 = vector.shape_cast %6 : vector<512xf32> to vector<1x512xf32>
    %8 = vector.extract_strided_slice %4 {offsets = [256, 0], sizes = [256, 512], strides = [1, 1]} : vector<512x512xf32> to vector<256x512xf32>
    %cst_5 = arith.constant dense<0.000000e+00> : vector<512xf32>
    %9 = vector.multi_reduction <add>, %8, %cst_5 [0] : vector<256x512xf32> to vector<512xf32>
    %10 = vector.shape_cast %9 : vector<512xf32> to vector<1x512xf32>
    %11 = tpu.concatenate %7, %10 in 0 : vector<1x512xf32>, vector<1x512xf32> -> vector<2x512xf32>
    %12 = arith.truncf %11 : vector<2x512xf32> to vector<2x512xbf16>
    %c0_6 = arith.constant 0 : index
    %c0_7 = arith.constant 0 : index
    %13 = vector.load %arg4[%c0_6, %c0_7] : memref<512x32xbf16, #tpu.memory_space<vmem>>, vector<512x32xbf16>
    %cst_8 = arith.constant dense<0.000000e+00> : vector<2x32xf32>
    %14 = tpu.matmul %12, %13, %cst_8 {dimension_numbers = #tpu.dot_dimension_numbers<[1], [0], [0], [1], [0, 0, 1, 1], [], []>} : vector<2x512xbf16>, vector<512x32xbf16>, vector<2x32xf32> -> vector<2x32xf32>
    %15 = arith.truncf %14 : vector<2x32xf32> to vector<2x32xbf16>
    %c0_9 = arith.constant 0 : index
    %c128 = arith.constant 128 : index
    %16 = vector.load %arg5[%c0_9, %c128] : memref<64x288xbf16, #tpu.memory_space<vmem>>, vector<32x32xbf16>
    %cst_10 = arith.constant dense<0.000000e+00> : vector<2x32xf32>
    %17 = tpu.matmul %15, %16, %cst_10 {dimension_numbers = #tpu.dot_dimension_numbers<[1], [0], [0], [1], [0, 0, 1, 1], [], []>} : vector<2x32xbf16>, vector<32x32xbf16>, vector<2x32xf32> -> vector<2x32xf32>
    %c0_11 = arith.constant 0 : index
    %c6400 = arith.constant 6400 : index
    %18 = vector.load %arg6[%c0_11, %c6400] : memref<1x6560xf32, #tpu.memory_space<vmem>>, vector<1x32xf32>
    %19 = vector.broadcast %18 : vector<1x32xf32> to vector<2x32xf32>
    %20 = arith.addf %17, %19 : vector<2x32xf32>
    %cst_12 = arith.constant 0.000000e+00 : f32
    %21 = vector.broadcast %cst_12 : f32 to vector<2x32xf32>
    %22 = arith.maximumf %20, %21 : vector<2x32xf32>
    %23 = arith.truncf %22 : vector<2x32xf32> to vector<2x32xbf16>
    %c0_13 = arith.constant 0 : index
    %c160 = arith.constant 160 : index
    %24 = vector.load %arg5[%c0_13, %c160] : memref<64x288xbf16, #tpu.memory_space<vmem>>, vector<32x32xbf16>
    %cst_14 = arith.constant dense<0.000000e+00> : vector<2x32xf32>
    %25 = tpu.matmul %23, %24, %cst_14 {dimension_numbers = #tpu.dot_dimension_numbers<[1], [0], [0], [1], [0, 0, 1, 1], [], []>} : vector<2x32xbf16>, vector<32x32xbf16>, vector<2x32xf32> -> vector<2x32xf32>
    %c0_15 = arith.constant 0 : index
    %c6432 = arith.constant 6432 : index
    %26 = vector.load %arg6[%c0_15, %c6432] : memref<1x6560xf32, #tpu.memory_space<vmem>>, vector<1x32xf32>
    %27 = vector.broadcast %26 : vector<1x32xf32> to vector<2x32xf32>
    %28 = arith.addf %25, %27 : vector<2x32xf32>
    %cst_16 = arith.constant 0.000000e+00 : f32
    %29 = vector.broadcast %cst_16 : f32 to vector<2x32xf32>
    %30 = arith.maximumf %28, %29 : vector<2x32xf32>
    %c0_17 = arith.constant 0 : index
    %c0_18 = arith.constant 0 : index
    %31 = vector.load %arg2[%c0_17, %c0_18] : memref<2x64xbf16, #tpu.memory_space<vmem>>, vector<2x64xbf16>
    %c0_19 = arith.constant 0 : index
    %c192 = arith.constant 192 : index
    %32 = vector.load %arg5[%c0_19, %c192] : memref<64x288xbf16, #tpu.memory_space<vmem>>, vector<64x32xbf16>
    %cst_20 = arith.constant dense<0.000000e+00> : vector<2x32xf32>
    %33 = tpu.matmul %31, %32, %cst_20 {dimension_numbers = #tpu.dot_dimension_numbers<[1], [0], [0], [1], [0, 0, 1, 1], [], []>} : vector<2x64xbf16>, vector<64x32xbf16>, vector<2x32xf32> -> vector<2x32xf32>
    %c0_21 = arith.constant 0 : index
    %c6464 = arith.constant 6464 : index
    %34 = vector.load %arg6[%c0_21, %c6464] : memref<1x6560xf32, #tpu.memory_space<vmem>>, vector<1x32xf32>
    %35 = vector.broadcast %34 : vector<1x32xf32> to vector<2x32xf32>
    %36 = arith.addf %33, %35 : vector<2x32xf32>
    %cst_22 = arith.constant 0.000000e+00 : f32
    %37 = vector.broadcast %cst_22 : f32 to vector<2x32xf32>
    %38 = arith.maximumf %36, %37 : vector<2x32xf32>
    %39 = arith.truncf %38 : vector<2x32xf32> to vector<2x32xbf16>
    %c0_23 = arith.constant 0 : index
    %c224 = arith.constant 224 : index
    %40 = vector.load %arg5[%c0_23, %c224] : memref<64x288xbf16, #tpu.memory_space<vmem>>, vector<32x32xbf16>
    %cst_24 = arith.constant dense<0.000000e+00> : vector<2x32xf32>
    %41 = tpu.matmul %39, %40, %cst_24 {dimension_numbers = #tpu.dot_dimension_numbers<[1], [0], [0], [1], [0, 0, 1, 1], [], []>} : vector<2x32xbf16>, vector<32x32xbf16>, vector<2x32xf32> -> vector<2x32xf32>
    %c0_25 = arith.constant 0 : index
    %c6496 = arith.constant 6496 : index
    %42 = vector.load %arg6[%c0_25, %c6496] : memref<1x6560xf32, #tpu.memory_space<vmem>>, vector<1x32xf32>
    %43 = vector.broadcast %42 : vector<1x32xf32> to vector<2x32xf32>
    %44 = arith.addf %41, %43 : vector<2x32xf32>
    %cst_26 = arith.constant 0.000000e+00 : f32
    %45 = vector.broadcast %cst_26 : f32 to vector<2x32xf32>
    %46 = arith.maximumf %44, %45 : vector<2x32xf32>
    %47 = tpu.concatenate %30, %46 in 1 : vector<2x32xf32>, vector<2x32xf32> -> vector<2x64xf32>
    %48 = arith.truncf %47 : vector<2x64xf32> to vector<2x64xbf16>
    %c0_27 = arith.constant 0 : index
    %c256 = arith.constant 256 : index
    %49 = vector.load %arg5[%c0_27, %c256] : memref<64x288xbf16, #tpu.memory_space<vmem>>, vector<64x32xbf16>
    %cst_28 = arith.constant dense<0.000000e+00> : vector<2x32xf32>
    %50 = tpu.matmul %48, %49, %cst_28 {dimension_numbers = #tpu.dot_dimension_numbers<[1], [0], [0], [1], [0, 0, 1, 1], [], []>} : vector<2x64xbf16>, vector<64x32xbf16>, vector<2x32xf32> -> vector<2x32xf32>
    %c0_29 = arith.constant 0 : index
    %c6528 = arith.constant 6528 : index
    %51 = vector.load %arg6[%c0_29, %c6528] : memref<1x6560xf32, #tpu.memory_space<vmem>>, vector<1x32xf32>
    %52 = vector.broadcast %51 : vector<1x32xf32> to vector<2x32xf32>
    %53 = arith.addf %50, %52 : vector<2x32xf32>
    %cst_30 = arith.constant 0.000000e+00 : f32
    %54 = vector.broadcast %cst_30 : f32 to vector<2x32xf32>
    %55 = arith.maximumf %53, %54 : vector<2x32xf32>
    %56 = arith.truncf %55 : vector<2x32xf32> to vector<2x32xbf16>
    %c0_31 = arith.constant 0 : index
    %c0_32 = arith.constant 0 : index
    %57 = vector.load %arg5[%c0_31, %c0_32] : memref<64x288xbf16, #tpu.memory_space<vmem>>, vector<32x128xbf16>
    %cst_33 = arith.constant dense<0.000000e+00> : vector<2x128xf32>
    %58 = tpu.matmul %56, %57, %cst_33 {dimension_numbers = #tpu.dot_dimension_numbers<[1], [0], [0], [1], [0, 0, 1, 1], [], []>} : vector<2x32xbf16>, vector<32x128xbf16>, vector<2x128xf32> -> vector<2x128xf32>
    %c0_34 = arith.constant 0 : index
    %c6272 = arith.constant 6272 : index
    %59 = vector.load %arg6[%c0_34, %c6272] : memref<1x6560xf32, #tpu.memory_space<vmem>>, vector<1x128xf32>
    %60 = vector.broadcast %59 : vector<1x128xf32> to vector<2x128xf32>
    %61 = arith.addf %58, %60 : vector<2x128xf32>
    %cst_35 = arith.constant 0.000000e+00 : f32
    %62 = vector.broadcast %cst_35 : f32 to vector<2x128xf32>
    %63 = arith.maximumf %61, %62 : vector<2x128xf32>
    %c0_36 = arith.constant 0 : index
    %c0_37 = arith.constant 0 : index
    %64 = vector.load %arg9[%c0_36, %c0_37] : memref<2x128xf32, #tpu.memory_space<vmem>>, vector<2x128xf32>
    tpu.vector_store %arg9[%c0_36, %c0_37], %63 {strides = array<i32>} : memref<2x128xf32, #tpu.memory_space<vmem>>, vector<2x128xf32>,
    tpu.wait_dma2 semaphore(%arg11 : memref<!tpu.dma_semaphore, #tpu.memory_space<semaphore_mem>>) src(%arg7 : memref<32x6272xbf16, #tpu.memory_space<any>>) dst(%arg10 : memref<32x6272xbf16, #tpu.memory_space<vmem>>)
    %65 = vector.extract_strided_slice %63 {offsets = [0, 0], sizes = [2, 32], strides = [1, 1]} : vector<2x128xf32> to vector<2x32xf32>
    %66 = arith.truncf %65 : vector<2x32xf32> to vector<2x32xbf16>
    %c0_38 = arith.constant 0 : index
    %c0_39 = arith.constant 0 : index
    %67 = vector.load %arg10[%c0_38, %c0_39] : memref<32x6272xbf16, #tpu.memory_space<vmem>>, vector<32x6272xbf16>
    %cst_40 = arith.constant dense<0.000000e+00> : vector<2x6272xf32>
    %68 = tpu.matmul %66, %67, %cst_40 {dimension_numbers = #tpu.dot_dimension_numbers<[1], [0], [0], [1], [0, 0, 1, 1], [], []>} : vector<2x32xbf16>, vector<32x6272xbf16>, vector<2x6272xf32> -> vector<2x6272xf32>
    %c0_41 = arith.constant 0 : index
    %c0_42 = arith.constant 0 : index
    %69 = vector.load %arg6[%c0_41, %c0_42] : memref<1x6560xf32, #tpu.memory_space<vmem>>, vector<1x6272xf32>
    %70 = vector.broadcast %69 : vector<1x6272xf32> to vector<2x6272xf32>
    %71 = arith.addf %68, %70 : vector<2x6272xf32>
    %cst_43 = arith.constant 0.000000e+00 : f32
    %72 = vector.broadcast %cst_43 : f32 to vector<2x6272xf32>
    %73 = arith.maximumf %71, %72 : vector<2x6272xf32>
    %c0_44 = arith.constant 0 : index
    %c0_45 = arith.constant 0 : index
    %74 = vector.load %arg8[%c0_44, %c0_45] : memref<2x6272xf32, #tpu.memory_space<vmem>>, vector<2x6272xf32>
    tpu.vector_store %arg8[%c0_44, %c0_45], %73 {strides = array<i32>} : memref<2x6272xf32, #tpu.memory_space<vmem>>, vector<2x6272xf32>,
    return
  }
  func.func @transform_0(%arg0: i32) -> (i32, i32) {
    %c0_i32 = arith.constant 0 : i32
    %c0_i32_0 = arith.constant 0 : i32
    %c0_i32_1 = arith.constant 0 : i32
    return %c0_i32, %c0_i32_0 : i32, i32
  }
  func.func @transform_1(%arg0: i32) -> (i32, i32) {
    %c0_i32 = arith.constant 0 : i32
    %c0_i32_0 = arith.constant 0 : i32
    %c0_i32_1 = arith.constant 0 : i32
    return %c0_i32, %c0_i32_0 : i32, i32
  }
  func.func @transform_2(%arg0: i32) -> (i32, i32) {
    %c0_i32 = arith.constant 0 : i32
    %c0_i32_0 = arith.constant 0 : i32
    %c0_i32_1 = arith.constant 0 : i32
    return %c0_i32, %c0_i32_0 : i32, i32
  }
  func.func @transform_3(%arg0: i32) -> (i32, i32) {
    %c0_i32 = arith.constant 0 : i32
    %c0_i32_0 = arith.constant 0 : i32
    %c0_i32_1 = arith.constant 0 : i32
    return %c0_i32, %c0_i32_0 : i32, i32
  }
  func.func @transform_4(%arg0: i32) -> (i32, i32) {
    %c0_i32 = arith.constant 0 : i32
    %c0_i32_0 = arith.constant 0 : i32
    %c0_i32_1 = arith.constant 0 : i32
    return %c0_i32, %c0_i32_0 : i32, i32
  }
  func.func @transform_5(%arg0: i32) -> (i32, i32) {
    %c0_i32 = arith.constant 0 : i32
    %c0_i32_0 = arith.constant 0 : i32
    %c0_i32_1 = arith.constant 0 : i32
    return %c0_i32, %c0_i32_0 : i32, i32
  }
  func.func @transform_7(%arg0: i32) -> (i32, i32) {
    %c0_i32 = arith.constant 0 : i32
    %c0_i32_0 = arith.constant 0 : i32
    %c0_i32_1 = arith.constant 0 : i32
    return %c0_i32, %c0_i32_0 : i32, i32
  }
  func.func @transform_8(%arg0: i32) -> (i32, i32) {
    %c0_i32 = arith.constant 0 : i32
    %c0_i32_0 = arith.constant 0 : i32
    %c0_i32_1 = arith.constant 0 : i32
    return %c0_i32, %c0_i32_0 : i32, i32
  }
}

</mosaic_0001>

<bundles_post_ra>
// kernel: tpu_custom_call.1
= control target key start
LH: loop header
LB: loop body
LE: loop exit
PB: predicated region body
PF: predicated region fallthrough
CT: control target
= control target key end

     0   :  { %14 = vsyncpa [#allocation5], 0  ;;  %v6410_v2 = vmov 0   ;;  %vm288_vm0 = vcmask 130048   ;;  %s6401_s0 = inlined_call_operand.vmem [shape: bf16[512,16], index: 0, kind: input, shape index: {}]   ;;  %s6402_s1 = inlined_call_operand.vmem [shape: bf16[2,64], index: 1, kind: input, shape index: {}]   ;;  %s6403_s2 = inlined_call_operand.vmem [shape: bf16[16,512], index: 2, kind: input, shape index: {}]   ;;  %s6404_s3 = inlined_call_operand.vmem [shape: bf16[512,32], index: 3, kind: input, shape index: {}]   ;;  %s6405_s4 = inlined_call_operand.vmem [shape: bf16[64,288], index: 4, kind: input, shape index: {}]   ;;  %s6406_s5 = inlined_call_operand.vmem [shape: f32[1,6560], index: 5, kind: input, shape index: {}]   ;;  %s6407_s6 = inlined_call_operand.hbm [shape: bf16[32,6272], index: 6, kind: input, shape index: {}]   ;;  %s6408_s7 = inlined_call_operand.hbm [shape: f32[2,6272], index: 7, kind: output, shape index: {0}]   ;;  %s6409_s8 = inlined_call_operand.hbm [shape: f32[2,128], index: 8, kind: output, shape index: {1}]  }
   0x1   :  { %v5086_v0 = vld [vmem:[%s6403_s2 + $0x4] ss:$16 sps:$4 sm:$0xff]   ;;  %v5088_v1 = vld [vmem:[%s6403_s2 + $0xc] ss:$16 sps:$4 sm:$0xff]   ;;  %417 = vmatprep.mubr.bf16.mxu0 %v6410_v2  ;;  %770 = vmatprep.mubr.bf16.mxu1 %v6410_v2  ;;  %v5090_v3 = vld [vmem:[%s6403_s2] ss:$16 sps:$4 sm:$0xff]  }
   0x2   :  { %399 = vmatprep.subr.bf16.mxu0 %v5086_v0  ;;  %v5091_v4 = vld [vmem:[%s6403_s2 + $0x8] ss:$16 sps:$4 sm:$0xff]   ;;  %752 = vmatprep.subr.bf16.mxu1 %v5088_v1  ;;  %v5092_v5 = vld [vmem:[%s6401_s0] sm:$0xff]   ;;  %v5094_v7 = vld [vmem:[%s6401_s0 + $0x10] sm:$0xff]  }
   0x3   :  { %400 = vmatpush1.bf16.msra.mxu0 %v5090_v3  ;;  %753 = vmatpush1.bf16.msra.mxu1 %v5091_v4  ;;  %v5093_v6 = vld [vmem:[%s6401_s0 + $0x8] sm:$0xff]   ;;  %v5095_v8 = vld [vmem:[%s6401_s0 + $0x18] sm:$0xff]   ;;  %v5096_v9 = vld [vmem:[%s6401_s0 + $0x20] sm:$0xff]  }
   0x4   :  { %v5097_v10 = vld [vmem:[%s6401_s0 + $0x28] sm:$0xff]   ;;  %v5098_v11 = vld [vmem:[%s6401_s0 + $0x30] sm:$0xff]   ;;  %v5099_v12 = vld [vmem:[%s6401_s0 + $0x38] sm:$0xff]  }
   0x6   :  { %4700 = vmatmul.mubr.msk.bf16.vlgmr.msra.gmra.mxu0 %vm288_vm0, %v5092_v5  ;;  %4732 = vmatmul.mubr.msk.bf16.vlgmr.msra.gmra.mxu1 %vm288_vm0, %v5092_v5 }
   0x7   :  { %427 = vmatprep.mubr.bf16.mxu0 %v6410_v2  ;;  %780 = vmatprep.mubr.bf16.mxu1 %v6410_v2 }
   0xe   :  { %4701 = vmatmul.mubr.msk.bf16.gmra.mxu0 %vm288_vm0, %v5093_v6  ;;  %4733 = vmatmul.mubr.msk.bf16.gmra.mxu1 %vm288_vm0, %v5093_v6 }
   0xf   :  { %437 = vmatprep.mubr.bf16.mxu0 %v6410_v2  ;;  %790 = vmatprep.mubr.bf16.mxu1 %v6410_v2 }
  0x16   :  { %4702 = vmatmul.mubr.msk.bf16.gmra.mxu0 %vm288_vm0, %v5094_v7  ;;  %4734 = vmatmul.mubr.msk.bf16.gmra.mxu1 %vm288_vm0, %v5094_v7 }
  0x17   :  { %447 = vmatprep.mubr.bf16.mxu0 %v6410_v2  ;;  %800 = vmatprep.mubr.bf16.mxu1 %v6410_v2 }
  0x1e   :  { %4703 = vmatmul.mubr.msk.bf16.gmra.mxu0 %vm288_vm0, %v5095_v8  ;;  %4735 = vmatmul.mubr.msk.bf16.gmra.mxu1 %vm288_vm0, %v5095_v8 }
  0x1f   :  { %457 = vmatprep.mubr.bf16.mxu0 %v6410_v2  ;;  %810 = vmatprep.mubr.bf16.mxu1 %v6410_v2 }
  0x26   :  { %4704 = vmatmul.mubr.msk.bf16.gmra.mxu0 %vm288_vm0, %v5096_v9  ;;  %4736 = vmatmul.mubr.msk.bf16.gmra.mxu1 %vm288_vm0, %v5096_v9 }
  0x27   :  { %467 = vmatprep.mubr.bf16.mxu0 %v6410_v2  ;;  %820 = vmatprep.mubr.bf16.mxu1 %v6410_v2 }
  0x2e   :  { %4705 = vmatmul.mubr.msk.bf16.gmra.mxu0 %vm288_vm0, %v5097_v10  ;;  %4737 = vmatmul.mubr.msk.bf16.gmra.mxu1 %vm288_vm0, %v5097_v10 }
  0x2f   :  { %477 = vmatprep.mubr.bf16.mxu0 %v6410_v2  ;;  %830 = vmatprep.mubr.bf16.mxu1 %v6410_v2 }
  0x36   :  { %4706 = vmatmul.mubr.msk.bf16.gmra.mxu0 %vm288_vm0, %v5098_v11  ;;  %4738 = vmatmul.mubr.msk.bf16.gmra.mxu1 %vm288_vm0, %v5098_v11 }
  0x37   :  { %487 = vmatprep.mubr.bf16.mxu0 %v6410_v2  ;;  %840 = vmatprep.mubr.bf16.mxu1 %v6410_v2 }
  0x38   :  { %15 = vsyncpa [#allocation7], 0  ;;  %v5100_v13 = vld [vmem:[%s6401_s0 + $0x40] sm:$0xff]   ;;  %v5101_v14 = vld [vmem:[%s6401_s0 + $0x48] sm:$0xff]   ;;  %s5381_s27 = smov 64   ;;  %vm1643_vm1 = vcmask 1040384  }
  0x39   :  { %v5102_v15 = vld [vmem:[%s6401_s0 + $0x50] sm:$0xff]   ;;  %v5103_v16 = vld [vmem:[%s6401_s0 + $0x58] sm:$0xff]   ;;  %v5104_v21 = vld [vmem:[%s6401_s0 + $0x60] sm:$0xff]   ;;  %vm5383_vm2 = vmmov 0   ;;  %s5384_s13 = smov 96   ;;  %s5385_s16 = smov 32  }
  0x3a   :  { %v5119_v17 = vld [vmem:[%s6404_s3 + $0x78] sm:$0xff]   ;;  %v5105_v22 = vld [vmem:[%s6401_s0 + $0x68] sm:$0xff]   ;;  %v5106_v23 = vld [vmem:[%s6401_s0 + $0x70] sm:$0xff]   ;;  %vm2012_vm3 = vcmask 261120   ;;  %vm2155_vm4 = vcmask 523264   ;;  %s5386_s30 = smov [#allocation2]  }
  0x3b   :  { %v5120_v18 = vld [vmem:[%s6404_s3 + $0xf8] sm:$0xff]   ;;  %4943 = vmatprep.subr.bf16.mxu0 %v5119_v17  ;;  %v5127_v25 = vld [vmem:[%s6404_s3 + $0x70] sm:$0xff]   ;;  %v5108_v29 = vld [vmem:[%s6401_s0 + $0x80] sm:$0xff]  }
  0x3c   :  { %v5121_v19 = vld [vmem:[%s6404_s3 + $0x38] sm:$0xff]   ;;  %4965 = vmatprep.subr.bf16.mxu1 %v5120_v18  ;;  %v5128_v26 = vld [vmem:[%s6404_s3 + $0xf0] sm:$0xff]   ;;  %v5109_v30 = vld [vmem:[%s6401_s0 + $0x88] sm:$0xff]  }
  0x3d   :  { %v5122_v20 = vld [vmem:[%s6404_s3 + $0xb8] sm:$0xff]   ;;  %4944 = vmatpush3.bf16.msra.mxu0 %v5121_v19  ;;  %v5129_v27 = vld [vmem:[%s6404_s3 + $0x30] sm:$0xff]   ;;  %v5132_v33 = vld [vmem:[%s6404_s3 + $0x68] sm:$0xff]  }
  0x3e   :  { %4707 = vmatmul.mubr.msk.bf16.gmra.mxu0 %vm288_vm0, %v5099_v12  ;;  %4739 = vmatmul.mubr.msk.bf16.gmra.mxu1 %vm288_vm0, %v5099_v12  ;;  %v5107_v24 = vld [vmem:[%s6401_s0 + $0x78] sm:$0xff]   ;;  %v5130_v28 = vld [vmem:[%s6404_s3 + $0xb0] sm:$0xff]   ;;  %v5133_v34 = vld [vmem:[%s6404_s3 + $0xe8] sm:$0xff]  }
  0x3f   :  { %497 = vmatprep.mubr.bf16.mxu0 %v6410_v2  ;;  %850 = vmatprep.mubr.bf16.mxu1 %v6410_v2  ;;  %v5110_v31 = vld [vmem:[%s6401_s0 + $0x90] sm:$0xff]   ;;  %v5111_v32 = vld [vmem:[%s6401_s0 + $0x98] sm:$0xff]   ;;  %v5134_v35 = vld [vmem:[%s6404_s3 + $0x28] sm:$0xff]  }
  0x40   :  { %4966 = vmatpush3.bf16.msra.mxu1 %v5122_v20  ;;  %4945 = vmatprep.subr.bf16.mxu0 %v5127_v25  ;;  %v5135_v36 = vld [vmem:[%s6404_s3 + $0xa8] sm:$0xff]   ;;  %v5112_v37 = vld [vmem:[%s6401_s0 + $0xa0] sm:$0xff]   ;;  %v5114_v39 = vld [vmem:[%s6401_s0 + $0xb0] sm:$0xff]  }
  0x41   :  { %4967 = vmatprep.subr.bf16.mxu1 %v5128_v26  ;;  %4946 = vmatpush3.bf16.msra.mxu0 %v5129_v27  ;;  %v5113_v38 = vld [vmem:[%s6401_s0 + $0xa8] sm:$0xff]   ;;  %v5115_v40 = vld [vmem:[%s6401_s0 + $0xb8] sm:$0xff]   ;;  %v5136_v41 = vld [vmem:[%s6404_s3 + $0x60] sm:$0xff]  }
  0x42   :  { %4947 = vmatprep.subr.bf16.mxu0 %v5132_v33  ;;  %v5137_v42 = vld [vmem:[%s6404_s3 + $0xe0] sm:$0xff]   ;;  %v5117_v52 = vld [vmem:[%s6401_s0 + $0xc8] sm:$0xff]  }
  0x43   :  { %v5138_v43 = vld [vmem:[%s6404_s3 + $0x20] sm:$0xff]  }
  0x44   :  { %4968 = vmatpush3.bf16.msra.mxu1 %v5130_v28  ;;  %v5139_v44 = vld [vmem:[%s6404_s3 + $0xa0] sm:$0xff]  }
  0x45   :  { %4969 = vmatprep.subr.bf16.mxu1 %v5133_v34  ;;  %4948 = vmatpush3.bf16.msra.mxu0 %v5134_v35  ;;  %v5116_v45 = vld [vmem:[%s6401_s0 + $0xc0] sm:$0xff]  }
  0x46   :  { %4708 = vmatmul.mubr.msk.bf16.gmra.mxu0 %vm288_vm0, %v5100_v13  ;;  %4740 = vmatmul.mubr.msk.bf16.gmra.mxu1 %vm288_vm0, %v5100_v13 }
  0x47   :  { %507 = vmatprep.mubr.bf16.mxu0 %v6410_v2  ;;  %860 = vmatprep.mubr.bf16.mxu1 %v6410_v2 }
  0x48   :  { %4970 = vmatpush3.bf16.msra.mxu1 %v5135_v36  ;;  %4949 = vmatprep.subr.bf16.mxu0 %v5136_v41  ;;  %v5123_v41 = vld [vmem:[%s6401_s0 + $0xd8] sm:$0xff]  }
  0x49   :  { %4971 = vmatprep.subr.bf16.mxu1 %v5137_v42  ;;  %4950 = vmatpush3.bf16.msra.mxu0 %v5138_v43 }
  0x4c   :  { %4972 = vmatpush3.bf16.msra.mxu1 %v5139_v44 }
  0x4e   :  { %4709 = vmatmul.mubr.msk.bf16.gmra.mxu0 %vm288_vm0, %v5101_v14  ;;  %4741 = vmatmul.mubr.msk.bf16.gmra.mxu1 %vm288_vm0, %v5101_v14 }
  0x4f   :  { %517 = vmatprep.mubr.bf16.mxu0 %v6410_v2  ;;  %870 = vmatprep.mubr.bf16.mxu1 %v6410_v2 }
  0x56   :  { %4710 = vmatmul.mubr.msk.bf16.gmra.mxu0 %vm288_vm0, %v5102_v15  ;;  %4742 = vmatmul.mubr.msk.bf16.gmra.mxu1 %vm288_vm0, %v5102_v15 }
  0x57   :  { %527 = vmatprep.mubr.bf16.mxu0 %v6410_v2  ;;  %880 = vmatprep.mubr.bf16.mxu1 %v6410_v2 }
  0x5e   :  { %4711 = vmatmul.mubr.msk.bf16.gmra.mxu0 %vm288_vm0, %v5103_v16  ;;  %4743 = vmatmul.mubr.msk.bf16.gmra.mxu1 %vm288_vm0, %v5103_v16  ;;  %v5118_v16 = vld [vmem:[%s6401_s0 + $0xd0] sm:$0xff]  }
  0x5f   :  { %537 = vmatprep.mubr.bf16.mxu0 %v6410_v2  ;;  %890 = vmatprep.mubr.bf16.mxu1 %v6410_v2 }
  0x66   :  { %4712 = vmatmul.mubr.msk.bf16.gmra.mxu0 %vm288_vm0, %v5104_v21  ;;  %4744 = vmatmul.mubr.msk.bf16.gmra.mxu1 %vm288_vm0, %v5104_v21 }
  0x67   :  { %547 = vmatprep.mubr.bf16.mxu0 %v6410_v2  ;;  %900 = vmatprep.mubr.bf16.mxu1 %v6410_v2 }
  0x6e   :  { %4713 = vmatmul.mubr.msk.bf16.gmra.mxu0 %vm288_vm0, %v5105_v22  ;;  %4745 = vmatmul.mubr.msk.bf16.gmra.mxu1 %vm288_vm0, %v5105_v22 }
  0x6f   :  { %557 = vmatprep.mubr.bf16.mxu0 %v6410_v2  ;;  %910 = vmatprep.mubr.bf16.mxu1 %v6410_v2 }
  0x76   :  { %4714 = vmatmul.mubr.msk.bf16.gmra.mxu0 %vm288_vm0, %v5106_v23  ;;  %4746 = vmatmul.mubr.msk.bf16.gmra.mxu1 %vm288_vm0, %v5106_v23 }
  0x77   :  { %567 = vmatprep.mubr.bf16.mxu0 %v6410_v2  ;;  %920 = vmatprep.mubr.bf16.mxu1 %v6410_v2 }
  0x7e   :  { %4715 = vmatmul.mubr.msk.bf16.gmra.mxu0 %vm288_vm0, %v5107_v24  ;;  %4747 = vmatmul.mubr.msk.bf16.gmra.mxu1 %vm288_vm0, %v5107_v24 }
  0x7f   :  { %577 = vmatprep.mubr.bf16.mxu0 %v6410_v2  ;;  %930 = vmatprep.mubr.bf16.mxu1 %v6410_v2 }
  0x86   :  { %4716 = vmatmul.mubr.msk.bf16.gmra.mxu0 %vm288_vm0, %v5108_v29  ;;  %4748 = vmatmul.mubr.msk.bf16.gmra.mxu1 %vm288_vm0, %v5108_v29 }
  0x87   :  { %587 = vmatprep.mubr.bf16.mxu0 %v6410_v2  ;;  %940 = vmatprep.mubr.bf16.mxu1 %v6410_v2 }
  0x8e   :  { %4717 = vmatmul.mubr.msk.bf16.gmra.mxu0 %vm288_vm0, %v5109_v30  ;;  %4749 = vmatmul.mubr.msk.bf16.gmra.mxu1 %vm288_vm0, %v5109_v30 }
  0x8f   :  { %597 = vmatprep.mubr.bf16.mxu0 %v6410_v2  ;;  %950 = vmatprep.mubr.bf16.mxu1 %v6410_v2 }
  0x96   :  { %4718 = vmatmul.mubr.msk.bf16.gmra.mxu0 %vm288_vm0, %v5110_v31  ;;  %4750 = vmatmul.mubr.msk.bf16.gmra.mxu1 %vm288_vm0, %v5110_v31 }
  0x97   :  { %607 = vmatprep.mubr.bf16.mxu0 %v6410_v2  ;;  %960 = vmatprep.mubr.bf16.mxu1 %v6410_v2 }
  0x9e   :  { %4719 = vmatmul.mubr.msk.bf16.gmra.mxu0 %vm288_vm0, %v5111_v32  ;;  %4751 = vmatmul.mubr.msk.bf16.gmra.mxu1 %vm288_vm0, %v5111_v32 }
  0x9f   :  { %617 = vmatprep.mubr.bf16.mxu0 %v6410_v2  ;;  %970 = vmatprep.mubr.bf16.mxu1 %v6410_v2 }
  0xa6   :  { %4720 = vmatmul.mubr.msk.bf16.gmra.mxu0 %vm288_vm0, %v5112_v37  ;;  %4752 = vmatmul.mubr.msk.bf16.gmra.mxu1 %vm288_vm0, %v5112_v37 }
  0xa7   :  { %627 = vmatprep.mubr.bf16.mxu0 %v6410_v2  ;;  %980 = vmatprep.mubr.bf16.mxu1 %v6410_v2 }
  0xae   :  { %4721 = vmatmul.mubr.msk.bf16.gmra.mxu0 %vm288_vm0, %v5113_v38  ;;  %4753 = vmatmul.mubr.msk.bf16.gmra.mxu1 %vm288_vm0, %v5113_v38 }
  0xaf   :  { %637 = vmatprep.mubr.bf16.mxu0 %v6410_v2  ;;  %990 = vmatprep.mubr.bf16.mxu1 %v6410_v2 }
  0xb6   :  { %4722 = vmatmul.mubr.msk.bf16.gmra.mxu0 %vm288_vm0, %v5114_v39  ;;  %4754 = vmatmul.mubr.msk.bf16.gmra.mxu1 %vm288_vm0, %v5114_v39 }
  0xb7   :  { %647 = vmatprep.mubr.bf16.mxu0 %v6410_v2  ;;  %1000 = vmatprep.mubr.bf16.mxu1 %v6410_v2 }
  0xbe   :  { %4723 = vmatmul.mubr.msk.bf16.gmra.mxu0 %vm288_vm0, %v5115_v40  ;;  %4755 = vmatmul.mubr.msk.bf16.gmra.mxu1 %vm288_vm0, %v5115_v40 }
  0xbf   :  { %657 = vmatprep.mubr.bf16.mxu0 %v6410_v2  ;;  %1010 = vmatprep.mubr.bf16.mxu1 %v6410_v2 }
  0xc6   :  { %v419_v46 = vpop.f32.mrf.mxu0  ;;  %4724 = vmatmul.mubr.msk.bf16.gmra.mxu0 %vm288_vm0, %v5116_v45  ;;  %v772_v47 = vpop.f32.mrf.mxu1  ;;  %4756 = vmatmul.mubr.msk.bf16.gmra.mxu1 %vm288_vm0, %v5116_v45 }
  0xc7   :  { %667 = vmatprep.mubr.bf16.mxu0 %v6410_v2  ;;  %1020 = vmatprep.mubr.bf16.mxu1 %v6410_v2  ;;  %v1091_v53 = vmax.f32 %v419_v46, 0.0  ;;  %v1093_v54 = vmax.f32 %v772_v47, 0.0  ;;  %v5140_v46 = vld [vmem:[%s6404_s3 + $0x58] sm:$0xff]  }
  0xc8   :  { %v421_v48 = vpop.f32.mrf.mxu0  ;;  %v774_v49 = vpop.f32.mrf.mxu1  ;;  %v5141_v47 = vld [vmem:[%s6404_s3 + $0xd8] sm:$0xff]   ;;  %4951 = vmatprep.subr.bf16.mxu0 %v5140_v46 }
  0xc9   :  { %v1092_v57 = vmax.f32 %v421_v48, 0.0  ;;  %v1094_v58 = vmax.f32 %v774_v49, 0.0  ;;  %4973 = vmatprep.subr.bf16.mxu1 %v5141_v47 }
  0xca   :  { %v423_v50 = vpop.f32.mrf.mxu0  ;;  %v776_v51 = vpop.f32.mrf.mxu1 }
  0xcb   :  { %v1095_v55 = vmax.f32 %v423_v50, 0.0  ;;  %v1097_v56 = vmax.f32 %v776_v51, 0.0  ;;  %v5142_v50 = vld [vmem:[%s6404_s3 + $0x18] sm:$0xff]  }
  0xcc   :  { %v425_v59 = vpop.f32.mrf.mxu0  ;;  %v778_v60 = vpop.f32.mrf.mxu1  ;;  %v5143_v51 = vld [vmem:[%s6404_s3 + $0x98] sm:$0xff]   ;;  %4952 = vmatpush3.bf16.msra.mxu0 %v5142_v50 }
  0xcd   :  { %v1347_v61 = vadd.f32 %v1095_v55, %v1091_v53  ;;  %v1421_v62 = vadd.f32 %v1097_v56, %v1093_v54  ;;  %v1096_v63 = vmax.f32 %v425_v59, 0.0  ;;  %v1098_v0 = vmax.f32 %v778_v60, 0.0  ;;  %4974 = vmatpush3.bf16.msra.mxu1 %v5143_v51 }
  0xce   :  { %v429_v1 = vpop.f32.mrf.mxu0  ;;  %4725 = vmatmul.mubr.msk.bf16.gmra.mxu0 %vm288_vm0, %v5117_v52  ;;  %v782_v3 = vpop.f32.mrf.mxu1  ;;  %4757 = vmatmul.mubr.msk.bf16.gmra.mxu1 %vm288_vm0, %v5117_v52 }
  0xcf   :  { %v1384_v4 = vadd.f32 %v1096_v63, %v1092_v57  ;;  %v1458_v5 = vadd.f32 %v1098_v0, %v1094_v58  ;;  %v1099_v6 = vmax.f32 %v429_v1, 0.0  ;;  %v1101_v7 = vmax.f32 %v782_v3, 0.0  ;;  %677 = vmatprep.mubr.bf16.mxu0 %v6410_v2  ;;  %1030 = vmatprep.mubr.bf16.mxu1 %v6410_v2 }
  0xd0   :  { %v431_v8 = vpop.f32.mrf.mxu0  ;;  %v784_v9 = vpop.f32.mrf.mxu1 }
  0xd1   :  { %v1348_v10 = vadd.f32 %v1347_v61, %v1099_v6  ;;  %v1422_v11 = vadd.f32 %v1421_v62, %v1101_v7  ;;  %v1100_v12 = vmax.f32 %v431_v8, 0.0  ;;  %v1102_v13 = vmax.f32 %v784_v9, 0.0  ;;  %v5124_v7 = vld [vmem:[%s6401_s0 + $0xe0] sm:$0xff]  }
  0xd2   :  { %v433_v14 = vpop.f32.mrf.mxu0  ;;  %v786_v15 = vpop.f32.mrf.mxu1 }
  0xd3   :  { %v1385_v17 = vadd.f32 %v1384_v4, %v1100_v12  ;;  %v1459_v18 = vadd.f32 %v1458_v5, %v1102_v13  ;;  %v1103_v19 = vmax.f32 %v433_v14, 0.0  ;;  %v1105_v20 = vmax.f32 %v786_v15, 0.0 }
  0xd4   :  { %v435_v21 = vpop.f32.mrf.mxu0  ;;  %v788_v22 = vpop.f32.mrf.mxu1 }
  0xd5   :  { %v1349_v23 = vadd.f32 %v1348_v10, %v1103_v19  ;;  %v1423_v24 = vadd.f32 %v1422_v11, %v1105_v20  ;;  %v1104_v25 = vmax.f32 %v435_v21, 0.0  ;;  %v1106_v26 = vmax.f32 %v788_v22, 0.0 }
  0xd6   :  { %v439_v27 = vpop.f32.mrf.mxu0  ;;  %4726 = vmatmul.mubr.msk.bf16.gmra.mxu0 %vm288_vm0, %v5118_v16  ;;  %v792_v28 = vpop.f32.mrf.mxu1  ;;  %4758 = vmatmul.mubr.msk.bf16.gmra.mxu1 %vm288_vm0, %v5118_v16 }
  0xd7   :  { %v1386_v29 = vadd.f32 %v1385_v17, %v1104_v25  ;;  %v1460_v30 = vadd.f32 %v1459_v18, %v1106_v26  ;;  %v1107_v31 = vmax.f32 %v439_v27, 0.0  ;;  %v1109_v32 = vmax.f32 %v792_v28, 0.0  ;;  %687 = vmatprep.mubr.bf16.mxu0 %v6410_v2  ;;  %1040 = vmatprep.mubr.bf16.mxu1 %v6410_v2 }
  0xd8   :  { %v441_v33 = vpop.f32.mrf.mxu0  ;;  %v794_v34 = vpop.f32.mrf.mxu1 }
  0xd9   :  { %v1350_v35 = vadd.f32 %v1349_v23, %v1107_v31  ;;  %v1424_v36 = vadd.f32 %v1423_v24, %v1109_v32  ;;  %v1108_v37 = vmax.f32 %v441_v33, 0.0  ;;  %v1110_v38 = vmax.f32 %v794_v34, 0.0  ;;  %v5125_v32 = vld [vmem:[%s6401_s0 + $0xe8] sm:$0xff]  }
  0xda   :  { %v443_v39 = vpop.f32.mrf.mxu0  ;;  %v796_v40 = vpop.f32.mrf.mxu1 }
  0xdb   :  { %v1387_v42 = vadd.f32 %v1386_v29, %v1108_v37  ;;  %v1461_v43 = vadd.f32 %v1460_v30, %v1110_v38  ;;  %v1111_v44 = vmax.f32 %v443_v39, 0.0  ;;  %v1113_v45 = vmax.f32 %v796_v40, 0.0 }
  0xdc   :  { %v445_v48 = vpop.f32.mrf.mxu0  ;;  %v798_v49 = vpop.f32.mrf.mxu1 }
  0xdd   :  { %v1351_v52 = vadd.f32 %v1350_v35, %v1111_v44  ;;  %v1425_v53 = vadd.f32 %v1424_v36, %v1113_v45  ;;  %v1112_v54 = vmax.f32 %v445_v48, 0.0  ;;  %v1114_v55 = vmax.f32 %v798_v49, 0.0 }
  0xde   :  { %v449_v56 = vpop.f32.mrf.mxu0  ;;  %4727 = vmatmul.mubr.msk.bf16.gmra.mxu0 %vm288_vm0, %v5123_v41  ;;  %v802_v57 = vpop.f32.mrf.mxu1  ;;  %4759 = vmatmul.mubr.msk.bf16.gmra.mxu1 %vm288_vm0, %v5123_v41 }
  0xdf   :  { %v1388_v58 = vadd.f32 %v1387_v42, %v1112_v54  ;;  %v1462_v59 = vadd.f32 %v1461_v43, %v1114_v55  ;;  %v1115_v60 = vmax.f32 %v449_v56, 0.0  ;;  %v1117_v61 = vmax.f32 %v802_v57, 0.0  ;;  %697 = vmatprep.mubr.bf16.mxu0 %v6410_v2  ;;  %1050 = vmatprep.mubr.bf16.mxu1 %v6410_v2  ;;  %v5126_v57 = vld [vmem:[%s6401_s0 + $0xf0] sm:$0xff]  }
  0xe0   :  { %v451_v62 = vpop.f32.mrf.mxu0  ;;  %v804_v63 = vpop.f32.mrf.mxu1 }
  0xe1   :  { %v1352_v0 = vadd.f32 %v1351_v52, %v1115_v60  ;;  %v1426_v1 = vadd.f32 %v1425_v53, %v1117_v61  ;;  %v1116_v3 = vmax.f32 %v451_v62, 0.0  ;;  %v1118_v4 = vmax.f32 %v804_v63, 0.0 }
  0xe2   :  { %v453_v5 = vpop.f32.mrf.mxu0  ;;  %v806_v6 = vpop.f32.mrf.mxu1 }
  0xe3   :  { %v1389_v8 = vadd.f32 %v1388_v58, %v1116_v3  ;;  %v1463_v9 = vadd.f32 %v1462_v59, %v1118_v4  ;;  %v1119_v10 = vmax.f32 %v453_v5, 0.0  ;;  %v1121_v11 = vmax.f32 %v806_v6, 0.0 }
  0xe4   :  { %v455_v12 = vpop.f32.mrf.mxu0  ;;  %v808_v13 = vpop.f32.mrf.mxu1 }
  0xe5   :  { %v1353_v14 = vadd.f32 %v1352_v0, %v1119_v10  ;;  %v1427_v15 = vadd.f32 %v1426_v1, %v1121_v11  ;;  %v1120_v16 = vmax.f32 %v455_v12, 0.0  ;;  %v1122_v17 = vmax.f32 %v808_v13, 0.0 }
  0xe6   :  { %v459_v18 = vpop.f32.mrf.mxu0  ;;  %4728 = vmatmul.mubr.msk.bf16.gmra.mxu0 %vm288_vm0, %v5124_v7  ;;  %v812_v19 = vpop.f32.mrf.mxu1  ;;  %4760 = vmatmul.mubr.msk.bf16.gmra.mxu1 %vm288_vm0, %v5124_v7 }
  0xe7   :  { %v1390_v20 = vadd.f32 %v1389_v8, %v1120_v16  ;;  %v1464_v21 = vadd.f32 %v1463_v9, %v1122_v17  ;;  %v1123_v22 = vmax.f32 %v459_v18, 0.0  ;;  %v1125_v23 = vmax.f32 %v812_v19, 0.0  ;;  %707 = vmatprep.mubr.bf16.mxu0 %v6410_v2  ;;  %1060 = vmatprep.mubr.bf16.mxu1 %v6410_v2  ;;  %v5131_v19 = vld [vmem:[%s6401_s0 + $0xf8] sm:$0xff]   ;;  %s36_s0 = sshll.u32 %s5386_s30, 4  ;;  %s37_s0 = int_to_ptr.vmem [resolvable:$true] %s36_s0 }
  0xe8   :  { %v461_v24 = vpop.f32.mrf.mxu0  ;;  %v814_v25 = vpop.f32.mrf.mxu1  ;;  %s5322_s9 = scalar_lea.vmem %s37_s0, 12544  ;;  %p5327_p1 = scmp.lt.s32.totalorder %s37_s0, %s37_s0 }
  0xe9   :  { %v1354_v26 = vadd.f32 %v1353_v14, %v1123_v22  ;;  %v1428_v27 = vadd.f32 %v1427_v15, %v1125_v23  ;;  %v1124_v28 = vmax.f32 %v461_v24, 0.0  ;;  %v1126_v29 = vmax.f32 %v814_v25, 0.0  ;;  %v5144_v24 = vld [vmem:[%s6404_s3 + $0x50] sm:$0xff]   ;;  %p5323_p0 = scmp.ne.s32.totalorder %s37_s0, %s5322_s9  ;;  %p5328_p2 = scmp.lt.s32.totalorder %s5322_s9, %s5322_s9 }
  0xea   :  { %v463_v30 = vpop.f32.mrf.mxu0  ;;  %v816_v31 = vpop.f32.mrf.mxu1  ;;  %v5145_v25 = vld [vmem:[%s6404_s3 + $0xd0] sm:$0xff]   ;;  %4953 = vmatprep.subr.bf16.mxu0 %v5144_v24 }
  0xeb   :  { %v1391_v33 = vadd.f32 %v1390_v20, %v1124_v28  ;;  %v1465_v34 = vadd.f32 %v1464_v21, %v1126_v29  ;;  %v1127_v35 = vmax.f32 %v463_v30, 0.0  ;;  %v1129_v36 = vmax.f32 %v816_v31, 0.0  ;;  %v5147_v29 = vld [vmem:[%s6404_s3 + $0x90] sm:$0xff]   ;;  %4975 = vmatprep.subr.bf16.mxu1 %v5145_v25  ;;  %p5329_p3 = por %p5328_p2, %p5327_p1 }
  0xec   :  { %v465_v37 = vpop.f32.mrf.mxu0  ;;  %v818_v38 = vpop.f32.mrf.mxu1  ;;  %4976 = vmatpush3.bf16.msra.mxu1 %v5147_v29 }
  0xed   :  { %v1355_v39 = vadd.f32 %v1354_v26, %v1127_v35  ;;  %v1429_v40 = vadd.f32 %v1428_v27, %v1129_v36  ;;  %v1128_v41 = vmax.f32 %v465_v37, 0.0  ;;  %v1130_v42 = vmax.f32 %v818_v38, 0.0  ;;  %v5146_v26 = vld [vmem:[%s6404_s3 + $0x10] sm:$0xff]   ;;  %p5330_p4 = pnand %p5329_p3, %p5323_p0 }
  0xee   :  { %v469_v43 = vpop.f32.mrf.mxu0  ;;  %4729 = vmatmul.mubr.msk.bf16.gmra.mxu0 %vm288_vm0, %v5125_v32  ;;  %v822_v44 = vpop.f32.mrf.mxu1  ;;  %4761 = vmatmul.mubr.msk.bf16.gmra.mxu1 %vm288_vm0, %v5125_v32 }
  0xef   :  { %v1131_v45 = vmax.f32 %v469_v43, 0.0  ;;  %v1133_v46 = vmax.f32 %v822_v44, 0.0  ;;  %717 = vmatprep.mubr.bf16.mxu0 %v6410_v2  ;;  %1070 = vmatprep.mubr.bf16.mxu1 %v6410_v2  ;;  %v1392_v47 = vadd.f32 %v1391_v33, %v1128_v41  ;;  %v1466_v48 = vadd.f32 %v1465_v34, %v1130_v42 }
  0xf0   :  { %v471_v49 = vpop.f32.mrf.mxu0  ;;  %v824_v50 = vpop.f32.mrf.mxu1  ;;  %4954 = vmatpush3.bf16.msra.mxu0 %v5146_v26 }
  0xf1   :  { %v1356_v51 = vadd.f32 %v1355_v39, %v1131_v45  ;;  %v1430_v52 = vadd.f32 %v1429_v40, %v1133_v46  ;;  %v1132_v53 = vmax.f32 %v471_v49, 0.0  ;;  %v1134_v54 = vmax.f32 %v824_v50, 0.0 }
  0xf2   :  { %v473_v55 = vpop.f32.mrf.mxu0  ;;  %v826_v56 = vpop.f32.mrf.mxu1 }
  0xf3   :  { %v1393_v58 = vadd.f32 %v1392_v47, %v1132_v53  ;;  %v1467_v59 = vadd.f32 %v1466_v48, %v1134_v54  ;;  %v1135_v60 = vmax.f32 %v473_v55, 0.0  ;;  %v1137_v61 = vmax.f32 %v826_v56, 0.0 }
  0xf4   :  { %v475_v62 = vpop.f32.mrf.mxu0  ;;  %v828_v63 = vpop.f32.mrf.mxu1 }
  0xf5   :  { %v1357_v0 = vadd.f32 %v1356_v51, %v1135_v60  ;;  %v1431_v1 = vadd.f32 %v1430_v52, %v1137_v61  ;;  %v1136_v3 = vmax.f32 %v475_v62, 0.0  ;;  %v1138_v4 = vmax.f32 %v828_v63, 0.0 }
  0xf6   :  { %v479_v5 = vpop.f32.mrf.mxu0  ;;  %4730 = vmatmul.mubr.msk.bf16.gmra.mxu0 %vm288_vm0, %v5126_v57  ;;  %v832_v6 = vpop.f32.mrf.mxu1  ;;  %4762 = vmatmul.mubr.msk.bf16.gmra.mxu1 %vm288_vm0, %v5126_v57 }
  0xf7   :  { %v1139_v7 = vmax.f32 %v479_v5, 0.0  ;;  %v1141_v8 = vmax.f32 %v832_v6, 0.0  ;;  %727 = vmatprep.mubr.bf16.mxu0 %v6410_v2  ;;  %1080 = vmatprep.mubr.bf16.mxu1 %v6410_v2  ;;  %v1394_v9 = vadd.f32 %v1393_v58, %v1136_v3  ;;  %v1468_v10 = vadd.f32 %v1467_v59, %v1138_v4 }
  0xf8   :  { %v481_v11 = vpop.f32.mrf.mxu0  ;;  %v834_v12 = vpop.f32.mrf.mxu1 }
  0xf9   :  { %v1358_v13 = vadd.f32 %v1357_v0, %v1139_v7  ;;  %v1432_v14 = vadd.f32 %v1431_v1, %v1141_v8  ;;  %v1140_v15 = vmax.f32 %v481_v11, 0.0  ;;  %v1142_v16 = vmax.f32 %v834_v12, 0.0 }
  0xfa   :  { %v483_v17 = vpop.f32.mrf.mxu0  ;;  %v836_v18 = vpop.f32.mrf.mxu1 }
  0xfb   :  { %v1395_v20 = vadd.f32 %v1394_v9, %v1140_v15  ;;  %v1469_v21 = vadd.f32 %v1468_v10, %v1142_v16  ;;  %v1143_v22 = vmax.f32 %v483_v17, 0.0  ;;  %v1145_v23 = vmax.f32 %v836_v18, 0.0 }
  0xfc   :  { %v485_v27 = vpop.f32.mrf.mxu0  ;;  %v838_v28 = vpop.f32.mrf.mxu1 }
  0xfd   :  { %v1359_v30 = vadd.f32 %v1358_v13, %v1143_v22  ;;  %v1433_v31 = vadd.f32 %v1432_v14, %v1145_v23  ;;  %v1144_v32 = vmax.f32 %v485_v27, 0.0  ;;  %v1146_v33 = vmax.f32 %v838_v28, 0.0 }
  0xfe   :  { %v489_v34 = vpop.f32.mrf.mxu0  ;;  %4731 = vmatmul.mubr.msk.bf16.gmra.mxu0 %vm288_vm0, %v5131_v19  ;;  %v842_v35 = vpop.f32.mrf.mxu1  ;;  %4763 = vmatmul.mubr.msk.bf16.gmra.mxu1 %vm288_vm0, %v5131_v19 }
  0xff   :  { %v1147_v36 = vmax.f32 %v489_v34, 0.0  ;;  %v1149_v37 = vmax.f32 %v842_v35, 0.0  ;;  %v1396_v38 = vadd.f32 %v1395_v20, %v1144_v32  ;;  %v1470_v39 = vadd.f32 %v1469_v21, %v1146_v33 }
 0x100   :  { %v491_v40 = vpop.f32.mrf.mxu0  ;;  %v844_v41 = vpop.f32.mrf.mxu1 }
 0x101   :  { %v1360_v42 = vadd.f32 %v1359_v30, %v1147_v36  ;;  %v1434_v43 = vadd.f32 %v1433_v31, %v1149_v37  ;;  %v1148_v44 = vmax.f32 %v491_v40, 0.0  ;;  %v1150_v45 = vmax.f32 %v844_v41, 0.0 }
 0x102   :  { %v493_v46 = vpop.f32.mrf.mxu0  ;;  %v846_v47 = vpop.f32.mrf.mxu1 }
 0x103   :  { %v1397_v48 = vadd.f32 %v1396_v38, %v1148_v44  ;;  %v1471_v49 = vadd.f32 %v1470_v39, %v1150_v45  ;;  %v1151_v50 = vmax.f32 %v493_v46, 0.0  ;;  %v1153_v51 = vmax.f32 %v846_v47, 0.0 }
 0x104   :  { %v495_v52 = vpop.f32.mrf.mxu0  ;;  %v848_v53 = vpop.f32.mrf.mxu1 }
 0x105   :  { %v1361_v54 = vadd.f32 %v1360_v42, %v1151_v50  ;;  %v1435_v55 = vadd.f32 %v1434_v43, %v1153_v51  ;;  %v1152_v56 = vmax.f32 %v495_v52, 0.0  ;;  %v1154_v57 = vmax.f32 %v848_v53, 0.0 }
 0x106   :  { %v499_v58 = vpop.f32.mrf.mxu0  ;;  %v852_v59 = vpop.f32.mrf.mxu1 }
 0x107   :  { %v1155_v60 = vmax.f32 %v499_v58, 0.0  ;;  %v1157_v61 = vmax.f32 %v852_v59, 0.0  ;;  %v1398_v62 = vadd.f32 %v1397_v48, %v1152_v56  ;;  %v1472_v63 = vadd.f32 %v1471_v49, %v1154_v57 }
 0x108   :  { %v501_v0 = vpop.f32.mrf.mxu0  ;;  %v854_v1 = vpop.f32.mrf.mxu1 }
 0x109   :  { %v1362_v3 = vadd.f32 %v1361_v54, %v1155_v60  ;;  %v1436_v4 = vadd.f32 %v1435_v55, %v1157_v61  ;;  %v1156_v5 = vmax.f32 %v501_v0, 0.0  ;;  %v1158_v6 = vmax.f32 %v854_v1, 0.0  ;;  %v5148_v61 = vld [vmem:[%s6404_s3 + $0x48] sm:$0xff]  }
 0x10a   :  { %v503_v7 = vpop.f32.mrf.mxu0  ;;  %v856_v8 = vpop.f32.mrf.mxu1  ;;  %4955 = vmatprep.subr.bf16.mxu0 %v5148_v61 }
 0x10b   :  { %v1399_v9 = vadd.f32 %v1398_v62, %v1156_v5  ;;  %v1473_v10 = vadd.f32 %v1472_v63, %v1158_v6  ;;  %v1159_v11 = vmax.f32 %v503_v7, 0.0  ;;  %v1161_v12 = vmax.f32 %v856_v8, 0.0  ;;  %v5149_v62 = vld [vmem:[%s6404_s3 + $0xc8] sm:$0xff]  }
 0x10c   :  { %v505_v13 = vpop.f32.mrf.mxu0  ;;  %v858_v14 = vpop.f32.mrf.mxu1  ;;  %v5150_v63 = vld [vmem:[%s6404_s3 + $0x8] sm:$0xff]   ;;  %4977 = vmatprep.subr.bf16.mxu1 %v5149_v62 }
 0x10d   :  { %v1363_v15 = vadd.f32 %v1362_v3, %v1159_v11  ;;  %v1437_v16 = vadd.f32 %v1436_v4, %v1161_v12  ;;  %v1160_v17 = vmax.f32 %v505_v13, 0.0  ;;  %v1162_v18 = vmax.f32 %v858_v14, 0.0  ;;  %v5151_v3 = vld [vmem:[%s6404_s3 + $0x88] sm:$0xff]   ;;  %4956 = vmatpush3.bf16.msra.mxu0 %v5150_v63 }
 0x10e   :  { %v509_v19 = vpop.f32.mrf.mxu0  ;;  %v862_v20 = vpop.f32.mrf.mxu1  ;;  %4978 = vmatpush3.bf16.msra.mxu1 %v5151_v3 }
 0x10f   :  { %v1400_v21 = vadd.f32 %v1399_v9, %v1160_v17  ;;  %v1474_v22 = vadd.f32 %v1473_v10, %v1162_v18  ;;  %v1163_v23 = vmax.f32 %v509_v19, 0.0  ;;  %v1165_v24 = vmax.f32 %v862_v20, 0.0 }
 0x110   :  { %v511_v25 = vpop.f32.mrf.mxu0  ;;  %v864_v26 = vpop.f32.mrf.mxu1 }
 0x111   :  { %v1364_v27 = vadd.f32 %v1363_v15, %v1163_v23  ;;  %v1438_v28 = vadd.f32 %v1437_v16, %v1165_v24  ;;  %v1164_v29 = vmax.f32 %v511_v25, 0.0  ;;  %v1166_v30 = vmax.f32 %v864_v26, 0.0 }
 0x112   :  { %v513_v31 = vpop.f32.mrf.mxu0  ;;  %v866_v32 = vpop.f32.mrf.mxu1 }
 0x113   :  { %v1401_v33 = vadd.f32 %v1400_v21, %v1164_v29  ;;  %v1475_v34 = vadd.f32 %v1474_v22, %v1166_v30  ;;  %v1167_v35 = vmax.f32 %v513_v31, 0.0  ;;  %v1169_v36 = vmax.f32 %v866_v32, 0.0 }
 0x114   :  { %v515_v37 = vpop.f32.mrf.mxu0  ;;  %v868_v38 = vpop.f32.mrf.mxu1 }
 0x115   :  { %v1365_v39 = vadd.f32 %v1364_v27, %v1167_v35  ;;  %v1439_v40 = vadd.f32 %v1438_v28, %v1169_v36  ;;  %v1168_v41 = vmax.f32 %v515_v37, 0.0  ;;  %v1170_v42 = vmax.f32 %v868_v38, 0.0 }
 0x116   :  { %v519_v43 = vpop.f32.mrf.mxu0  ;;  %v872_v44 = vpop.f32.mrf.mxu1 }
 0x117   :  { %v1402_v45 = vadd.f32 %v1401_v33, %v1168_v41  ;;  %v1476_v46 = vadd.f32 %v1475_v34, %v1170_v42  ;;  %v1171_v47 = vmax.f32 %v519_v43, 0.0  ;;  %v1173_v48 = vmax.f32 %v872_v44, 0.0 }
 0x118   :  { %v521_v49 = vpop.f32.mrf.mxu0  ;;  %v874_v50 = vpop.f32.mrf.mxu1 }
 0x119   :  { %v1366_v51 = vadd.f32 %v1365_v39, %v1171_v47  ;;  %v1440_v52 = vadd.f32 %v1439_v40, %v1173_v48  ;;  %v1172_v53 = vmax.f32 %v521_v49, 0.0  ;;  %v1174_v54 = vmax.f32 %v874_v50, 0.0 }
 0x11a   :  { %v523_v55 = vpop.f32.mrf.mxu0  ;;  %v876_v56 = vpop.f32.mrf.mxu1 }
 0x11b   :  { %v1403_v57 = vadd.f32 %v1402_v45, %v1172_v53  ;;  %v1477_v58 = vadd.f32 %v1476_v46, %v1174_v54  ;;  %v1175_v59 = vmax.f32 %v523_v55, 0.0  ;;  %v1177_v60 = vmax.f32 %v876_v56, 0.0 }
 0x11c   :  { %v525_v0 = vpop.f32.mrf.mxu0  ;;  %v878_v1 = vpop.f32.mrf.mxu1 }
 0x11d   :  { %v1367_v4 = vadd.f32 %v1366_v51, %v1175_v59  ;;  %v1441_v5 = vadd.f32 %v1440_v52, %v1177_v60  ;;  %v1176_v6 = vmax.f32 %v525_v0, 0.0  ;;  %v1178_v7 = vmax.f32 %v878_v1, 0.0 }
 0x11e   :  { %v529_v8 = vpop.f32.mrf.mxu0  ;;  %v882_v9 = vpop.f32.mrf.mxu1 }
 0x11f   :  { %v1404_v10 = vadd.f32 %v1403_v57, %v1176_v6  ;;  %v1478_v11 = vadd.f32 %v1477_v58, %v1178_v7  ;;  %v1179_v12 = vmax.f32 %v529_v8, 0.0  ;;  %v1181_v13 = vmax.f32 %v882_v9, 0.0 }
 0x120   :  { %v531_v14 = vpop.f32.mrf.mxu0  ;;  %v884_v15 = vpop.f32.mrf.mxu1 }
 0x121   :  { %v1368_v16 = vadd.f32 %v1367_v4, %v1179_v12  ;;  %v1442_v17 = vadd.f32 %v1441_v5, %v1181_v13  ;;  %v1180_v18 = vmax.f32 %v531_v14, 0.0  ;;  %v1182_v19 = vmax.f32 %v884_v15, 0.0 }
 0x122   :  { %v533_v20 = vpop.f32.mrf.mxu0  ;;  %v886_v21 = vpop.f32.mrf.mxu1 }
 0x123   :  { %v1405_v22 = vadd.f32 %v1404_v10, %v1180_v18  ;;  %v1479_v23 = vadd.f32 %v1478_v11, %v1182_v19  ;;  %v1183_v24 = vmax.f32 %v533_v20, 0.0  ;;  %v1185_v25 = vmax.f32 %v886_v21, 0.0 }
 0x124   :  { %v535_v26 = vpop.f32.mrf.mxu0  ;;  %v888_v27 = vpop.f32.mrf.mxu1 }
 0x125   :  { %v1369_v28 = vadd.f32 %v1368_v16, %v1183_v24  ;;  %v1443_v29 = vadd.f32 %v1442_v17, %v1185_v25  ;;  %v1184_v30 = vmax.f32 %v535_v26, 0.0  ;;  %v1186_v31 = vmax.f32 %v888_v27, 0.0 }
 0x126   :  { %v539_v32 = vpop.f32.mrf.mxu0  ;;  %v892_v33 = vpop.f32.mrf.mxu1 }
 0x127   :  { %v1406_v34 = vadd.f32 %v1405_v22, %v1184_v30  ;;  %v1480_v35 = vadd.f32 %v1479_v23, %v1186_v31  ;;  %v1187_v36 = vmax.f32 %v539_v32, 0.0  ;;  %v1189_v37 = vmax.f32 %v892_v33, 0.0 }
 0x128   :  { %v541_v38 = vpop.f32.mrf.mxu0  ;;  %v894_v39 = vpop.f32.mrf.mxu1 }
 0x129   :  { %v1370_v40 = vadd.f32 %v1369_v28, %v1187_v36  ;;  %v1444_v41 = vadd.f32 %v1443_v29, %v1189_v37  ;;  %v1188_v42 = vmax.f32 %v541_v38, 0.0  ;;  %v1190_v43 = vmax.f32 %v894_v39, 0.0  ;;  %v5153_v36 = vld [vmem:[%s6404_s3 + $0xc0] sm:$0xff]  }
 0x12a   :  { %v543_v44 = vpop.f32.mrf.mxu0  ;;  %v896_v45 = vpop.f32.mrf.mxu1  ;;  %v5154_v37 = vld [vmem:[%s6404_s3] sm:$0xff]   ;;  %4979 = vmatprep.subr.bf16.mxu1 %v5153_v36 }
 0x12b   :  { %v1407_v46 = vadd.f32 %v1406_v34, %v1188_v42  ;;  %v1481_v47 = vadd.f32 %v1480_v35, %v1190_v43  ;;  %v1191_v48 = vmax.f32 %v543_v44, 0.0  ;;  %v1193_v49 = vmax.f32 %v896_v45, 0.0  ;;  %v5152_v35 = vld [vmem:[%s6404_s3 + $0x40] sm:$0xff]  }
 0x12c   :  { %v545_v50 = vpop.f32.mrf.mxu0  ;;  %v898_v51 = vpop.f32.mrf.mxu1  ;;  %4957 = vmatprep.subr.bf16.mxu0 %v5152_v35  ;;  %v5159_v35 = vld [vmem:[%s6405_s4 + $0x4] ss:$12 sps:$4 sm:$0xff]  }
 0x12d   :  { %v1371_v52 = vadd.f32 %v1370_v40, %v1191_v48  ;;  %v1445_v53 = vadd.f32 %v1444_v41, %v1193_v49  ;;  %v1192_v54 = vmax.f32 %v545_v50, 0.0  ;;  %v1194_v55 = vmax.f32 %v898_v51, 0.0  ;;  %v5155_v40 = vld [vmem:[%s6404_s3 + $0x80] sm:$0xff]   ;;  %4958 = vmatpush3.bf16.msra.mxu0 %v5154_v37 }
 0x12e   :  { %v549_v56 = vpop.f32.mrf.mxu0  ;;  %v902_v57 = vpop.f32.mrf.mxu1  ;;  %4980 = vmatpush3.bf16.msra.mxu1 %v5155_v40 }
 0x12f   :  { %v1408_v58 = vadd.f32 %v1407_v46, %v1192_v54  ;;  %v1482_v59 = vadd.f32 %v1481_v47, %v1194_v55  ;;  %v1195_v60 = vmax.f32 %v549_v56, 0.0  ;;  %v1197_v61 = vmax.f32 %v902_v57, 0.0 }
 0x130   :  { %v551_v62 = vpop.f32.mrf.mxu0  ;;  %v904_v63 = vpop.f32.mrf.mxu1 }
 0x131   :  { %v1372_v0 = vadd.f32 %v1371_v52, %v1195_v60  ;;  %v1446_v1 = vadd.f32 %v1445_v53, %v1197_v61  ;;  %v1196_v3 = vmax.f32 %v551_v62, 0.0  ;;  %v1198_v4 = vmax.f32 %v904_v63, 0.0 }
 0x132   :  { %v553_v5 = vpop.f32.mrf.mxu0  ;;  %v906_v6 = vpop.f32.mrf.mxu1 }
 0x133   :  { %v1409_v7 = vadd.f32 %v1408_v58, %v1196_v3  ;;  %v1483_v8 = vadd.f32 %v1482_v59, %v1198_v4  ;;  %v1199_v9 = vmax.f32 %v553_v5, 0.0  ;;  %v1201_v10 = vmax.f32 %v906_v6, 0.0 }
 0x134   :  { %v555_v11 = vpop.f32.mrf.mxu0  ;;  %v908_v12 = vpop.f32.mrf.mxu1 }
 0x135   :  { %v1373_v13 = vadd.f32 %v1372_v0, %v1199_v9  ;;  %v1447_v14 = vadd.f32 %v1446_v1, %v1201_v10  ;;  %v1200_v15 = vmax.f32 %v555_v11, 0.0  ;;  %v1202_v16 = vmax.f32 %v908_v12, 0.0 }
 0x136   :  { %v559_v17 = vpop.f32.mrf.mxu0  ;;  %v912_v18 = vpop.f32.mrf.mxu1 }
 0x137   :  { %v1410_v19 = vadd.f32 %v1409_v7, %v1200_v15  ;;  %v1484_v20 = vadd.f32 %v1483_v8, %v1202_v16  ;;  %v1203_v21 = vmax.f32 %v559_v17, 0.0  ;;  %v1205_v22 = vmax.f32 %v912_v18, 0.0 }
 0x138   :  { %v561_v23 = vpop.f32.mrf.mxu0  ;;  %v914_v24 = vpop.f32.mrf.mxu1 }
 0x139   :  { %v1374_v25 = vadd.f32 %v1373_v13, %v1203_v21  ;;  %v1448_v26 = vadd.f32 %v1447_v14, %v1205_v22  ;;  %v1204_v27 = vmax.f32 %v561_v23, 0.0  ;;  %v1206_v28 = vmax.f32 %v914_v24, 0.0 }
 0x13a   :  { %v563_v29 = vpop.f32.mrf.mxu0  ;;  %v916_v30 = vpop.f32.mrf.mxu1 }
 0x13b   :  { %v1411_v31 = vadd.f32 %v1410_v19, %v1204_v27  ;;  %v1485_v32 = vadd.f32 %v1484_v20, %v1206_v28  ;;  %v1207_v33 = vmax.f32 %v563_v29, 0.0  ;;  %v1209_v34 = vmax.f32 %v916_v30, 0.0  ;;  %v5156_v28 = vld [vmem:[%s6405_s4 + $0x4c] ss:$12 sps:$4 sm:$0xff]  }
 0x13c   :  { %v565_v38 = vpop.f32.mrf.mxu0  ;;  %v918_v39 = vpop.f32.mrf.mxu1  ;;  %2146 = vrot.lane.b32.xlu0 %v5156_v28, %s5381_s27 }
 0x13d   :  { %v1375_v41 = vadd.f32 %v1374_v25, %v1207_v33  ;;  %v1449_v42 = vadd.f32 %v1448_v26, %v1209_v34  ;;  %v1208_v43 = vmax.f32 %v565_v38, 0.0  ;;  %v1210_v44 = vmax.f32 %v918_v39, 0.0 }
 0x13e   :  { %v569_v45 = vpop.f32.mrf.mxu0  ;;  %v922_v46 = vpop.f32.mrf.mxu1 }
 0x13f   :  { %v1412_v47 = vadd.f32 %v1411_v31, %v1208_v43  ;;  %v1486_v48 = vadd.f32 %v1485_v32, %v1210_v44  ;;  %v1211_v49 = vmax.f32 %v569_v45, 0.0  ;;  %v1213_v50 = vmax.f32 %v922_v46, 0.0  ;;  %v5158_v31 = vld [vmem:[%s6405_s4 + $0x1c] ss:$12 sps:$4 sm:$0xff]   ;;  %v5157_v32 = vld [vmem:[%s6405_s4 + $0x34] ss:$12 sps:$4 sm:$0xff]  }
 0x140   :  { %v571_v51 = vpop.f32.mrf.mxu0  ;;  %v924_v52 = vpop.f32.mrf.mxu1  ;;  %2142 = vrot.lane.b32.xlu1 %v5158_v31, %s5381_s27  ;;  %2144 = vrot.lane.b32.xlu0 %v5157_v32, %s5381_s27 }
 0x141   :  { %v1376_v53 = vadd.f32 %v1375_v41, %v1211_v49  ;;  %v1450_v54 = vadd.f32 %v1449_v42, %v1213_v50  ;;  %v1212_v55 = vmax.f32 %v571_v51, 0.0  ;;  %v1214_v56 = vmax.f32 %v924_v52, 0.0 }
 0x142   :  { %v573_v57 = vpop.f32.mrf.mxu0  ;;  %v926_v58 = vpop.f32.mrf.mxu1 }
 0x143   :  { %v1413_v59 = vadd.f32 %v1412_v47, %v1212_v55  ;;  %v1487_v60 = vadd.f32 %v1486_v48, %v1214_v56  ;;  %v1215_v61 = vmax.f32 %v573_v57, 0.0  ;;  %v1217_v62 = vmax.f32 %v926_v58, 0.0 }
 0x144   :  { %v575_v63 = vpop.f32.mrf.mxu0  ;;  %v928_v0 = vpop.f32.mrf.mxu1  ;;  %2140 = vrot.lane.b32.xlu1 %v5159_v35, %s5381_s27 }
 0x145   :  { %v5767_v1 = vadd.f32 %v1376_v53, %v1215_v61  ;;  %v5769_v3 = vadd.f32 %v1450_v54, %v1217_v62  ;;  %v1216_v4 = vmax.f32 %v575_v63, 0.0  ;;  %v1218_v5 = vmax.f32 %v928_v0, 0.0 }
 0x146   :  { %v5771_v6 = vpop.f32.mrf.mxu0  ;;  %v5773_v7 = vpop.f32.mrf.mxu1 }
 0x147   :  { %6420 = vst [vmem:[#allocation15_spill] sm:$0xff] %v5767_v1  ;;  %6421 = vst [vmem:[#allocation16_spill] sm:$0xff] %v5769_v3  ;;  %v5775_v8 = vadd.f32 %v1413_v59, %v1216_v4  ;;  %v5777_v9 = vadd.f32 %v1487_v60, %v1218_v5 }
 0x148   :  { %v5779_v10 = vpop.f32.mrf.mxu0  ;;  %v5781_v11 = vpop.f32.mrf.mxu1 }
 0x149   :  { %6422 = vst [vmem:[#allocation17_spill] sm:$0xff] %v5775_v8  ;;  %6423 = vst [vmem:[#allocation18_spill] sm:$0xff] %v5777_v9 }
 0x14a   :  { %v5783_v12 = vpop.f32.mrf.mxu0  ;;  %v5785_v13 = vpop.f32.mrf.mxu1 }
 0x14c   :  { %v5787_v14 = vpop.f32.mrf.mxu0  ;;  %v5789_v15 = vpop.f32.mrf.mxu1 }
 0x14e   :  { %v5791_v16 = vpop.f32.mrf.mxu0  ;;  %v5793_v17 = vpop.f32.mrf.mxu1 }
 0x150   :  { %v5795_v18 = vpop.f32.mrf.mxu0  ;;  %v5797_v19 = vpop.f32.mrf.mxu1 }
 0x152   :  { %v5799_v20 = vpop.f32.mrf.mxu0  ;;  %v5801_v21 = vpop.f32.mrf.mxu1 }
 0x154   :  { %v5803_v22 = vpop.f32.mrf.mxu0  ;;  %v5805_v23 = vpop.f32.mrf.mxu1 }
 0x156   :  { %v5807_v24 = vpop.f32.mrf.mxu0  ;;  %v5809_v25 = vpop.f32.mrf.mxu1 }
 0x158   :  { %v5811_v26 = vpop.f32.mrf.mxu0  ;;  %v5813_v27 = vpop.f32.mrf.mxu1 }
 0x15a   :  { %v5818_v29 = vpop.f32.mrf.mxu0  ;;  %v5820_v30 = vpop.f32.mrf.mxu1 }
 0x15c   :  { %v5829_v33 = vpop.f32.mrf.mxu0  ;;  %v5831_v34 = vpop.f32.mrf.mxu1 }
 0x15e   :  { %v5837_v36 = vpop.f32.mrf.mxu0  ;;  %v5839_v37 = vpop.f32.mrf.mxu1 }
 0x160   :  { %v5842_v38 = vpop.f32.mrf.mxu0  ;;  %v5844_v39 = vpop.f32.mrf.mxu1 }
 0x162   :  { %v5847_v40 = vpop.f32.mrf.mxu0  ;;  %v5849_v41 = vpop.f32.mrf.mxu1 }
 0x164   :  { %v5851_v42 = vpop.f32.mrf.mxu0  ;;  %v5853_v43 = vpop.f32.mrf.mxu1 }
 0x166   :  { %v5855_v44 = vpop.f32.mrf.mxu0  ;;  %v5857_v45 = vpop.f32.mrf.mxu1 }
 0x168   :  { %v5859_v46 = vpop.f32.mrf.mxu0  ;;  %v5861_v47 = vpop.f32.mrf.mxu1 }
 0x16a   :  { %v5863_v48 = vpop.f32.mrf.mxu0  ;;  %v5865_v49 = vpop.f32.mrf.mxu1 }
 0x16c   :  { %v5867_v50 = vpop.f32.mrf.mxu0  ;;  %v5869_v51 = vpop.f32.mrf.mxu1 }
 0x16e   :  { %v5871_v52 = vpop.f32.mrf.mxu0  ;;  %v5873_v53 = vpop.f32.mrf.mxu1 }
 0x170   :  { %v5875_v54 = vpop.f32.mrf.mxu0  ;;  %v5877_v55 = vpop.f32.mrf.mxu1 }
 0x172   :  { %v5879_v56 = vpop.f32.mrf.mxu0  ;;  %v5881_v57 = vpop.f32.mrf.mxu1 }
 0x174   :  { %v5883_v58 = vpop.f32.mrf.mxu0  ;;  %v5885_v59 = vpop.f32.mrf.mxu1 }
 0x176   :  { %v5887_v60 = vpop.f32.mrf.mxu0  ;;  %v5889_v61 = vpop.f32.mrf.mxu1 }
 0x177   :  { %6424 = vst [vmem:[#allocation19_spill] sm:$0xff] %v5889_v61 }
 0x178   :  { %v5891_v62 = vpop.f32.mrf.mxu0  ;;  %v5893_v63 = vpop.f32.mrf.mxu1 }
 0x179   :  { %6425 = vst [vmem:[#allocation20_spill] sm:$0xff] %v5891_v62  ;;  %6426 = vst [vmem:[#allocation21_spill] sm:$0xff] %v5893_v63 }
 0x17a   :  { %v5895_v0 = vpop.f32.mrf.mxu0  ;;  %v5897_v4 = vpop.f32.mrf.mxu1 }
 0x17b   :  { %6427 = vst [vmem:[#allocation22_spill] sm:$0xff] %v5895_v0  ;;  %6428 = vst [vmem:[#allocation23_spill] sm:$0xff] %v5897_v4 }
 0x17c   :  { %v5899_v5 = vpop.f32.mrf.mxu0  ;;  %v5901_v28 = vpop.f32.mrf.mxu1 }
 0x17d   :  { %6429 = vst [vmem:[#allocation24_spill] sm:$0xff] %v5899_v5  ;;  %6430 = vst [vmem:[#allocation25_spill] sm:$0xff] %v5901_v28  ;;  %v1231_v28 = vmax.f32 %v5799_v20, 0.0 }
 0x17e   :  { %v5903_v31 = vpop.f32.mrf.mxu0  ;;  %v5905_v32 = vpop.f32.mrf.mxu1 }
 0x17f   :  { %6431 = vst [vmem:[#allocation26_spill] sm:$0xff] %v5903_v31  ;;  %6432 = vst [vmem:[#allocation27_spill] sm:$0xff] %v5905_v32  ;;  %v1223_v31 = vmax.f32 %v5783_v12, 0.0  ;;  %v1225_v32 = vmax.f32 %v5785_v13, 0.0  ;;  %v1227_v12 = vmax.f32 %v5791_v16, 0.0  ;;  %v1229_v13 = vmax.f32 %v5793_v17, 0.0 }
 0x180   :  { %v5907_v35 = vpop.f32.mrf.mxu0  ;;  %v5909_v2 = vpop.f32.mrf.mxu1  ;;  %v1233_v16 = vmax.f32 %v5801_v21, 0.0  ;;  %v1236_v21 = vmax.f32 %v5811_v26, 0.0 }
 0x181   :  { %6433 = vst [vmem:[#allocation28_spill] sm:$0xff] %v5907_v35  ;;  %6434 = vst [vmem:[#allocation29_spill] sm:$0xff] %v5909_v2  ;;  %v1219_v35 = vmax.f32 %v5771_v6, 0.0  ;;  %v1221_v2 = vmax.f32 %v5773_v7, 0.0  ;;  %v1220_v6 = vmax.f32 %v5779_v10, 0.0  ;;  %v1222_v7 = vmax.f32 %v5781_v11, 0.0 }
 0x182   :  { %v5911_v61 = vpop.f32.mrf.mxu0  ;;  %v5913_v62 = vpop.f32.mrf.mxu1  ;;  %v1232_v10 = vmax.f32 %v5803_v22, 0.0  ;;  %v1234_v11 = vmax.f32 %v5805_v23, 0.0 }
 0x183   :  { %6435 = vst [vmem:[#allocation30_spill] sm:$0xff] %v5911_v61  ;;  %6436 = vst [vmem:[#allocation31_spill] sm:$0xff] %v5913_v62  ;;  %v1224_v61 = vmax.f32 %v5787_v14, 0.0  ;;  %v1226_v62 = vmax.f32 %v5789_v15, 0.0  ;;  %v1228_v14 = vmax.f32 %v5795_v18, 0.0  ;;  %v1230_v15 = vmax.f32 %v5797_v19, 0.0 }
 0x184   :  { %v5915_v63 = vpop.f32.mrf.mxu0  ;;  %v5917_v0 = vpop.f32.mrf.mxu1  ;;  %v1569_v5 = vadd.f32 %v1225_v32, %v1221_v2  ;;  %v1237_v2 = vmax.f32 %v5809_v25, 0.0  ;;  %v1240_v25 = vmax.f32 %v5829_v33, 0.0 }
 0x185   :  { %6437 = vst [vmem:[#allocation32_spill] sm:$0xff] %v5915_v63  ;;  %v1532_v9 = vadd.f32 %v1224_v61, %v1220_v6  ;;  %v1606_v17 = vadd.f32 %v1226_v62, %v1222_v7  ;;  %v1238_v61 = vmax.f32 %v5813_v27, 0.0  ;;  %v1243_v6 = vmax.f32 %v5837_v36, 0.0 }
 0x186   :  { %v5927_v4 = vpop.f32.mrf.mxu0  ;;  %v5929_v63 = vpop.f32.mrf.mxu1  ;;  %v1246_v7 = vmax.f32 %v5844_v39, 0.0 }
 0x187   :  { %6438 = vst [vmem:[#allocation33_spill] sm:$0xff] %v5929_v63  ;;  %v1495_v63 = vadd.f32 %v1223_v31, %v1219_v35  ;;  %v1533_v31 = vadd.f32 %v1532_v9, %v1228_v14  ;;  %v1607_v20 = vadd.f32 %v1606_v17, %v1230_v15  ;;  %v1239_v35 = vmax.f32 %v5818_v29, 0.0 }
 0x188   :  { %v5939_v3 = vpop.f32.mrf.mxu0  ;;  %v5941_v1 = vpop.f32.mrf.mxu1  ;;  %v1242_v9 = vmax.f32 %v5831_v34, 0.0 }
 0x189   :  { %6439 = vst [vmem:[#allocation34_spill] sm:$0xff] %v5939_v3  ;;  %6440 = vst [vmem:[#allocation35_spill] sm:$0xff] %v5941_v1  ;;  %v1496_v19 = vadd.f32 %v1495_v63, %v1227_v12  ;;  %v1570_v3 = vadd.f32 %v1569_v5, %v1229_v13  ;;  %v1235_v1 = vmax.f32 %v5807_v24, 0.0  ;;  %v1241_v63 = vmax.f32 %v5820_v30, 0.0 }
 0x18a   :  { %v5947_v8 = vpop.f32.mrf.mxu0  ;;  %v5949_v18 = vpop.f32.mrf.mxu1  ;;  %v1534_v5 = vadd.f32 %v1533_v31, %v1232_v10  ;;  %v1608_v24 = vadd.f32 %v1607_v20, %v1234_v11  ;;  %v1244_v30 = vmax.f32 %v5842_v38, 0.0  ;;  %v1250_v10 = vmax.f32 %v5853_v43, 0.0 }
 0x18b   :  { %v1497_v23 = vadd.f32 %v1496_v19, %v1231_v28  ;;  %v1571_v32 = vadd.f32 %v1570_v3, %v1233_v16  ;;  %v1245_v3 = vmax.f32 %v5839_v37, 0.0  ;;  %v1247_v16 = vmax.f32 %v5847_v40, 0.0 }
 0x18c   :  { %v5955_v62 = vpop.f32.mrf.mxu0  ;;  %v5957_v22 = vpop.f32.mrf.mxu1  ;;  %v1535_v28 = vadd.f32 %v1534_v5, %v1236_v21  ;;  %v1609_v29 = vadd.f32 %v1608_v24, %v1238_v61  ;;  %v1248_v37 = vmax.f32 %v5851_v42, 0.0  ;;  %v1253_v31 = vmax.f32 %v5857_v45, 0.0 }
 0x18d   :  { %v1498_v27 = vadd.f32 %v1497_v23, %v1235_v1  ;;  %v1572_v13 = vadd.f32 %v1571_v32, %v1237_v2  ;;  %v1249_v1 = vmax.f32 %v5849_v41, 0.0  ;;  %v1251_v2 = vmax.f32 %v5855_v44, 0.0 }
 0x18e   :  { %v5963_v12 = vpop.f32.mrf.mxu0  ;;  %v5965_v26 = vpop.f32.mrf.mxu1  ;;  %v1536_v17 = vadd.f32 %v1535_v28, %v1240_v25  ;;  %v1610_v36 = vadd.f32 %v1609_v29, %v1242_v9  ;;  %v1252_v41 = vmax.f32 %v5859_v46, 0.0  ;;  %v1254_v21 = vmax.f32 %v5861_v47, 0.0 }
 0x18f   :  { %v1499_v34 = vadd.f32 %v1498_v27, %v1239_v35  ;;  %v1573_v15 = vadd.f32 %v1572_v13, %v1241_v63  ;;  %v1255_v32 = vmax.f32 %v5863_v48, 0.0  ;;  %v1257_v35 = vmax.f32 %v5865_v49, 0.0 }
 0x190   :  { %v5971_v14 = vpop.f32.mrf.mxu0  ;;  %v5973_v33 = vpop.f32.mrf.mxu1  ;;  %v1537_v20 = vadd.f32 %v1536_v17, %v1244_v30  ;;  %v1611_v40 = vadd.f32 %v1610_v36, %v1246_v7  ;;  %v1256_v45 = vmax.f32 %v5867_v50, 0.0  ;;  %v1258_v5 = vmax.f32 %v5869_v51, 0.0  ;;  %v6441_v17 = vld [vmem:[#allocation19_spill] sm:$0xff] }
 0x191   :  { %v1500_v39 = vadd.f32 %v1499_v34, %v1243_v6  ;;  %v1574_v19 = vadd.f32 %v1573_v15, %v1245_v3  ;;  %v1259_v9 = vmax.f32 %v5871_v52, 0.0  ;;  %v1261_v27 = vmax.f32 %v5873_v53, 0.0 }
 0x192   :  { %v5979_v11 = vpop.f32.mrf.mxu0  ;;  %v5981_v38 = vpop.f32.mrf.mxu1  ;;  %v1538_v63 = vadd.f32 %v1537_v20, %v1248_v37  ;;  %v1612_v44 = vadd.f32 %v1611_v40, %v1250_v10  ;;  %v1260_v49 = vmax.f32 %v5875_v54, 0.0  ;;  %v1262_v6 = vmax.f32 %v5877_v55, 0.0  ;;  %v6442_v10 = vld [vmem:[#allocation20_spill] sm:$0xff]  ;;  %v6444_v20 = vld [vmem:[#allocation22_spill] sm:$0xff] }
 0x193   :  { %v1501_v43 = vadd.f32 %v1500_v39, %v1247_v16  ;;  %v1575_v23 = vadd.f32 %v1574_v19, %v1249_v1  ;;  %v1263_v29 = vmax.f32 %v5879_v56, 0.0  ;;  %v1265_v30 = vmax.f32 %v5881_v57, 0.0  ;;  %v6443_v39 = vld [vmem:[#allocation21_spill] sm:$0xff] }
 0x194   :  { %v5987_v61 = vpop.f32.mrf.mxu0  ;;  %v5989_v42 = vpop.f32.mrf.mxu1  ;;  %v1539_v13 = vadd.f32 %v1538_v63, %v1252_v41  ;;  %v1613_v48 = vadd.f32 %v1612_v44, %v1254_v21  ;;  %v1264_v53 = vmax.f32 %v5883_v58, 0.0  ;;  %v1266_v34 = vmax.f32 %v5885_v59, 0.0  ;;  %v6445_v41 = vld [vmem:[#allocation23_spill] sm:$0xff] }
 0x195   :  { %v1502_v47 = vadd.f32 %v1501_v43, %v1251_v2  ;;  %v1576_v25 = vadd.f32 %v1575_v23, %v1253_v31  ;;  %v1267_v1 = vmax.f32 %v5887_v60, 0.0  ;;  %v1269_v36 = vmax.f32 %v6441_v17, 0.0  ;;  %v6446_v23 = vld [vmem:[#allocation24_spill] sm:$0xff] }
 0x196   :  { %v5995_v24 = vpop.f32.mrf.mxu0  ;;  %v5997_v46 = vpop.f32.mrf.mxu1  ;;  %v1540_v7 = vadd.f32 %v1539_v13, %v1256_v45  ;;  %v1614_v52 = vadd.f32 %v1613_v48, %v1258_v5  ;;  %v1268_v57 = vmax.f32 %v6442_v10, 0.0  ;;  %v1270_v19 = vmax.f32 %v6443_v39, 0.0 }
 0x197   :  { %v1503_v51 = vadd.f32 %v1502_v47, %v1255_v32  ;;  %v1577_v28 = vadd.f32 %v1576_v25, %v1257_v35  ;;  %v1271_v40 = vmax.f32 %v6444_v20, 0.0  ;;  %v1273_v21 = vmax.f32 %v6445_v41, 0.0  ;;  %v6447_v35 = vld [vmem:[#allocation25_spill] sm:$0xff]  ;;  %v6448_v25 = vld [vmem:[#allocation26_spill] sm:$0xff] }
 0x198   :  { %v6003_v3 = vpop.f32.mrf.mxu0  ;;  %v6005_v50 = vpop.f32.mrf.mxu1  ;;  %v1541_v37 = vadd.f32 %v1540_v7, %v1260_v49  ;;  %v1615_v56 = vadd.f32 %v1614_v52, %v1262_v6  ;;  %v1272_v32 = vmax.f32 %v6446_v23, 0.0  ;;  %v1274_v63 = vmax.f32 %v6447_v35, 0.0  ;;  %v6450_v6 = vld [vmem:[#allocation28_spill] sm:$0xff]  ;;  %v6455_v20 = vld [vmem:[#allocation33_spill] sm:$0xff]  ;;  %v6457_v23 = vld [vmem:[#allocation35_spill] sm:$0xff] }
 0x199   :  { %v1504_v55 = vadd.f32 %v1503_v51, %v1259_v9  ;;  %v1578_v16 = vadd.f32 %v1577_v28, %v1261_v27  ;;  %v1275_v9 = vmax.f32 %v6448_v25, 0.0  ;;  %v6449_v27 = vld [vmem:[#allocation27_spill] sm:$0xff]  ;;  %v1276_v51 = vmax.f32 %v6450_v6, 0.0  ;;  %v6451_v28 = vld [vmem:[#allocation29_spill] sm:$0xff] }
 0x19a   :  { %v6011_v15 = vpop.f32.mrf.mxu0  ;;  %v6013_v54 = vpop.f32.mrf.mxu1  ;;  %v1542_v43 = vadd.f32 %v1541_v37, %v1264_v53  ;;  %v1616_v60 = vadd.f32 %v1615_v56, %v1266_v34  ;;  %v1277_v13 = vmax.f32 %v6449_v27, 0.0  ;;  %v6452_v34 = vld [vmem:[#allocation30_spill] sm:$0xff]  ;;  %v6454_v37 = vld [vmem:[#allocation32_spill] sm:$0xff]  ;;  %v1282_v10 = vmax.f32 %v5917_v0, 0.0 }
 0x19b   :  { %v1505_v59 = vadd.f32 %v1504_v55, %v1263_v29  ;;  %v1579_v31 = vadd.f32 %v1578_v16, %v1265_v30  ;;  %v1278_v29 = vmax.f32 %v6451_v28, 0.0  ;;  %v1279_v55 = vmax.f32 %v6452_v34, 0.0  ;;  %v6453_v16 = vld [vmem:[#allocation31_spill] sm:$0xff] }
 0x19c   :  { %v6019_v2 = vpop.f32.mrf.mxu0  ;;  %v6021_v58 = vpop.f32.mrf.mxu1  ;;  %v1543_v48 = vadd.f32 %v1542_v43, %v1268_v57  ;;  %v1617_v49 = vadd.f32 %v1616_v60, %v1270_v19  ;;  %v1280_v56 = vmax.f32 %v6454_v37, 0.0  ;;  %v6456_v43 = vld [vmem:[#allocation34_spill] sm:$0xff]  ;;  %v1289_v25 = vmax.f32 %v5949_v18, 0.0 }
 0x19d   :  { %v1506_v5 = vadd.f32 %v1505_v59, %v1267_v1  ;;  %v1580_v47 = vadd.f32 %v1579_v31, %v1269_v36  ;;  %v1281_v1 = vmax.f32 %v6453_v16, 0.0  ;;  %v1283_v31 = vmax.f32 %v5927_v4, 0.0 }
 0x19e   :  { %v6027_v44 = vpop.f32.mrf.mxu0  ;;  %v6029_v45 = vpop.f32.mrf.mxu1  ;;  %v1544_v17 = vadd.f32 %v1543_v48, %v1272_v32  ;;  %v1618_v36 = vadd.f32 %v1617_v49, %v1274_v63  ;;  %v1284_v60 = vmax.f32 %v6456_v43, 0.0  ;;  %v1286_v32 = vmax.f32 %v6457_v23, 0.0 }
 0x19f   :  { %v1507_v52 = vadd.f32 %v1506_v5, %v1271_v40  ;;  %v1581_v53 = vadd.f32 %v1580_v47, %v1273_v21  ;;  %v1285_v40 = vmax.f32 %v6455_v20, 0.0  ;;  %v1287_v47 = vmax.f32 %v5947_v8, 0.0 }
 0x1a0   :  { %v6035_v30 = vpop.f32.mrf.mxu0  ;;  %v6037_v7 = vpop.f32.mrf.mxu1  ;;  %v1545_v41 = vadd.f32 %v1544_v17, %v1276_v51  ;;  %v1619_v21 = vadd.f32 %v1618_v36, %v1278_v29  ;;  %v1288_v27 = vmax.f32 %v5955_v62, 0.0  ;;  %v1291_v28 = vmax.f32 %v5963_v12, 0.0 }
 0x1a1   :  { %v1508_v19 = vadd.f32 %v1507_v52, %v1275_v9  ;;  %v1582_v59 = vadd.f32 %v1581_v53, %v1277_v13  ;;  %v1290_v13 = vmax.f32 %v5957_v22, 0.0  ;;  %v1293_v29 = vmax.f32 %v5965_v26, 0.0 }
 0x1a2   :  { %v6043_v57 = vpop.f32.mrf.mxu0  ;;  %v6045_v39 = vpop.f32.mrf.mxu1  ;;  %v1546_v9 = vadd.f32 %v1545_v41, %v1280_v56  ;;  %v1620_v4 = vadd.f32 %v1619_v21, %v1282_v10  ;;  %v1292_v18 = vmax.f32 %v5971_v14, 0.0  ;;  %v1294_v53 = vmax.f32 %v5973_v33, 0.0 }
 0x1a3   :  { %v1509_v0 = vadd.f32 %v1508_v19, %v1279_v55  ;;  %v1583_v5 = vadd.f32 %v1582_v59, %v1281_v1  ;;  %v1295_v16 = vmax.f32 %v5979_v11, 0.0  ;;  %v1297_v1 = vmax.f32 %v5981_v38, 0.0 }
 0x1a4   :  { %v6051_v35 = vpop.f32.mrf.mxu0  ;;  %v6053_v63 = vpop.f32.mrf.mxu1  ;;  %v1547_v52 = vadd.f32 %v1546_v9, %v1284_v60  ;;  %v1621_v8 = vadd.f32 %v1620_v4, %v1286_v32  ;;  %v1296_v26 = vmax.f32 %v5987_v61, 0.0  ;;  %v1298_v36 = vmax.f32 %v5989_v42, 0.0 }
 0x1a5   :  { %v1510_v6 = vadd.f32 %v1509_v0, %v1283_v31  ;;  %v1584_v51 = vadd.f32 %v1583_v5, %v1285_v40  ;;  %v1299_v10 = vmax.f32 %v5995_v24, 0.0  ;;  %v1301_v19 = vmax.f32 %v5997_v46, 0.0 }
 0x1a6   :  { %v6059_v48 = vpop.f32.mrf.mxu0  ;;  %v6061_v49 = vpop.f32.mrf.mxu1  ;;  %v1548_v17 = vadd.f32 %v1547_v52, %v1288_v27  ;;  %v1622_v12 = vadd.f32 %v1621_v8, %v1290_v13  ;;  %v1300_v38 = vmax.f32 %v6003_v3, 0.0  ;;  %v1302_v31 = vmax.f32 %v6005_v50, 0.0 }
 0x1a7   :  { %v1511_v22 = vadd.f32 %v1510_v6, %v1287_v47  ;;  %v1585_v55 = vadd.f32 %v1584_v51, %v1289_v25  ;;  %v1303_v41 = vmax.f32 %v6011_v15, 0.0  ;;  %v1305_v21 = vmax.f32 %v6013_v54, 0.0 }
 0x1a8   :  { %v6067_v34 = vpop.f32.mrf.mxu0  ;;  %v6069_v62 = vpop.f32.mrf.mxu1  ;;  %v1549_v59 = vadd.f32 %v1548_v17, %v1292_v18  ;;  %v1623_v11 = vadd.f32 %v1622_v12, %v1294_v53  ;;  %v1304_v46 = vmax.f32 %v6019_v2, 0.0  ;;  %v1306_v60 = vmax.f32 %v6021_v58, 0.0 }
 0x1a9   :  { %v1512_v33 = vadd.f32 %v1511_v22, %v1291_v28  ;;  %v1586_v56 = vadd.f32 %v1585_v55, %v1293_v29  ;;  %v1307_v0 = vmax.f32 %v6027_v44, 0.0  ;;  %v1309_v5 = vmax.f32 %v6029_v45, 0.0 }
 0x1aa   :  { %v6075_v37 = vpop.f32.mrf.mxu0  ;;  %v6077_v14 = vpop.f32.mrf.mxu1  ;;  %v1550_v43 = vadd.f32 %v1549_v59, %v1296_v26  ;;  %v1624_v24 = vadd.f32 %v1623_v11, %v1298_v36  ;;  %v1308_v54 = vmax.f32 %v6035_v30, 0.0  ;;  %v1310_v25 = vmax.f32 %v6037_v7, 0.0 }
 0x1ab   :  { %v1513_v42 = vadd.f32 %v1512_v33, %v1295_v16  ;;  %v1587_v40 = vadd.f32 %v1586_v56, %v1297_v1  ;;  %v1311_v27 = vmax.f32 %v6043_v57, 0.0  ;;  %v1313_v13 = vmax.f32 %v6045_v39, 0.0 }
 0x1ac   :  { %v6083_v20 = vpop.f32.mrf.mxu0  ;;  %v6085_v61 = vpop.f32.mrf.mxu1  ;;  %v1551_v47 = vadd.f32 %v1550_v43, %v1300_v38  ;;  %v1625_v15 = vadd.f32 %v1624_v24, %v1302_v31  ;;  %v1312_v44 = vmax.f32 %v6051_v35, 0.0  ;;  %v1314_v45 = vmax.f32 %v6053_v63, 0.0 }
 0x1ad   :  { %v1514_v50 = vadd.f32 %v1513_v42, %v1299_v10  ;;  %v1588_v32 = vadd.f32 %v1587_v40, %v1301_v19  ;;  %v1315_v7 = vmax.f32 %v6059_v48, 0.0  ;;  %v1317_v8 = vmax.f32 %v6061_v49, 0.0 }
 0x1ae   :  { %v6091_v23 = vpop.f32.mrf.mxu0  ;;  %v6093_v3 = vpop.f32.mrf.mxu1  ;;  %v1552_v6 = vadd.f32 %v1551_v47, %v1304_v46  ;;  %v1626_v51 = vadd.f32 %v1625_v15, %v1306_v60  ;;  %v1316_v57 = vmax.f32 %v6067_v34, 0.0  ;;  %v1318_v39 = vmax.f32 %v6069_v62, 0.0 }
 0x1af   :  { %v1515_v4 = vadd.f32 %v1514_v50, %v1303_v41  ;;  %v1589_v58 = vadd.f32 %v1588_v32, %v1305_v21  ;;  %v1319_v63 = vmax.f32 %v6075_v37, 0.0  ;;  %v1321_v1 = vmax.f32 %v6077_v14, 0.0 }
 0x1b0   :  { %v711_v9 = vpop.f32.mrf.mxu0  ;;  %v1064_v2 = vpop.f32.mrf.mxu1  ;;  %v1553_v18 = vadd.f32 %v1552_v6, %v1308_v54  ;;  %v1627_v53 = vadd.f32 %v1626_v51, %v1310_v25  ;;  %v1320_v48 = vmax.f32 %v6083_v20, 0.0  ;;  %v1322_v49 = vmax.f32 %v6085_v61, 0.0 }
 0x1b1   :  { %v1516_v52 = vadd.f32 %v1515_v4, %v1307_v0  ;;  %v1590_v30 = vadd.f32 %v1589_v58, %v1309_v5  ;;  %v1323_v62 = vmax.f32 %v6091_v23, 0.0  ;;  %v1325_v56 = vmax.f32 %v6093_v3, 0.0 }
 0x1b2   :  { %v713_v28 = vpop.f32.mrf.mxu0  ;;  %v1066_v29 = vpop.f32.mrf.mxu1  ;;  %v1554_v17 = vadd.f32 %v1553_v18, %v1312_v44  ;;  %v1628_v12 = vadd.f32 %v1627_v53, %v1314_v45  ;;  %v1324_v59 = vmax.f32 %v711_v9, 0.0  ;;  %v1326_v37 = vmax.f32 %v1064_v2, 0.0 }
 0x1b3   :  { %v1517_v16 = vadd.f32 %v1516_v52, %v1311_v27  ;;  %v1591_v35 = vadd.f32 %v1590_v30, %v1313_v13  ;;  %v1327_v42 = vmax.f32 %v713_v28, 0.0  ;;  %v1329_v20 = vmax.f32 %v1066_v29, 0.0  ;;  %v6458_v52 = vld [vmem:[#allocation15_spill] sm:$0xff] }
 0x1b4   :  { %v715_v22 = vpop.f32.mrf.mxu0  ;;  %v1068_v55 = vpop.f32.mrf.mxu1  ;;  %v1555_v10 = vadd.f32 %v1554_v17, %v1316_v57  ;;  %v1629_v19 = vadd.f32 %v1628_v12, %v1318_v39  ;;  %v6459_v30 = vrot.slane %v6458_v52, 4  ;;  %v6462_v17 = vld [vmem:[#allocation17_spill] sm:$0xff] }
 0x1b5   :  { %v1518_v33 = vadd.f32 %v1517_v16, %v1315_v7  ;;  %v1592_v34 = vadd.f32 %v1591_v35, %v1317_v8  ;;  %v1328_v41 = vmax.f32 %v715_v22, 0.0  ;;  %v1330_v21 = vmax.f32 %v1068_v55, 0.0  ;;  %v6460_v8 = vld [vmem:[#allocation16_spill] sm:$0xff] }
 0x1b6   :  { %v719_v26 = vpop.f32.mrf.mxu0  ;;  %v1072_v36 = vpop.f32.mrf.mxu1  ;;  %v1556_v40 = vadd.f32 %v1555_v10, %v1320_v48  ;;  %v1630_v61 = vadd.f32 %v1629_v19, %v1322_v49  ;;  %v1379_v7 = vadd.f32 %v6459_v30, %v6458_v52  ;;  %v6461_v18 = vrot.slane %v6460_v8, 4  ;;  %v6464_v49 = vld [vmem:[#allocation18_spill] sm:$0xff] }
 0x1b7   :  { %v1519_v38 = vadd.f32 %v1518_v33, %v1319_v63  ;;  %v1593_v31 = vadd.f32 %v1592_v34, %v1321_v1  ;;  %v1331_v23 = vmax.f32 %v719_v26, 0.0  ;;  %v1333_v3 = vmax.f32 %v1072_v36, 0.0 }
 0x1b8   :  { %v721_v11 = vpop.f32.mrf.mxu0  ;;  %v1074_v14 = vpop.f32.mrf.mxu1  ;;  %v1557_v50 = vadd.f32 %v1556_v40, %v1324_v59  ;;  %v1631_v32 = vadd.f32 %v1630_v61, %v1326_v37  ;;  %v1453_v53 = vadd.f32 %v6461_v18, %v6460_v8  ;;  %v6463_v12 = vrot.slane %v6462_v17, 4 }
 0x1b9   :  { %v1520_v46 = vadd.f32 %v1519_v38, %v1323_v62  ;;  %v1594_v60 = vadd.f32 %v1593_v31, %v1325_v56  ;;  %v1332_v0 = vmax.f32 %v721_v11, 0.0  ;;  %v1334_v5 = vmax.f32 %v1074_v14, 0.0 }
 0x1ba   :  { %v723_v43 = vpop.f32.mrf.mxu0  ;;  %v1076_v24 = vpop.f32.mrf.mxu1  ;;  %v1558_v4 = vadd.f32 %v1557_v50, %v1328_v41  ;;  %v1632_v58 = vadd.f32 %v1631_v32, %v1330_v21  ;;  %v1416_v48 = vadd.f32 %v6463_v12, %v6462_v17  ;;  %v6465_v26 = vrot.slane %v6464_v49, 4 }
 0x1bb   :  { %v1521_v54 = vadd.f32 %v1520_v46, %v1327_v42  ;;  %v1595_v25 = vadd.f32 %v1594_v60, %v1329_v20  ;;  %v1335_v9 = vmax.f32 %v723_v43, 0.0  ;;  %v1337_v2 = vmax.f32 %v1076_v24, 0.0 }
 0x1bc   :  { %v725_v47 = vpop.f32.mrf.mxu0  ;;  %v1078_v15 = vpop.f32.mrf.mxu1  ;;  %v1559_v57 = vadd.f32 %v1558_v4, %v1332_v0  ;;  %v1633_v39 = vadd.f32 %v1632_v58, %v1334_v5  ;;  %v1490_v36 = vadd.f32 %v6465_v26, %v6464_v49  ;;  %v1380_v11 = vrot.slane %v1379_v7, 2 }
 0x1bd   :  { %v1336_v27 = vmax.f32 %v725_v47, 0.0  ;;  %v1338_v13 = vmax.f32 %v1078_v15, 0.0  ;;  %v1522_v44 = vadd.f32 %v1521_v54, %v1331_v23  ;;  %v1596_v45 = vadd.f32 %v1595_v25, %v1333_v3 }
 0x1be   :  { %v729_v6 = vpop.f32.mrf.mxu0  ;;  %v1082_v51 = vpop.f32.mrf.mxu1  ;;  %v1454_v14 = vrot.slane %v1453_v53, 2  ;;  %v1417_v43 = vrot.slane %v1416_v48, 2  ;;  %v1491_v24 = vrot.slane %v1490_v36, 2  ;;  %v1381_v50 = vadd.f32 %v1380_v11, %v1379_v7 }
 0x1bf   :  { %v1339_v28 = vmax.f32 %v729_v6, 0.0  ;;  %v1341_v29 = vmax.f32 %v1082_v51, 0.0  ;;  %v1523_v16 = vadd.f32 %v1522_v44, %v1335_v9  ;;  %v1597_v35 = vadd.f32 %v1596_v45, %v1337_v2  ;;  %v2147_v11 = vpop.permute.xlu0 %2146 }
 0x1c0   :  { %v731_v22 = vpop.f32.mrf.mxu0  ;;  %v1084_v55 = vpop.f32.mrf.mxu1  ;;  %v1560_v33 = vadd.f32 %v1559_v57, %v1336_v27  ;;  %v1634_v34 = vadd.f32 %v1633_v39, %v1338_v13  ;;  %v1455_v32 = vadd.f32 %v1454_v14, %v1453_v53  ;;  %v1418_v54 = vadd.f32 %v1417_v43, %v1416_v48 }
 0x1c1   :  { %v1340_v63 = vmax.f32 %v731_v22, 0.0  ;;  %v1342_v1 = vmax.f32 %v1084_v55, 0.0  ;;  %v1524_v10 = vadd.f32 %v1523_v16, %v1339_v28  ;;  %v1598_v19 = vadd.f32 %v1597_v35, %v1341_v29 }
 0x1c2   :  { %v733_v62 = vpop.f32.mrf.mxu0  ;;  %v1086_v56 = vpop.f32.mrf.mxu1  ;;  %v1492_v25 = vadd.f32 %v1491_v24, %v1490_v36  ;;  %v1382_v27 = vrot.slane %v1381_v50, 1  ;;  %v1456_v13 = vrot.slane %v1455_v32, 1  ;;  %v1419_v28 = vrot.slane %v1418_v54, 1 }
 0x1c3   :  { %v1343_v59 = vmax.f32 %v733_v62, 0.0  ;;  %v1345_v37 = vmax.f32 %v1086_v56, 0.0  ;;  %v1561_v38 = vadd.f32 %v1560_v33, %v1340_v63  ;;  %v1635_v31 = vadd.f32 %v1634_v34, %v1342_v1  ;;  %v5160_v62 = vld [vmem:[%s6405_s4 + $0x1c] ss:$12 sps:$4 sm:$0xff]   ;;  %v2145_v24 = vpop.permute.xlu0 %2144 }
 0x1c4   :  { %v735_v42 = vpop.f32.mrf.mxu0  ;;  %v1088_v20 = vpop.f32.mrf.mxu1  ;;  %v1493_v29 = vrot.slane %v1492_v25, 1  ;;  %v1383_v18 = vadd.f32 %v1382_v27, %v1381_v50  ;;  %v1457_v53 = vadd.f32 %v1456_v13, %v1455_v32  ;;  %v1420_v16 = vadd.f32 %v1419_v28, %v1418_v54  ;;  %2060 = vrot.lane.b32.xlu0 %v5160_v62, %s5384_s13  ;;  %v5162_v28 = vld [vmem:[%s6405_s4 + $0x50] ss:$12 sps:$4 sm:$0xff]  }
 0x1c5   :  { %v1525_v40 = vadd.f32 %v1524_v10, %v1343_v59  ;;  %v1599_v61 = vadd.f32 %v1598_v19, %v1345_v37  ;;  %v1344_v41 = vmax.f32 %v735_v42, 0.0  ;;  %v1346_v21 = vmax.f32 %v1088_v20, 0.0  ;;  %v5161_v10 = vld [vmem:[%s6405_s4 + $0x4] ss:$12 sps:$4 sm:$0xff]  }
 0x1c6   :  { %v1494_v35 = vadd.f32 %v1493_v29, %v1492_v25  ;;  %v5382_v56 = vmov 0.0   ;;  %2058 = vrot.lane.b32.xlu1 %v5161_v10, %s5384_s13  ;;  %v4796_v19 = vld [vmem:[%s6406_s5 + $0x32] ss:$0 sm:$0xff]  ;;  %v5163_v29 = vld [vmem:[%s6405_s4 + $0x38] ss:$12 sps:$4 sm:$0xff]  }
 0x1c7   :  { %v1526_v46 = vrot.slane %v1525_v40, 4  ;;  %v1600_v60 = vrot.slane %v1599_v61, 4  ;;  %v1562_v23 = vadd.f32 %v1561_v38, %v1344_v41  ;;  %v1636_v3 = vadd.f32 %v1635_v31, %v1346_v21  ;;  %5012 = vmatprep.subr.bf16.mxu0 %v5382_v56  ;;  %5020 = vmatprep.subr.bf16.mxu1 %v5382_v56 }
 0x1c8   :  { %2203 = vrot.lane.b32.xlu0 %v5160_v62, %s5385_s16 }
 0x1c9   :  { %v1527_v0 = vadd.f32 %v1526_v46, %v1525_v40  ;;  %v1601_v5 = vadd.f32 %v1600_v60, %v1599_v61  ;;  %v1563_v47 = vrot.slane %v1562_v23, 4  ;;  %v1637_v15 = vrot.slane %v1636_v3, 4  ;;  %v2143_v60 = vpop.permute.xlu1 %2142 }
 0x1ca   :  { %2152 = vrot.lane.b32.xlu1 %v4796_v19, %s5381_s27 }
 0x1cb   :  { %v1528_v9 = vrot.slane %v1527_v0, 2  ;;  %v1602_v2 = vrot.slane %v1601_v5, 2  ;;  %v1564_v4 = vadd.f32 %v1563_v47, %v1562_v23  ;;  %v1638_v58 = vadd.f32 %v1637_v15, %v1636_v3  ;;  %v2111_v3 = vld [vmem:[%s6402_s1] sm:$0x1] }
 0x1cc   :  { %2201 = vrot.lane.b32.xlu0 %v5161_v10, %s5385_s16 }
 0x1cd   :  { %v1529_v6 = vadd.f32 %v1528_v9, %v1527_v0  ;;  %v1603_v51 = vadd.f32 %v1602_v2, %v1601_v5  ;;  %v1565_v44 = vrot.slane %v1564_v4, 2  ;;  %v1639_v45 = vrot.slane %v1638_v58, 2  ;;  %v2141_v23 = vpop.permute.xlu1 %2140 }
 0x1ce   :  { %2207 = vrot.lane.b32.xlu1 %v4796_v19, %s5385_s16 }
 0x1cf   :  { %v1530_v52 = vrot.slane %v1529_v6, 1  ;;  %v1604_v30 = vrot.slane %v1603_v51, 1  ;;  %v1566_v7 = vadd.f32 %v1565_v44, %v1564_v4  ;;  %v1640_v8 = vadd.f32 %v1639_v45, %v1638_v58 }
 0x1d0   :  { %2064 = vrot.lane.b32.xlu0 %v4796_v19, %s5384_s13 }
 0x1d1   :  { %v1531_v57 = vadd.f32 %v1530_v52, %v1529_v6  ;;  %v1605_v39 = vadd.f32 %v1604_v30, %v1603_v51  ;;  %v1567_v22 = vrot.slane %v1566_v7, 1  ;;  %v1641_v55 = vrot.slane %v1640_v8, 1  ;;  %v5164_v52 = vld [vmem:[%s6405_s4 + $0x20] ss:$12 sps:$4 sm:$0xff]  }
 0x1d3   :  { %v1568_v63 = vadd.f32 %v1567_v22, %v1566_v7  ;;  %v1642_v1 = vadd.f32 %v1641_v55, %v1640_v8  ;;  %v1644_v17 = vsel %vm1643_vm1, %v1383_v18, %v1531_v57  ;;  %v1646_v12 = vsel %vm1643_vm1, %v1457_v53, %v1605_v39  ;;  %v5165_v53 = vld [vmem:[%s6405_s4 + $0x8] ss:$12 sps:$4 sm:$0xff]   ;;  %v5166_v57 = vld [vmem:[%s6405_s4 + $0x18] ss:$12 sps:$4 sm:$0xff]  }
 0x1d4   :  { %v1648_v33 = vpack.c.bf16 %v1644_v17, %v1644_v17  ;;  %v1650_v34 = vpack.c.bf16 %v1646_v12, %v1646_v12 }
 0x1d5   :  { %v1645_v48 = vsel %vm1643_vm1, %v1420_v16, %v1568_v63  ;;  %v1647_v49 = vsel %vm1643_vm1, %v1494_v35, %v1642_v1 }
 0x1d6   :  { %v1649_v26 = vpack.c.bf16 %v1645_v48, %v1645_v48  ;;  %v1651_v36 = vpack.c.bf16 %v1647_v49, %v1647_v49 }
 0x1d8   :  { %1940 = vmatprep.mubr.bf16.mxu0 %v1649_v26  ;;  %1980 = vmatprep.mubr.bf16.mxu1 %v1651_v36 }
 0x1d9   :  { %1941 = vmatmul.mubr.bf16.vlgmr.msra.gmra.mxu0 %v1648_v33  ;;  %1981 = vmatmul.mubr.bf16.vlgmr.msra.gmra.mxu1 %v1650_v34  ;;  %v5167_v33 = vld [vmem:[%s6405_s4] ss:$12 sps:$4 sm:$0xff]   ;;  %v4807_v34 = vld [vmem:[%s6406_s5 + $0x33] ss:$0 sm:$0xff] }
 0x1da   :  { %5013 = vmatpush3.bf16.msra.mxu0 %v5160_v62  ;;  %5016 = vmatprep.mubr.msk.bf16.mxu0 %vm5383_vm2, %v5382_v56 }
 0x1db   :  { %5014 = vmatprep.subr.bf16.mxu0 %v5382_v56  ;;  %5024 = vmatprep.mubr.msk.bf16.mxu1 %vm5383_vm2, %v5382_v56 }
 0x1de   :  { %5015 = vmatpush3.bf16.msra.mxu0 %v5161_v10 }
 0x1df   :  { %5028 = vmatprep.subr.bf16.mxu0 %v5382_v56 }
 0x236   :  { %v2061_v46 = vpop.permute.xlu0 %2060 }
 0x237   :  { %5021 = vmatpush3.bf16.msra.mxu1 %v2061_v46 }
 0x238   :  { %5022 = vmatprep.subr.bf16.mxu1 %v5382_v56  ;;  %v2059_v50 = vpop.permute.xlu1 %2058 }
 0x23a   :  { %v2204_v15 = vpop.permute.xlu0 %2203 }
 0x23b   :  { %5023 = vmatpush3.bf16.msra.mxu1 %v2059_v50 }
 0x23c   :  { %5040 = vmatprep.subr.bf16.mxu1 %v5382_v56  ;;  %v2153_v4 = vpop.permute.xlu1 %2152 }
 0x23e   :  { %v2202_v2 = vpop.permute.xlu0 %2201 }
 0x240   :  { %v2208_v39 = vpop.permute.xlu1 %2207 }
 0x242   :  { %v2065_v17 = vpop.permute.xlu0 %2064 }
 0x299   :  { %v4959_v59 = vpop.f32.mrf.mxu0  ;;  %v4981_v37 = vpop.f32.mrf.mxu1 }
 0x29b   :  { %v4960_v14 = vpop.f32.mrf.mxu0  ;;  %v4982_v38 = vpop.f32.mrf.mxu1 }
 0x29c   :  { %v4961_v31 = vadd.f32 %v4960_v14, %v4959_v59  ;;  %v4983_v42 = vadd.f32 %v4982_v38, %v4981_v37 }
 0x29d   :  { %v4962_v20 = vpop.f32.mrf.mxu0  ;;  %v4984_v40 = vpop.f32.mrf.mxu1 }
 0x29e   :  { %v1983_v61 = vadd.f32 %v4983_v42, %v4961_v31 }
 0x29f   :  { %v4963_v41 = vpop.f32.mrf.mxu0  ;;  %v4985_v21 = vpop.f32.mrf.mxu1 }
 0x2a0   :  { %v1988_v43 = vpack.c.bf16 %v1983_v61, %v1983_v61 }
 0x2a2   :  { %5017 = vmatmul.mubr.msk.bf16.vlgmr.msra.gmra.mxu0 %vm2012_vm3, %v1988_v43 }
 0x2a3   :  { %5029 = vmatpush3.bf16.msra.mxu0 %v2147_v11  ;;  %5036 = vmatprep.mubr.msk.bf16.mxu0 %vm5383_vm2, %v5382_v56 }
 0x2a4   :  { %5030 = vmatprep.subr.bf16.mxu0 %v5382_v56 }
 0x2a7   :  { %5031 = vmatpush3.bf16.msra.mxu0 %v2145_v24 }
 0x2a8   :  { %5032 = vmatprep.subr.bf16.mxu0 %v5382_v56 }
 0x2ab   :  { %5033 = vmatpush3.bf16.msra.mxu0 %v2143_v60 }
 0x2ac   :  { %5034 = vmatprep.subr.bf16.mxu0 %v5382_v56 }
 0x2af   :  { %5035 = vmatpush3.bf16.msra.mxu0 %v2141_v23 }
 0x2b0   :  { %5060 = vmatprep.subr.bf16.mxu0 %v5382_v56 }
 0x2b2   :  { %5037 = vmatmul.mubr.msk.bf16.vlgmr.msra.gmra.mxu0 %vm2155_vm4, %v2111_v3 }
 0x2b3   :  { %5064 = vmatprep.mubr.msk.bf16.mxu0 %vm5383_vm2, %v5382_v56  ;;  %5061 = vmatpush3.bf16.msra.mxu0 %v5166_v57 }
 0x2b4   :  { %5062 = vmatprep.subr.bf16.mxu0 %v5382_v56 }
 0x2b7   :  { %5063 = vmatpush3.bf16.msra.mxu0 %v5167_v33 }
 0x362   :  { %v2050_v32 = vpop.f32.mrf.mxu0 }
 0x363   :  { %v2051_v0 = vadd.f32 %v4796_v19, %v2050_v32 }
 0x364   :  { %v5018_v5 = vpop.f32.mrf.mxu0 }
 0x365   :  { %v2056_v47 = vmax.f32 %v2051_v0, 0.0 }
 0x366   :  { %v2053_v54 = vpop.f32.mrf.mxu0 }
 0x367   :  { %v2057_v25 = vpack.c.bf16 %v2056_v47, %v2056_v47 }
 0x368   :  { %v5019_v9 = vpop.f32.mrf.mxu0 }
 0x369   :  { %5025 = vmatmul.mubr.msk.bf16.vlgmr.msra.gmra.mxu1 %vm2012_vm3, %v2057_v25 }
 0x36a   :  { %5041 = vmatpush3.bf16.msra.mxu1 %v2204_v15  ;;  %5044 = vmatprep.mubr.msk.bf16.mxu1 %vm5383_vm2, %v5382_v56 }
 0x36b   :  { %5042 = vmatprep.subr.bf16.mxu1 %v5382_v56 }
 0x36e   :  { %5043 = vmatpush3.bf16.msra.mxu1 %v2202_v2 }
 0x36f   :  { %5048 = vmatprep.subr.bf16.mxu1 %v5382_v56 }
 0x372   :  { %v2193_v58 = vpop.f32.mrf.mxu0 }
 0x373   :  { %v2194_v27 = vadd.f32 %v2193_v58, %v2153_v4 }
 0x374   :  { %v5038_v13 = vpop.f32.mrf.mxu0 }
 0x375   :  { %v2199_v6 = vmax.f32 %v2194_v27, 0.0 }
 0x376   :  { %v2196_v51 = vpop.f32.mrf.mxu0 }
 0x377   :  { %v2200_v44 = vpack.c.bf16 %v2199_v6, %v2199_v6 }
 0x378   :  { %v5039_v45 = vpop.f32.mrf.mxu0 }
 0x379   :  { %5045 = vmatmul.mubr.msk.bf16.vlgmr.msra.gmra.mxu1 %vm2012_vm3, %v2200_v44 }
 0x37a   :  { %5056 = vmatprep.mubr.msk.bf16.mxu1 %vm5383_vm2, %v5382_v56  ;;  %5049 = vmatpush3.bf16.msra.mxu1 %v5162_v28 }
 0x37b   :  { %5050 = vmatprep.subr.bf16.mxu1 %v5382_v56 }
 0x37e   :  { %5051 = vmatpush3.bf16.msra.mxu1 %v5163_v29 }
 0x37f   :  { %5052 = vmatprep.subr.bf16.mxu1 %v5382_v56 }
 0x382   :  { %5053 = vmatpush3.bf16.msra.mxu1 %v5164_v52 }
 0x383   :  { %5054 = vmatprep.subr.bf16.mxu1 %v5382_v56 }
 0x386   :  { %5055 = vmatpush3.bf16.msra.mxu1 %v5165_v53 }
 0x429   :  { %v2104_v30 = vpop.f32.mrf.mxu1 }
 0x42a   :  { %v2105_v12 = vadd.f32 %v2104_v30, %v2065_v17 }
 0x42b   :  { %v5026_v7 = vpop.f32.mrf.mxu1 }
 0x42c   :  { %v2110_v48 = vmax.f32 %v2105_v12, 0.0 }
 0x42d   :  { %v2107_v8 = vpop.f32.mrf.mxu1 }
 0x42f   :  { %v5027_v18 = vpop.f32.mrf.mxu1 }
 0x439   :  { %v2247_v22 = vpop.f32.mrf.mxu1 }
 0x43a   :  { %v2248_v55 = vadd.f32 %v2247_v22, %v2208_v39 }
 0x43b   :  { %v5046_v16 = vpop.f32.mrf.mxu1 }
 0x43c   :  { %v2253_v35 = vmax.f32 %v2248_v55, 0.0 }
 0x43d   :  { %v2250_v63 = vpop.f32.mrf.mxu1 }
 0x43e   :  { %2255 = vrot.lane.b32.xlu1 %v2253_v35, %s5385_s16 }
 0x43f   :  { %v5047_v1 = vpop.f32.mrf.mxu1 }
 0x4b0   :  { %v2256_v49 = vpop.permute.xlu1 %2255 }
 0x4b1   :  { %v2258_v26 = vsel %vm2012_vm3, %v2110_v48, %v2256_v49 }
 0x4b2   :  { %v2259_v36 = vpack.c.bf16 %v2258_v26, %v2258_v26 }
 0x4b4   :  { %5057 = vmatmul.mubr.msk.bf16.vlgmr.msra.gmra.mxu1 %vm2155_vm4, %v2259_v36 }
 0x574   :  { %v2336_v62 = vpop.f32.mrf.mxu1 }
 0x575   :  { %v2337_v10 = vadd.f32 %v4807_v34, %v2336_v62 }
 0x576   :  { %v5058_v19 = vpop.f32.mrf.mxu1 }
 0x577   :  { %v2342_v59 = vmax.f32 %v2337_v10, 0.0 }
 0x578   :  { %v2339_v37 = vpop.f32.mrf.mxu1 }
 0x579   :  { %v2343_v11 = vpack.c.bf16 %v2342_v59, %v2342_v59 }
 0x57a   :  { %v5059_v14 = vpop.f32.mrf.mxu1 }
 0x57b   :  { %5065 = vmatmul.mubr.msk.bf16.vlgmr.msra.gmra.mxu0 %vm2012_vm3, %v2343_v11 }
 0x57c   :  { %5333 = shalt.err (!%p5330_p4)  }
 0x57d   :  { %39 = dma.hbm_to_vmem [thread:$0]  %s6407_s6, 12544, %s37_s0, [#allocation3]  ;;  %v4813_v38 = vld [vmem:[%s6406_s5 + $0x31] ss:$0 sm:$0xff] }
 0x63b   :  { %v2404_v31 = vpop.f32.mrf.mxu0 }
 0x63c   :  { %v2405_v42 = vadd.f32 %v4813_v38, %v2404_v31 }
 0x63d   :  { %v5066_v20 = vpop.f32.mrf.mxu0 }
 0x63e   :  { %v2410_v40 = vmax.f32 %v2405_v42, 0.0 }
 0x63f   :  { %v2407_v61 = vpop.f32.mrf.mxu0 }
 0x640   :  { %2411 = vst [vmem:[#allocation6] sm:$0x3] %v2410_v40 }
 0x641   :  { %v5067_v41 = vpop.f32.mrf.mxu0 }
 0x642   :  { %5374 = dma.done.wait [#allocation3], 12544 }
 0x643   :  { %5375 = vsyncadd [#allocation3], 4294954752  ;;  %v6466_v21 = vmov 0   ;;  %v5168_v43 = vld [vmem:[#allocation2 + $0x18c] ss:$196 sps:$4 sm:$0xff]   ;;  %v6206_v5 = vpack.c.bf16 %v2410_v40, %v2410_v40  ;;  %s5387_s6 = smov [#allocation6]  }
 0x644   :  { %3303 = vmatprep.mubr.bf16.mxu0 %v6466_v21  ;;  %3344 = vmatprep.mubr.bf16.mxu1 %v6466_v21  ;;  %v5170_v24 = vld [vmem:[#allocation2 + $0x194] ss:$196 sps:$4 sm:$0xff]   ;;  %v5172_v46 = vld [vmem:[#allocation2 + $0x188] ss:$196 sps:$4 sm:$0xff]   ;;  %v5178_v50 = vld [vmem:[#allocation2] ss:$196 sps:$4 sm:$0xff]  }
 0x645   :  { %3283 = vmatprep.subr.bf16.mxu0 %v5168_v43  ;;  %v5173_v60 = vld [vmem:[#allocation2 + $0x190] ss:$196 sps:$4 sm:$0xff]   ;;  %3324 = vmatprep.subr.bf16.mxu1 %v5170_v24  ;;  %v5174_v23 = vld [vmem:[#allocation2 + $0x4] ss:$196 sps:$4 sm:$0xff]   ;;  %v5182_v0 = vld [vmem:[#allocation2 + $0x19c] ss:$196 sps:$4 sm:$0xff]  }
 0x646   :  { %3284 = vmatpush1.bf16.msra.mxu0 %v5172_v46  ;;  %3325 = vmatpush1.bf16.msra.mxu1 %v5173_v60  ;;  %v5176_v3 = vld [vmem:[#allocation2 + $0xc] ss:$196 sps:$4 sm:$0xff]   ;;  %v5180_v47 = vld [vmem:[#allocation2 + $0x198] ss:$196 sps:$4 sm:$0xff]   ;;  %v5185_v15 = vld [vmem:[#allocation2 + $0x1a4] ss:$196 sps:$4 sm:$0xff]  }
 0x647   :  { %3285 = vmatprep.subr.bf16.mxu0 %v5174_v23  ;;  %v5179_v32 = vld [vmem:[#allocation2 + $0x8] ss:$196 sps:$4 sm:$0xff]   ;;  %3326 = vmatprep.subr.bf16.mxu1 %v5176_v3  ;;  %v5183_v54 = vld [vmem:[#allocation2 + $0x1a0] ss:$196 sps:$4 sm:$0xff]   ;;  %v5188_v25 = vld [vmem:[#allocation2 + $0x14] ss:$196 sps:$4 sm:$0xff]  }
 0x648   :  { %v5191_v9 = vld [vmem:[#allocation2 + $0x1c] ss:$196 sps:$4 sm:$0xff]   ;;  %v5186_v2 = vld [vmem:[#allocation2 + $0x10] ss:$196 sps:$4 sm:$0xff]   ;;  %v5192_v13 = vld [vmem:[#allocation2 + $0x1a8] ss:$196 sps:$4 sm:$0xff]  }
 0x649   :  { %v5189_v4 = vld [vmem:[#allocation2 + $0x18] ss:$196 sps:$4 sm:$0xff]   ;;  %v5194_v58 = vld [vmem:[#allocation2 + $0x1ac] ss:$196 sps:$4 sm:$0xff]   ;;  %v5200_v51 = vld [vmem:[#allocation2 + $0x24] ss:$196 sps:$4 sm:$0xff]  }
 0x64a   :  { %3286 = vmatpush1.bf16.msra.mxu0 %v5178_v50  ;;  %3327 = vmatpush1.bf16.msra.mxu1 %v5179_v32  ;;  %v5197_v27 = vld [vmem:[#allocation2 + $0x1b4] ss:$196 sps:$4 sm:$0xff]   ;;  %v5203_v44 = vld [vmem:[#allocation2 + $0x2c] ss:$196 sps:$4 sm:$0xff]   ;;  %v5198_v45 = vld [vmem:[#allocation2 + $0x20] ss:$196 sps:$4 sm:$0xff]  }
 0x64b   :  { %3365 = vmatprep.subr.bf16.mxu0 %v5182_v0  ;;  %3406 = vmatprep.subr.bf16.mxu1 %v5185_v15  ;;  %v5195_v6 = vld [vmem:[#allocation2 + $0x1b0] ss:$196 sps:$4 sm:$0xff]   ;;  %v5201_v28 = vld [vmem:[#allocation2 + $0x28] ss:$196 sps:$4 sm:$0xff]   ;;  %v5206_v29 = vld [vmem:[#allocation2 + $0x1bc] ss:$196 sps:$4 sm:$0xff]  }
 0x64c   :  { %v5209_v52 = vld [vmem:[#allocation2 + $0x1c4] ss:$196 sps:$4 sm:$0xff]   ;;  %v5204_v30 = vld [vmem:[#allocation2 + $0x1b8] ss:$196 sps:$4 sm:$0xff]   ;;  %v5210_v53 = vld [vmem:[#allocation2 + $0x30] ss:$196 sps:$4 sm:$0xff]  }
 0x64d   :  { %4916 = vmatmul.mubr.msk.bf16.vlgmr.msra.gmra.mxu0 %vm2012_vm3, %v6206_v5  ;;  %4917 = vmatmul.mubr.msk.bf16.vlgmr.msra.gmra.mxu1 %vm2012_vm3, %v6206_v5  ;;  %v5207_v7 = vld [vmem:[#allocation2 + $0x1c0] ss:$196 sps:$4 sm:$0xff]   ;;  %v5212_v8 = vld [vmem:[#allocation2 + $0x34] ss:$196 sps:$4 sm:$0xff]   ;;  %v5218_v39 = vld [vmem:[#allocation2 + $0x1cc] ss:$196 sps:$4 sm:$0xff]  }
 0x64e   :  { %3366 = vmatpush1.bf16.msra.mxu0 %v5180_v47  ;;  %3407 = vmatpush1.bf16.msra.mxu1 %v5183_v54  ;;  %v5215_v18 = vld [vmem:[#allocation2 + $0x3c] ss:$196 sps:$4 sm:$0xff]   ;;  %v5221_v22 = vld [vmem:[#allocation2 + $0x1d4] ss:$196 sps:$4 sm:$0xff]   ;;  %v5216_v55 = vld [vmem:[#allocation2 + $0x1c8] ss:$196 sps:$4 sm:$0xff]  }
 0x64f   :  { %3367 = vmatprep.subr.bf16.mxu0 %v5188_v25  ;;  %3408 = vmatprep.subr.bf16.mxu1 %v5191_v9  ;;  %v5213_v57 = vld [vmem:[#allocation2 + $0x38] ss:$196 sps:$4 sm:$0xff]   ;;  %v5219_v16 = vld [vmem:[#allocation2 + $0x1d0] ss:$196 sps:$4 sm:$0xff]   ;;  %v5224_v35 = vld [vmem:[#allocation2 + $0x44] ss:$196 sps:$4 sm:$0xff]  }
 0x650   :  { %3385 = vmatprep.mubr.bf16.mxu0 %v6466_v21  ;;  %3426 = vmatprep.mubr.bf16.mxu1 %v6466_v21  ;;  %v5227_v63 = vld [vmem:[#allocation2 + $0x4c] ss:$196 sps:$4 sm:$0xff]   ;;  %v5222_v1 = vld [vmem:[#allocation2 + $0x40] ss:$196 sps:$4 sm:$0xff]   ;;  %v5228_v49 = vld [vmem:[#allocation2 + $0x1d8] ss:$196 sps:$4 sm:$0xff]  }
 0x651   :  { %v5225_v17 = vld [vmem:[#allocation2 + $0x48] ss:$196 sps:$4 sm:$0xff]   ;;  %v5230_v12 = vld [vmem:[#allocation2 + $0x1dc] ss:$196 sps:$4 sm:$0xff]   ;;  %v5236_v36 = vld [vmem:[#allocation2 + $0x54] ss:$196 sps:$4 sm:$0xff]  }
 0x652   :  { %3368 = vmatpush1.bf16.msra.mxu0 %v5186_v2  ;;  %3409 = vmatpush1.bf16.msra.mxu1 %v5189_v4  ;;  %v5233_v48 = vld [vmem:[#allocation2 + $0x1e4] ss:$196 sps:$4 sm:$0xff]   ;;  %v5239_v33 = vld [vmem:[#allocation2 + $0x5c] ss:$196 sps:$4 sm:$0xff]   ;;  %v5234_v34 = vld [vmem:[#allocation2 + $0x50] ss:$196 sps:$4 sm:$0xff]  }
 0x653   :  { %3447 = vmatprep.subr.bf16.mxu0 %v5194_v58  ;;  %3488 = vmatprep.subr.bf16.mxu1 %v5197_v27  ;;  %v5231_v26 = vld [vmem:[#allocation2 + $0x1e0] ss:$196 sps:$4 sm:$0xff]   ;;  %v5237_v62 = vld [vmem:[#allocation2 + $0x58] ss:$196 sps:$4 sm:$0xff]   ;;  %v5242_v10 = vld [vmem:[#allocation2 + $0x1ec] ss:$196 sps:$4 sm:$0xff]  }
 0x654   :  { %v5245_v19 = vld [vmem:[#allocation2 + $0x1f4] ss:$196 sps:$4 sm:$0xff]   ;;  %v5240_v59 = vld [vmem:[#allocation2 + $0x1e8] ss:$196 sps:$4 sm:$0xff]   ;;  %v5246_v38 = vld [vmem:[#allocation2 + $0x60] ss:$196 sps:$4 sm:$0xff]  }
 0x655   :  { %4918 = vmatmul.mubr.msk.bf16.vlgmr.msra.gmra.mxu0 %vm2012_vm3, %v6206_v5  ;;  %4919 = vmatmul.mubr.msk.bf16.vlgmr.msra.gmra.mxu1 %vm2012_vm3, %v6206_v5  ;;  %v5243_v37 = vld [vmem:[#allocation2 + $0x1f0] ss:$196 sps:$4 sm:$0xff]   ;;  %v5248_v11 = vld [vmem:[#allocation2 + $0x64] ss:$196 sps:$4 sm:$0xff]   ;;  %v5254_v42 = vld [vmem:[#allocation2 + $0x1fc] ss:$196 sps:$4 sm:$0xff]  }
 0x656   :  { %3448 = vmatpush1.bf16.msra.mxu0 %v5192_v13  ;;  %3489 = vmatpush1.bf16.msra.mxu1 %v5195_v6  ;;  %v5251_v14 = vld [vmem:[#allocation2 + $0x6c] ss:$196 sps:$4 sm:$0xff]   ;;  %v5257_v20 = vld [vmem:[#allocation2 + $0x204] ss:$196 sps:$4 sm:$0xff]   ;;  %v5252_v40 = vld [vmem:[#allocation2 + $0x1f8] ss:$196 sps:$4 sm:$0xff]  }
 0x657   :  { %3449 = vmatprep.subr.bf16.mxu0 %v5200_v51  ;;  %3490 = vmatprep.subr.bf16.mxu1 %v5203_v44  ;;  %v5249_v31 = vld [vmem:[#allocation2 + $0x68] ss:$196 sps:$4 sm:$0xff]   ;;  %v5255_v61 = vld [vmem:[#allocation2 + $0x200] ss:$196 sps:$4 sm:$0xff]   ;;  %v5260_v41 = vld [vmem:[#allocation2 + $0x74] ss:$196 sps:$4 sm:$0xff]  }
 0x658   :  { %3467 = vmatprep.mubr.bf16.mxu0 %v6466_v21  ;;  %3508 = vmatprep.mubr.bf16.mxu1 %v6466_v21  ;;  %v5263_v43 = vld [vmem:[#allocation2 + $0x7c] ss:$196 sps:$4 sm:$0xff]   ;;  %v5258_v24 = vld [vmem:[#allocation2 + $0x70] ss:$196 sps:$4 sm:$0xff]   ;;  %v5264_v3 = vld [vmem:[#allocation2 + $0x208] ss:$196 sps:$4 sm:$0xff]  }
 0x659   :  { %v5261_v46 = vld [vmem:[#allocation2 + $0x78] ss:$196 sps:$4 sm:$0xff]   ;;  %v5266_v60 = vld [vmem:[#allocation2 + $0x20c] ss:$196 sps:$4 sm:$0xff]   ;;  %v5272_v32 = vld [vmem:[#allocation2 + $0x84] ss:$196 sps:$4 sm:$0xff]  }
 0x65a   :  { %3450 = vmatpush1.bf16.msra.mxu0 %v5198_v45  ;;  %3491 = vmatpush1.bf16.msra.mxu1 %v5201_v28  ;;  %v5269_v23 = vld [vmem:[#allocation2 + $0x214] ss:$196 sps:$4 sm:$0xff]   ;;  %v5275_v0 = vld [vmem:[#allocation2 + $0x8c] ss:$196 sps:$4 sm:$0xff]   ;;  %v5270_v47 = vld [vmem:[#allocation2 + $0x80] ss:$196 sps:$4 sm:$0xff]  }
 0x65b   :  { %3529 = vmatprep.subr.bf16.mxu0 %v5206_v29  ;;  %3570 = vmatprep.subr.bf16.mxu1 %v5209_v52  ;;  %v5267_v50 = vld [vmem:[#allocation2 + $0x210] ss:$196 sps:$4 sm:$0xff]   ;;  %v5273_v15 = vld [vmem:[#allocation2 + $0x88] ss:$196 sps:$4 sm:$0xff]   ;;  %v5278_v54 = vld [vmem:[#allocation2 + $0x21c] ss:$196 sps:$4 sm:$0xff]  }
 0x65c   :  { %v5281_v25 = vld [vmem:[#allocation2 + $0x224] ss:$196 sps:$4 sm:$0xff]   ;;  %v5276_v9 = vld [vmem:[#allocation2 + $0x218] ss:$196 sps:$4 sm:$0xff]   ;;  %v5282_v27 = vld [vmem:[#allocation2 + $0x90] ss:$196 sps:$4 sm:$0xff]  }
 0x65d   :  { %4920 = vmatmul.mubr.msk.bf16.vlgmr.msra.gmra.mxu0 %vm2012_vm3, %v6206_v5  ;;  %4921 = vmatmul.mubr.msk.bf16.vlgmr.msra.gmra.mxu1 %vm2012_vm3, %v6206_v5  ;;  %v5279_v2 = vld [vmem:[#allocation2 + $0x220] ss:$196 sps:$4 sm:$0xff]   ;;  %v5284_v4 = vld [vmem:[#allocation2 + $0x94] ss:$196 sps:$4 sm:$0xff]   ;;  %v5290_v6 = vld [vmem:[#allocation2 + $0x22c] ss:$196 sps:$4 sm:$0xff]  }
 0x65e   :  { %3530 = vmatpush1.bf16.msra.mxu0 %v5204_v30  ;;  %3571 = vmatpush1.bf16.msra.mxu1 %v5207_v7  ;;  %v5287_v58 = vld [vmem:[#allocation2 + $0x9c] ss:$196 sps:$4 sm:$0xff]   ;;  %v5293_v51 = vld [vmem:[#allocation2 + $0x234] ss:$196 sps:$4 sm:$0xff]   ;;  %v5288_v44 = vld [vmem:[#allocation2 + $0x228] ss:$196 sps:$4 sm:$0xff]  }
 0x65f   :  { %3531 = vmatprep.subr.bf16.mxu0 %v5212_v8  ;;  %3572 = vmatprep.subr.bf16.mxu1 %v5215_v18  ;;  %v5285_v13 = vld [vmem:[#allocation2 + $0x98] ss:$196 sps:$4 sm:$0xff]   ;;  %v5291_v45 = vld [vmem:[#allocation2 + $0x230] ss:$196 sps:$4 sm:$0xff]   ;;  %v5296_v28 = vld [vmem:[#allocation2 + $0xa4] ss:$196 sps:$4 sm:$0xff]  }
 0x660   :  { %3549 = vmatprep.mubr.bf16.mxu0 %v6466_v21  ;;  %3590 = vmatprep.mubr.bf16.mxu1 %v6466_v21  ;;  %v5299_v29 = vld [vmem:[#allocation2 + $0xac] ss:$196 sps:$4 sm:$0xff]   ;;  %v5294_v52 = vld [vmem:[#allocation2 + $0xa0] ss:$196 sps:$4 sm:$0xff]   ;;  %v5300_v18 = vld [vmem:[#allocation2 + $0x238] ss:$196 sps:$4 sm:$0xff]  }
 0x661   :  { %v5297_v30 = vld [vmem:[#allocation2 + $0xa8] ss:$196 sps:$4 sm:$0xff]   ;;  %v5302_v7 = vld [vmem:[#allocation2 + $0x23c] ss:$196 sps:$4 sm:$0xff]   ;;  %s4646_s13 = sshll.u32 %s5387_s6, 4  ;;  %s4647_s13 = int_to_ptr.vmem [resolvable:$true] %s4646_s13 }
 0x662   :  { %3532 = vmatpush1.bf16.msra.mxu0 %v5210_v53  ;;  %3573 = vmatpush1.bf16.msra.mxu1 %v5213_v57  ;;  %v5305_v8 = vld [vmem:[#allocation2 + $0x244] ss:$196 sps:$4 sm:$0xff]   ;;  %v5308_v57 = vld [vmem:[#allocation2 + $0xb4] ss:$196 sps:$4 sm:$0xff]   ;;  %s5334_s14 = scalar_lea.vmem %s4647_s13, 32  ;;  %p5339_p6 = scmp.lt.s32.totalorder %s4647_s13, %s4647_s13 }
 0x663   :  { %3611 = vmatprep.subr.bf16.mxu0 %v5218_v39  ;;  %3652 = vmatprep.subr.bf16.mxu1 %v5221_v22  ;;  %v5303_v53 = vld [vmem:[#allocation2 + $0x240] ss:$196 sps:$4 sm:$0xff]   ;;  %v5306_v22 = vld [vmem:[#allocation2 + $0xb0] ss:$196 sps:$4 sm:$0xff]   ;;  %p5335_p5 = scmp.ne.s32.totalorder %s4647_s13, %s5334_s14  ;;  %p5340_p7 = scmp.lt.s32.totalorder %s5334_s14, %s5334_s14 }
 0x664   :  { %v5311_v39 = vld [vmem:[#allocation2 + $0xbc] ss:$196 sps:$4 sm:$0xff]  }
 0x665   :  { %4922 = vmatmul.mubr.msk.bf16.vlgmr.msra.gmra.mxu0 %vm2012_vm3, %v6206_v5  ;;  %4923 = vmatmul.mubr.msk.bf16.vlgmr.msra.gmra.mxu1 %vm2012_vm3, %v6206_v5  ;;  %p5341_p8 = por %p5340_p7, %p5339_p6 }
 0x666   :  { %3612 = vmatpush1.bf16.msra.mxu0 %v5216_v55  ;;  %3653 = vmatpush1.bf16.msra.mxu1 %v5219_v16  ;;  %v5309_v55 = vld [vmem:[#allocation2 + $0xb8] ss:$196 sps:$4 sm:$0xff]   ;;  %v5312_v16 = vld [vmem:[#allocation2 + $0x248] ss:$196 sps:$4 sm:$0xff]  }
 0x667   :  { %3613 = vmatprep.subr.bf16.mxu0 %v5224_v35  ;;  %3654 = vmatprep.subr.bf16.mxu1 %v5227_v63  ;;  %v5313_v35 = vld [vmem:[#allocation2 + $0xc0] ss:$196 sps:$4 sm:$0xff]   ;;  %p5342_p9 = pnand %p5341_p8, %p5335_p5 }
 0x668   :  { %3631 = vmatprep.mubr.bf16.mxu0 %v6466_v21  ;;  %3672 = vmatprep.mubr.bf16.mxu1 %v6466_v21 }
 0x66a   :  { %3614 = vmatpush1.bf16.msra.mxu0 %v5222_v1  ;;  %3655 = vmatpush1.bf16.msra.mxu1 %v5225_v17 }
 0x66b   :  { %3693 = vmatprep.subr.bf16.mxu0 %v5230_v12  ;;  %3734 = vmatprep.subr.bf16.mxu1 %v5233_v48 }
 0x66d   :  { %4924 = vmatmul.mubr.msk.bf16.vlgmr.msra.gmra.mxu0 %vm2012_vm3, %v6206_v5  ;;  %4925 = vmatmul.mubr.msk.bf16.vlgmr.msra.gmra.mxu1 %vm2012_vm3, %v6206_v5 }
 0x66e   :  { %3694 = vmatpush1.bf16.msra.mxu0 %v5228_v49  ;;  %3735 = vmatpush1.bf16.msra.mxu1 %v5231_v26 }
 0x66f   :  { %3695 = vmatprep.subr.bf16.mxu0 %v5236_v36  ;;  %3736 = vmatprep.subr.bf16.mxu1 %v5239_v33 }
 0x670   :  { %3713 = vmatprep.mubr.bf16.mxu0 %v6466_v21  ;;  %3754 = vmatprep.mubr.bf16.mxu1 %v6466_v21 }
 0x672   :  { %3696 = vmatpush1.bf16.msra.mxu0 %v5234_v34  ;;  %3737 = vmatpush1.bf16.msra.mxu1 %v5237_v62 }
 0x673   :  { %3775 = vmatprep.subr.bf16.mxu0 %v5242_v10  ;;  %3816 = vmatprep.subr.bf16.mxu1 %v5245_v19 }
 0x675   :  { %4926 = vmatmul.mubr.msk.bf16.vlgmr.msra.gmra.mxu0 %vm2012_vm3, %v6206_v5  ;;  %4927 = vmatmul.mubr.msk.bf16.vlgmr.msra.gmra.mxu1 %vm2012_vm3, %v6206_v5 }
 0x676   :  { %3776 = vmatpush1.bf16.msra.mxu0 %v5240_v59  ;;  %3817 = vmatpush1.bf16.msra.mxu1 %v5243_v37 }
 0x677   :  { %3777 = vmatprep.subr.bf16.mxu0 %v5248_v11  ;;  %3818 = vmatprep.subr.bf16.mxu1 %v5251_v14 }
 0x678   :  { %3795 = vmatprep.mubr.bf16.mxu0 %v6466_v21  ;;  %3836 = vmatprep.mubr.bf16.mxu1 %v6466_v21 }
 0x67a   :  { %3778 = vmatpush1.bf16.msra.mxu0 %v5246_v38  ;;  %3819 = vmatpush1.bf16.msra.mxu1 %v5249_v31 }
 0x67b   :  { %3857 = vmatprep.subr.bf16.mxu0 %v5254_v42  ;;  %3898 = vmatprep.subr.bf16.mxu1 %v5257_v20 }
 0x67d   :  { %4928 = vmatmul.mubr.msk.bf16.vlgmr.msra.gmra.mxu0 %vm2012_vm3, %v6206_v5  ;;  %4929 = vmatmul.mubr.msk.bf16.vlgmr.msra.gmra.mxu1 %vm2012_vm3, %v6206_v5 }
 0x67e   :  { %3858 = vmatpush1.bf16.msra.mxu0 %v5252_v40  ;;  %3899 = vmatpush1.bf16.msra.mxu1 %v5255_v61 }
 0x67f   :  { %3859 = vmatprep.subr.bf16.mxu0 %v5260_v41  ;;  %3900 = vmatprep.subr.bf16.mxu1 %v5263_v43 }
 0x680   :  { %3877 = vmatprep.mubr.bf16.mxu0 %v6466_v21  ;;  %3918 = vmatprep.mubr.bf16.mxu1 %v6466_v21 }
 0x682   :  { %3860 = vmatpush1.bf16.msra.mxu0 %v5258_v24  ;;  %3901 = vmatpush1.bf16.msra.mxu1 %v5261_v46 }
 0x683   :  { %3939 = vmatprep.subr.bf16.mxu0 %v5266_v60  ;;  %3980 = vmatprep.subr.bf16.mxu1 %v5269_v23 }
 0x685   :  { %4930 = vmatmul.mubr.msk.bf16.vlgmr.msra.gmra.mxu0 %vm2012_vm3, %v6206_v5  ;;  %4931 = vmatmul.mubr.msk.bf16.vlgmr.msra.gmra.mxu1 %vm2012_vm3, %v6206_v5 }
 0x686   :  { %3940 = vmatpush1.bf16.msra.mxu0 %v5264_v3  ;;  %3981 = vmatpush1.bf16.msra.mxu1 %v5267_v50 }
 0x687   :  { %3941 = vmatprep.subr.bf16.mxu0 %v5272_v32  ;;  %3982 = vmatprep.subr.bf16.mxu1 %v5275_v0 }
 0x688   :  { %3959 = vmatprep.mubr.bf16.mxu0 %v6466_v21  ;;  %4000 = vmatprep.mubr.bf16.mxu1 %v6466_v21 }
 0x68a   :  { %3942 = vmatpush1.bf16.msra.mxu0 %v5270_v47  ;;  %3983 = vmatpush1.bf16.msra.mxu1 %v5273_v15 }
 0x68b   :  { %4021 = vmatprep.subr.bf16.mxu0 %v5278_v54  ;;  %4062 = vmatprep.subr.bf16.mxu1 %v5281_v25 }
 0x68d   :  { %4932 = vmatmul.mubr.msk.bf16.vlgmr.msra.gmra.mxu0 %vm2012_vm3, %v6206_v5  ;;  %4933 = vmatmul.mubr.msk.bf16.vlgmr.msra.gmra.mxu1 %vm2012_vm3, %v6206_v5 }
 0x68e   :  { %4022 = vmatpush1.bf16.msra.mxu0 %v5276_v9  ;;  %4063 = vmatpush1.bf16.msra.mxu1 %v5279_v2 }
 0x68f   :  { %4023 = vmatprep.subr.bf16.mxu0 %v5284_v4  ;;  %4064 = vmatprep.subr.bf16.mxu1 %v5287_v58 }
 0x690   :  { %4041 = vmatprep.mubr.bf16.mxu0 %v6466_v21  ;;  %4082 = vmatprep.mubr.bf16.mxu1 %v6466_v21 }
 0x692   :  { %4024 = vmatpush1.bf16.msra.mxu0 %v5282_v27  ;;  %4065 = vmatpush1.bf16.msra.mxu1 %v5285_v13 }
 0x693   :  { %4103 = vmatprep.subr.bf16.mxu0 %v5290_v6  ;;  %4144 = vmatprep.subr.bf16.mxu1 %v5293_v51 }
 0x695   :  { %4934 = vmatmul.mubr.msk.bf16.vlgmr.msra.gmra.mxu0 %vm2012_vm3, %v6206_v5  ;;  %4935 = vmatmul.mubr.msk.bf16.vlgmr.msra.gmra.mxu1 %vm2012_vm3, %v6206_v5 }
 0x696   :  { %4104 = vmatpush1.bf16.msra.mxu0 %v5288_v44  ;;  %4145 = vmatpush1.bf16.msra.mxu1 %v5291_v45 }
 0x697   :  { %4105 = vmatprep.subr.bf16.mxu0 %v5296_v28  ;;  %4146 = vmatprep.subr.bf16.mxu1 %v5299_v29 }
 0x698   :  { %4123 = vmatprep.mubr.bf16.mxu0 %v6466_v21  ;;  %4164 = vmatprep.mubr.bf16.mxu1 %v6466_v21 }
 0x69a   :  { %4106 = vmatpush1.bf16.msra.mxu0 %v5294_v52  ;;  %4147 = vmatpush1.bf16.msra.mxu1 %v5297_v30 }
 0x69b   :  { %4185 = vmatprep.subr.bf16.mxu0 %v5302_v7  ;;  %4226 = vmatprep.subr.bf16.mxu1 %v5305_v8 }
 0x69d   :  { %4936 = vmatmul.mubr.msk.bf16.vlgmr.msra.gmra.mxu0 %vm2012_vm3, %v6206_v5  ;;  %4937 = vmatmul.mubr.msk.bf16.vlgmr.msra.gmra.mxu1 %vm2012_vm3, %v6206_v5 }
 0x69e   :  { %4186 = vmatpush1.bf16.msra.mxu0 %v5300_v18  ;;  %4227 = vmatpush1.bf16.msra.mxu1 %v5303_v53 }
 0x69f   :  { %4187 = vmatprep.subr.bf16.mxu0 %v5308_v57  ;;  %4228 = vmatprep.subr.bf16.mxu1 %v5311_v39 }
 0x6a0   :  { %4205 = vmatprep.mubr.bf16.mxu0 %v6466_v21  ;;  %4246 = vmatprep.mubr.bf16.mxu1 %v6466_v21 }
 0x6a2   :  { %4188 = vmatpush1.bf16.msra.mxu0 %v5306_v22  ;;  %4229 = vmatpush1.bf16.msra.mxu1 %v5309_v55 }
 0x6a3   :  { %5068 = vmatprep.subr.bf16.mxu0 %v5382_v56 }
 0x6a5   :  { %4938 = vmatmul.mubr.msk.bf16.vlgmr.msra.gmra.mxu0 %vm2012_vm3, %v6206_v5  ;;  %4939 = vmatmul.mubr.msk.bf16.vlgmr.msra.gmra.mxu1 %vm2012_vm3, %v6206_v5 }
 0x6a6   :  { %5069 = vmatpush3.bf16.msra.mxu0 %v5312_v16  ;;  %5072 = vmatprep.mubr.msk.bf16.mxu0 %vm5383_vm2, %v5382_v56 }
 0x6a7   :  { %5070 = vmatprep.subr.bf16.mxu0 %v5382_v56 }
 0x6aa   :  { %5071 = vmatpush3.bf16.msra.mxu0 %v5313_v35 }
 0x6ad   :  { %5073 = vmatmul.mubr.msk.bf16.vlgmr.msra.gmra.mxu0 %vm2012_vm3, %v6206_v5 }
 0x6ae   :  { %5345 = shalt.err (!%p5342_p9)
}
 0x6af   :  { %4649 = dma.vmem_to_hbm [thread:$0]  %s4647_s13, 32, %s6409_s8, [#allocation7]   ;;  %v2531_v21 = vlaneseq  ;;  %v2517_v5 = vld [vmem:[%s6406_s5] sm:$0xff]  ;;  %v5388_v48 = vmov 1983009808   ;;  %v2518_v45 = vld [vmem:[%s6406_s5 + $0x8] sm:$0xff] }
 0x6b0   :  { %v4396_v49 = vunpack.c.l.s4 %v5388_v48  ;;  %s5389_s27 = smov [#allocation4]  }
 0x6b1   :  { %v2532_v56 = vshrl.u32 %v2531_v21, 7  ;;  %s4636_s28 = sshll.u32 %s5389_s27, 4  ;;  %s4637_s28 = int_to_ptr.vmem [resolvable:$true] %s4636_s28 }
 0x6b2   :  { %v4397_v19 = vunpack.c.0.s8 %v4396_v49  ;;  %s5354_s29 = scalar_lea.vmem %s4637_s28, 1568  ;;  %p5359_p11 = scmp.lt.s32.totalorder %s4637_s28, %s4637_s28 }
 0x6b3   :  { %v6287_v63 = vsub.s32 0, %v2532_v56  ;;  %v6289_v1 = vsub.s32 2, %v2532_v56  ;;  %v6294_v17 = vsub.s32 1, %v2532_v56  ;;  %v6296_v12 = vsub.s32 3, %v2532_v56  ;;  %p5355_p10 = scmp.ne.s32.totalorder %s4637_s28, %s5354_s29  ;;  %p5360_p12 = scmp.lt.s32.totalorder %s5354_s29, %s5354_s29 }
 0x6b4   :  { %v6302_v59 = vsub.s32 4, %v2532_v56  ;;  %v6304_v31 = vsub.s32 6, %v2532_v56  ;;  %v6306_v40 = vsub.s32 5, %v2532_v56  ;;  %v6308_v61 = vsub.s32 %v4397_v19, %v2532_v56 }
 0x6b5   :  { %v2534_v26 = vrot.slane %v2517_v5, %v6287_v63  ;;  %v2542_v36 = vrot.slane %v2517_v5, %v6289_v1  ;;  %v2538_v33 = vrot.slane %v2517_v5, %v6294_v17  ;;  %v2546_v34 = vrot.slane %v2517_v5, %v6296_v12  ;;  %p5361_p13 = por %p5360_p12, %p5359_p11 }
 0x6b6   :  { %v2550_v24 = vrot.slane %v2517_v5, %v6302_v59  ;;  %v6311_v46 = vsub.s32 7, %v2532_v56  ;;  %v2558_v47 = vrot.slane %v2517_v5, %v6304_v31  ;;  %v2554_v25 = vrot.slane %v2517_v5, %v6306_v40 }
 0x6b7   :  { %v2566_v53 = vrot.slane %v2518_v45, %v6287_v63  ;;  %v2574_v57 = vrot.slane %v2518_v45, %v6289_v1  ;;  %v2570_v21 = vrot.slane %v2518_v45, %v6294_v17  ;;  %v2578_v56 = vrot.slane %v2518_v45, %v6296_v12  ;;  %p5362_p0 = pnand %p5361_p13, %p5355_p10 }
 0x6b8   :  { %v2562_v4 = vrot.slane %v2517_v5, %v6311_v46 }
 0x70d   :  { %v3305_v62 = vpop.f32.mrf.mxu0  ;;  %v3346_v10 = vpop.f32.mrf.mxu1 }
 0x70e   :  { %v3306_v37 = vadd.f32 %v3305_v62, %v2534_v26  ;;  %v3347_v11 = vadd.f32 %v3346_v10, %v2542_v36 }
 0x70f   :  { %v3307_v14 = vpop.f32.mrf.mxu0  ;;  %v3348_v38 = vpop.f32.mrf.mxu1 }
 0x710   :  { %v3308_v42 = vadd.f32 %v3307_v14, %v2538_v33  ;;  %v3349_v20 = vadd.f32 %v3348_v38, %v2546_v34  ;;  %v4295_v60 = vmax.f32 %v3306_v37, 0.0  ;;  %v4297_v23 = vmax.f32 %v3347_v11, 0.0 }
 0x711   :  { %v3309_v41 = vpop.f32.mrf.mxu0  ;;  %v3350_v43 = vpop.f32.mrf.mxu1 }
 0x712   :  { %v4296_v3 = vmax.f32 %v3308_v42, 0.0  ;;  %v4298_v50 = vmax.f32 %v3349_v20, 0.0  ;;  %v2582_v42 = vrot.slane %v2518_v45, %v6302_v59 }
 0x713   :  { %v3310_v32 = vpop.f32.mrf.mxu0  ;;  %v3351_v0 = vpop.f32.mrf.mxu1 }
 0x714   :  { %v4393_v15 = vcombine.low %v4295_v60, %v4296_v3  ;;  %v4394_v54 = vcombine.low %v4297_v23, %v4298_v50  ;;  %v2590_v3 = vrot.slane %v2518_v45, %v6304_v31  ;;  %v2586_v0 = vrot.slane %v2518_v45, %v6306_v40 }
 0x715   :  { %v3387_v9 = vpop.f32.mrf.mxu0  ;;  %v3428_v2 = vpop.f32.mrf.mxu1 }
 0x716   :  { %v4401_v58 = vrot.slane %v4393_v15, %v6308_v61  ;;  %v4408_v27 = vrot.slane %v4394_v54, %v6308_v61  ;;  %v3388_v13 = vadd.f32 %v3387_v9, %v2550_v24  ;;  %v3429_v6 = vadd.f32 %v3428_v2, %v2558_v47 }
 0x717   :  { %v3389_v51 = vpop.f32.mrf.mxu0  ;;  %v3430_v44 = vpop.f32.mrf.mxu1  ;;  %v2594_v54 = vrot.slane %v2518_v45, %v6311_v46 }
 0x718   :  { %v4409_v28 = vcombine.low %v4401_v58, %v4408_v27  ;;  %v3390_v29 = vadd.f32 %v3389_v51, %v2554_v25  ;;  %v3431_v52 = vadd.f32 %v3430_v44, %v2562_v4  ;;  %v4299_v8 = vmax.f32 %v3388_v13, 0.0  ;;  %v2519_v13 = vld [vmem:[%s6406_s5 + $0x10] sm:$0xff] }
 0x719   :  { %v3391_v30 = vpop.f32.mrf.mxu0  ;;  %v3432_v7 = vpop.f32.mrf.mxu1  ;;  %v4301_v39 = vmax.f32 %v3429_v6, 0.0 }
 0x71a   :  { %4617 = vst [vmem:[#allocation4] sm:$0xff] %v4409_v28  ;;  %v4300_v18 = vmax.f32 %v3390_v29, 0.0  ;;  %v4302_v22 = vmax.f32 %v3431_v52, 0.0  ;;  %v2598_v30 = vrot.slane %v2519_v13, %v6287_v63  ;;  %v2606_v7 = vrot.slane %v2519_v13, %v6289_v1 }
 0x71b   :  { %v3392_v55 = vpop.f32.mrf.mxu0  ;;  %v3433_v16 = vpop.f32.mrf.mxu1 }
 0x71c   :  { %v4410_v35 = vcombine.low %v4299_v8, %v4300_v18  ;;  %v4411_v5 = vcombine.low %v4301_v39, %v4302_v22  ;;  %v2602_v22 = vrot.slane %v2519_v13, %v6294_v17  ;;  %v2610_v55 = vrot.slane %v2519_v13, %v6296_v12 }
 0x71d   :  { %v3469_v48 = vpop.f32.mrf.mxu0  ;;  %v3510_v49 = vpop.f32.mrf.mxu1 }
 0x71e   :  { %v4418_v26 = vrot.slane %v4410_v35, %v6308_v61  ;;  %v3470_v36 = vadd.f32 %v3469_v48, %v2566_v53  ;;  %v3511_v33 = vadd.f32 %v3510_v49, %v2574_v57  ;;  %v4425_v34 = vrot.slane %v4411_v5, %v6308_v61 }
 0x71f   :  { %v3471_v62 = vpop.f32.mrf.mxu0  ;;  %v3512_v10 = vpop.f32.mrf.mxu1 }
 0x720   :  { %v3472_v19 = vadd.f32 %v3471_v62, %v2570_v21  ;;  %v3513_v37 = vadd.f32 %v3512_v10, %v2578_v56  ;;  %v4426_v11 = vcombine.low %v4418_v26, %v4425_v34  ;;  %v4303_v20 = vmax.f32 %v3470_v36, 0.0 }
 0x721   :  { %v3473_v14 = vpop.f32.mrf.mxu0  ;;  %v3514_v38 = vpop.f32.mrf.mxu1  ;;  %v4305_v41 = vmax.f32 %v3511_v33, 0.0 }
 0x722   :  { %v4304_v43 = vmax.f32 %v3472_v19, 0.0  ;;  %v4306_v24 = vmax.f32 %v3513_v37, 0.0  ;;  %4618 = vst [vmem:[#allocation4 + $0x8] sm:$0xff] %v4426_v11  ;;  %v2614_v37 = vrot.slane %v2519_v13, %v6302_v59 }
 0x723   :  { %v3474_v60 = vpop.f32.mrf.mxu0  ;;  %v3515_v23 = vpop.f32.mrf.mxu1 }
 0x724   :  { %v4427_v50 = vcombine.low %v4303_v20, %v4304_v43  ;;  %v4428_v32 = vcombine.low %v4305_v41, %v4306_v24  ;;  %v2622_v43 = vrot.slane %v2519_v13, %v6304_v31  ;;  %v2618_v23 = vrot.slane %v2519_v13, %v6306_v40 }
 0x725   :  { %v3551_v47 = vpop.f32.mrf.mxu0  ;;  %v3592_v15 = vpop.f32.mrf.mxu1 }
 0x726   :  { %v4435_v25 = vrot.slane %v4427_v50, %v6308_v61  ;;  %v4442_v9 = vrot.slane %v4428_v32, %v6308_v61  ;;  %v3552_v2 = vadd.f32 %v3551_v47, %v2582_v42  ;;  %v3593_v4 = vadd.f32 %v3592_v15, %v2590_v3 }
 0x727   :  { %v3553_v58 = vpop.f32.mrf.mxu0  ;;  %v3594_v27 = vpop.f32.mrf.mxu1  ;;  %v2626_v32 = vrot.slane %v2519_v13, %v6311_v46 }
 0x728   :  { %v4443_v6 = vcombine.low %v4435_v25, %v4442_v9  ;;  %v3554_v51 = vadd.f32 %v3553_v58, %v2586_v0  ;;  %v3595_v44 = vadd.f32 %v3594_v27, %v2594_v54  ;;  %v4307_v52 = vmax.f32 %v3552_v2, 0.0  ;;  %v2520_v2 = vld [vmem:[%s6406_s5 + $0x18] sm:$0xff] }
 0x729   :  { %v3555_v28 = vpop.f32.mrf.mxu0  ;;  %v3596_v29 = vpop.f32.mrf.mxu1  ;;  %v4309_v8 = vmax.f32 %v3593_v4, 0.0 }
 0x72a   :  { %4619 = vst [vmem:[#allocation4 + $0x10] sm:$0xff] %v4443_v6  ;;  %v4308_v45 = vmax.f32 %v3554_v51, 0.0  ;;  %v4310_v18 = vmax.f32 %v3595_v44, 0.0  ;;  %v2630_v28 = vrot.slane %v2520_v2, %v6287_v63  ;;  %v2638_v29 = vrot.slane %v2520_v2, %v6289_v1 }
 0x72b   :  { %v3556_v53 = vpop.f32.mrf.mxu0  ;;  %v3597_v57 = vpop.f32.mrf.mxu1 }
 0x72c   :  { %v4444_v39 = vcombine.low %v4307_v52, %v4308_v45  ;;  %v4445_v16 = vcombine.low %v4309_v8, %v4310_v18  ;;  %v2634_v18 = vrot.slane %v2520_v2, %v6294_v17  ;;  %v2642_v53 = vrot.slane %v2520_v2, %v6296_v12 }
 0x72d   :  { %v3633_v35 = vpop.f32.mrf.mxu0  ;;  %v3674_v21 = vpop.f32.mrf.mxu1 }
 0x72e   :  { %v4452_v56 = vrot.slane %v4444_v39, %v6308_v61  ;;  %v3634_v5 = vadd.f32 %v3633_v35, %v2598_v30  ;;  %v3675_v48 = vadd.f32 %v3674_v21, %v2606_v7  ;;  %v4459_v49 = vrot.slane %v4445_v16, %v6308_v61 }
 0x72f   :  { %v3635_v26 = vpop.f32.mrf.mxu0  ;;  %v3676_v36 = vpop.f32.mrf.mxu1 }
 0x730   :  { %v3636_v33 = vadd.f32 %v3635_v26, %v2602_v22  ;;  %v3677_v34 = vadd.f32 %v3676_v36, %v2610_v55  ;;  %v4460_v62 = vcombine.low %v4452_v56, %v4459_v49  ;;  %v4311_v11 = vmax.f32 %v3634_v5, 0.0 }
 0x731   :  { %v3637_v10 = vpop.f32.mrf.mxu0  ;;  %v3678_v19 = vpop.f32.mrf.mxu1  ;;  %v4313_v14 = vmax.f32 %v3675_v48, 0.0 }
 0x732   :  { %v4312_v38 = vmax.f32 %v3636_v33, 0.0  ;;  %v4314_v42 = vmax.f32 %v3677_v34, 0.0  ;;  %4620 = vst [vmem:[#allocation4 + $0x18] sm:$0xff] %v4460_v62  ;;  %v2646_v34 = vrot.slane %v2520_v2, %v6302_v59 }
 0x733   :  { %v3638_v20 = vpop.f32.mrf.mxu0  ;;  %v3679_v41 = vpop.f32.mrf.mxu1 }
 0x734   :  { %v4461_v24 = vcombine.low %v4311_v11, %v4312_v38  ;;  %v4462_v60 = vcombine.low %v4313_v14, %v4314_v42  ;;  %v2654_v38 = vrot.slane %v2520_v2, %v6304_v31  ;;  %v2650_v41 = vrot.slane %v2520_v2, %v6306_v40 }
 0x735   :  { %v3715_v3 = vpop.f32.mrf.mxu0  ;;  %v3756_v50 = vpop.f32.mrf.mxu1 }
 0x736   :  { %v4469_v0 = vrot.slane %v4461_v24, %v6308_v61  ;;  %v4476_v47 = vrot.slane %v4462_v60, %v6308_v61  ;;  %v3716_v15 = vadd.f32 %v3715_v3, %v2614_v37  ;;  %v3757_v54 = vadd.f32 %v3756_v50, %v2622_v43 }
 0x737   :  { %v3717_v25 = vpop.f32.mrf.mxu0  ;;  %v3758_v9 = vpop.f32.mrf.mxu1  ;;  %v2658_v60 = vrot.slane %v2520_v2, %v6311_v46 }
 0x738   :  { %v4477_v4 = vcombine.low %v4469_v0, %v4476_v47  ;;  %v3718_v58 = vadd.f32 %v3717_v25, %v2618_v23  ;;  %v3759_v27 = vadd.f32 %v3758_v9, %v2626_v32  ;;  %v4315_v44 = vmax.f32 %v3716_v15, 0.0  ;;  %v2521_v15 = vld [vmem:[%s6406_s5 + $0x20] sm:$0xff] }
 0x739   :  { %v3719_v6 = vpop.f32.mrf.mxu0  ;;  %v3760_v51 = vpop.f32.mrf.mxu1  ;;  %v4317_v52 = vmax.f32 %v3757_v54, 0.0 }
 0x73a   :  { %4621 = vst [vmem:[#allocation4 + $0x20] sm:$0xff] %v4477_v4  ;;  %v4316_v13 = vmax.f32 %v3718_v58, 0.0  ;;  %v4318_v45 = vmax.f32 %v3759_v27, 0.0  ;;  %v2662_v6 = vrot.slane %v2521_v15, %v6287_v63  ;;  %v2670_v51 = vrot.slane %v2521_v15, %v6289_v1 }
 0x73b   :  { %v3720_v30 = vpop.f32.mrf.mxu0  ;;  %v3761_v7 = vpop.f32.mrf.mxu1 }
 0x73c   :  { %v4478_v8 = vcombine.low %v4315_v44, %v4316_v13  ;;  %v4479_v57 = vcombine.low %v4317_v52, %v4318_v45  ;;  %v2666_v45 = vrot.slane %v2521_v15, %v6294_v17  ;;  %v2674_v30 = vrot.slane %v2521_v15, %v6296_v12 }
 0x73d   :  { %v3797_v39 = vpop.f32.mrf.mxu0  ;;  %v3838_v22 = vpop.f32.mrf.mxu1 }
 0x73e   :  { %v4486_v55 = vrot.slane %v4478_v8, %v6308_v61  ;;  %v3798_v16 = vadd.f32 %v3797_v39, %v2630_v28  ;;  %v3839_v35 = vadd.f32 %v3838_v22, %v2638_v29  ;;  %v4493_v21 = vrot.slane %v4479_v57, %v6308_v61 }
 0x73f   :  { %v3799_v56 = vpop.f32.mrf.mxu0  ;;  %v3840_v5 = vpop.f32.mrf.mxu1 }
 0x740   :  { %v3800_v48 = vadd.f32 %v3799_v56, %v2634_v18  ;;  %v3841_v49 = vadd.f32 %v3840_v5, %v2642_v53  ;;  %v4494_v26 = vcombine.low %v4486_v55, %v4493_v21  ;;  %v4319_v62 = vmax.f32 %v3798_v16, 0.0 }
 0x741   :  { %v3801_v36 = vpop.f32.mrf.mxu0  ;;  %v3842_v33 = vpop.f32.mrf.mxu1  ;;  %v4321_v10 = vmax.f32 %v3839_v35, 0.0 }
 0x742   :  { %v4320_v19 = vmax.f32 %v3800_v48, 0.0  ;;  %v4322_v37 = vmax.f32 %v3841_v49, 0.0  ;;  %4622 = vst [vmem:[#allocation4 + $0x28] sm:$0xff] %v4494_v26  ;;  %v2678_v49 = vrot.slane %v2521_v15, %v6302_v59 }
 0x743   :  { %v3802_v11 = vpop.f32.mrf.mxu0  ;;  %v3843_v14 = vpop.f32.mrf.mxu1 }
 0x744   :  { %v4495_v42 = vcombine.low %v4319_v62, %v4320_v19  ;;  %v4496_v20 = vcombine.low %v4321_v10, %v4322_v37  ;;  %v2686_v19 = vrot.slane %v2521_v15, %v6304_v31  ;;  %v2682_v14 = vrot.slane %v2521_v15, %v6306_v40 }
 0x745   :  { %v3879_v43 = vpop.f32.mrf.mxu0  ;;  %v3920_v24 = vpop.f32.mrf.mxu1 }
 0x746   :  { %v4503_v23 = vrot.slane %v4495_v42, %v6308_v61  ;;  %v4510_v3 = vrot.slane %v4496_v20, %v6308_v61  ;;  %v3880_v50 = vadd.f32 %v3879_v43, %v2646_v34  ;;  %v3921_v32 = vadd.f32 %v3920_v24, %v2654_v38 }
 0x747   :  { %v3881_v0 = vpop.f32.mrf.mxu0  ;;  %v3922_v47 = vpop.f32.mrf.mxu1  ;;  %v2690_v20 = vrot.slane %v2521_v15, %v6311_v46 }
 0x748   :  { %v4511_v54 = vcombine.low %v4503_v23, %v4510_v3  ;;  %v3882_v25 = vadd.f32 %v3881_v0, %v2650_v41  ;;  %v3923_v9 = vadd.f32 %v3922_v47, %v2658_v60  ;;  %v4323_v27 = vmax.f32 %v3880_v50, 0.0  ;;  %v2522_v50 = vld [vmem:[%s6406_s5 + $0x28] sm:$0xff] }
 0x749   :  { %v3883_v4 = vpop.f32.mrf.mxu0  ;;  %v3924_v58 = vpop.f32.mrf.mxu1  ;;  %v4325_v44 = vmax.f32 %v3921_v32, 0.0 }
 0x74a   :  { %4623 = vst [vmem:[#allocation4 + $0x30] sm:$0xff] %v4511_v54  ;;  %v4324_v2 = vmax.f32 %v3882_v25, 0.0  ;;  %v4326_v13 = vmax.f32 %v3923_v9, 0.0  ;;  %v2694_v4 = vrot.slane %v2522_v50, %v6287_v63  ;;  %v2702_v58 = vrot.slane %v2522_v50, %v6289_v1 }
 0x74b   :  { %v3884_v28 = vpop.f32.mrf.mxu0  ;;  %v3925_v29 = vpop.f32.mrf.mxu1 }
 0x74c   :  { %v4512_v52 = vcombine.low %v4323_v27, %v4324_v2  ;;  %v4513_v7 = vcombine.low %v4325_v44, %v4326_v13  ;;  %v2698_v13 = vrot.slane %v2522_v50, %v6294_v17  ;;  %v2706_v28 = vrot.slane %v2522_v50, %v6296_v12 }
 0x74d   :  { %v3961_v8 = vpop.f32.mrf.mxu0  ;;  %v4002_v18 = vpop.f32.mrf.mxu1  ;;  %v2710_v17 = vrot.slane %v2522_v50, %v6302_v59 }
 0x74e   :  { %v4520_v53 = vrot.slane %v4512_v52, %v6308_v61  ;;  %v3962_v57 = vadd.f32 %v3961_v8, %v2662_v6  ;;  %v4003_v39 = vadd.f32 %v4002_v18, %v2670_v51  ;;  %v4527_v22 = vrot.slane %v4513_v7, %v6308_v61 }
 0x74f   :  { %v3963_v55 = vpop.f32.mrf.mxu0  ;;  %v4004_v16 = vpop.f32.mrf.mxu1 }
 0x750   :  { %v3964_v35 = vadd.f32 %v3963_v55, %v2666_v45  ;;  %v4005_v21 = vadd.f32 %v4004_v16, %v2674_v30  ;;  %v4528_v56 = vcombine.low %v4520_v53, %v4527_v22  ;;  %v4327_v26 = vmax.f32 %v3962_v57, 0.0 }
 0x751   :  { %v3965_v5 = vpop.f32.mrf.mxu0  ;;  %v4006_v48 = vpop.f32.mrf.mxu1  ;;  %v4329_v36 = vmax.f32 %v4003_v39, 0.0 }
 0x752   :  { %v4328_v33 = vmax.f32 %v3964_v35, 0.0  ;;  %v4330_v34 = vmax.f32 %v4005_v21, 0.0  ;;  %4624 = vst [vmem:[#allocation4 + $0x38] sm:$0xff] %v4528_v56  ;;  %v2718_v48 = vrot.slane %v2522_v50, %v6304_v31 }
 0x753   :  { %v3966_v62 = vpop.f32.mrf.mxu0  ;;  %v4007_v10 = vpop.f32.mrf.mxu1 }
 0x754   :  { %v4529_v37 = vcombine.low %v4327_v26, %v4328_v33  ;;  %v4530_v11 = vcombine.low %v4329_v36, %v4330_v34  ;;  %v2714_v36 = vrot.slane %v2522_v50, %v6306_v40  ;;  %v2722_v62 = vrot.slane %v2522_v50, %v6311_v46 }
 0x755   :  { %v4043_v38 = vpop.f32.mrf.mxu0  ;;  %v4084_v42 = vpop.f32.mrf.mxu1 }
 0x756   :  { %v4537_v41 = vrot.slane %v4529_v37, %v6308_v61  ;;  %v4544_v43 = vrot.slane %v4530_v11, %v6308_v61  ;;  %v4044_v24 = vadd.f32 %v4043_v38, %v2678_v49  ;;  %v4085_v60 = vadd.f32 %v4084_v42, %v2686_v19 }
 0x757   :  { %v4045_v23 = vpop.f32.mrf.mxu0  ;;  %v4086_v3 = vpop.f32.mrf.mxu1 }
 0x758   :  { %v4545_v32 = vcombine.low %v4537_v41, %v4544_v43  ;;  %v4046_v0 = vadd.f32 %v4045_v23, %v2682_v14  ;;  %v4087_v47 = vadd.f32 %v4086_v3, %v2690_v20  ;;  %v4331_v9 = vmax.f32 %v4044_v24, 0.0  ;;  %v4817_v3 = vld [vmem:[%s6406_s5 + $0x30] ss:$0 sm:$0xff] }
 0x759   :  { %v4047_v54 = vpop.f32.mrf.mxu0  ;;  %v4088_v25 = vpop.f32.mrf.mxu1  ;;  %v4333_v27 = vmax.f32 %v4085_v60, 0.0 }
 0x75a   :  { %4625 = vst [vmem:[#allocation4 + $0x40] sm:$0xff] %v4545_v32  ;;  %v4332_v15 = vmax.f32 %v4046_v0, 0.0  ;;  %v4334_v2 = vmax.f32 %v4087_v47, 0.0 }
 0x75b   :  { %v4048_v6 = vpop.f32.mrf.mxu0  ;;  %v4089_v51 = vpop.f32.mrf.mxu1 }
 0x75c   :  { %v4546_v44 = vcombine.low %v4331_v9, %v4332_v15  ;;  %v4547_v29 = vcombine.low %v4333_v27, %v4334_v2 }
 0x75d   :  { %v4125_v52 = vpop.f32.mrf.mxu0  ;;  %v4166_v45 = vpop.f32.mrf.mxu1 }
 0x75e   :  { %v4554_v30 = vrot.slane %v4546_v44, %v6308_v61  ;;  %v4126_v7 = vadd.f32 %v4125_v52, %v2694_v4  ;;  %v4167_v8 = vadd.f32 %v4166_v45, %v2702_v58  ;;  %v4561_v63 = vrot.slane %v4547_v29, %v6308_v61 }
 0x75f   :  { %v4127_v18 = vpop.f32.mrf.mxu0  ;;  %v4168_v1 = vpop.f32.mrf.mxu1 }
 0x760   :  { %v4128_v53 = vadd.f32 %v4127_v18, %v2698_v13  ;;  %v4169_v57 = vadd.f32 %v4168_v1, %v2706_v28  ;;  %v4562_v39 = vcombine.low %v4554_v30, %v4561_v63  ;;  %v4335_v16 = vmax.f32 %v4126_v7, 0.0 }
 0x761   :  { %v4129_v22 = vpop.f32.mrf.mxu0  ;;  %v4170_v55 = vpop.f32.mrf.mxu1  ;;  %v4337_v12 = vmax.f32 %v4167_v8, 0.0 }
 0x762   :  { %v4336_v35 = vmax.f32 %v4128_v53, 0.0  ;;  %v4338_v21 = vmax.f32 %v4169_v57, 0.0  ;;  %4626 = vst [vmem:[#allocation4 + $0x48] sm:$0xff] %v4562_v39 }
 0x763   :  { %v4130_v56 = vpop.f32.mrf.mxu0  ;;  %v4171_v5 = vpop.f32.mrf.mxu1 }
 0x764   :  { %v4563_v49 = vcombine.low %v4335_v16, %v4336_v35  ;;  %v4564_v26 = vcombine.low %v4337_v12, %v4338_v21 }
 0x765   :  { %v4207_v33 = vpop.f32.mrf.mxu0  ;;  %v4248_v34 = vpop.f32.mrf.mxu1 }
 0x766   :  { %v4571_v10 = vrot.slane %v4563_v49, %v6308_v61  ;;  %v4578_v59 = vrot.slane %v4564_v26, %v6308_v61  ;;  %v4208_v19 = vadd.f32 %v4207_v33, %v2710_v17  ;;  %v4249_v37 = vadd.f32 %v4248_v34, %v2718_v48 }
 0x767   :  { %v4209_v11 = vpop.f32.mrf.mxu0  ;;  %v4250_v14 = vpop.f32.mrf.mxu1 }
 0x768   :  { %v4579_v38 = vcombine.low %v4571_v10, %v4578_v59  ;;  %v4210_v42 = vadd.f32 %v4209_v11, %v2714_v36  ;;  %v4251_v20 = vadd.f32 %v4250_v14, %v2722_v62  ;;  %v4339_v43 = vmax.f32 %v4208_v19, 0.0 }
 0x769   :  { %v4211_v31 = vpop.f32.mrf.mxu0  ;;  %v4252_v41 = vpop.f32.mrf.mxu1  ;;  %v4341_v24 = vmax.f32 %v4249_v37, 0.0 }
 0x76a   :  { %4627 = vst [vmem:[#allocation4 + $0x50] sm:$0xff] %v4579_v38  ;;  %v4340_v40 = vmax.f32 %v4210_v42, 0.0  ;;  %v4342_v60 = vmax.f32 %v4251_v20, 0.0 }
 0x76b   :  { %v4212_v23 = vpop.f32.mrf.mxu0  ;;  %v4253_v46 = vpop.f32.mrf.mxu1 }
 0x76c   :  { %v4580_v50 = vcombine.low %v4339_v43, %v4340_v40  ;;  %v4581_v32 = vcombine.low %v4341_v24, %v4342_v60 }
 0x76d   :  { %v4289_v0 = vpop.f32.mrf.mxu0 }
 0x76e   :  { %v4588_v47 = vrot.slane %v4580_v50, %v6308_v61  ;;  %v4290_v54 = vadd.f32 %v4817_v3, %v4289_v0  ;;  %v4595_v25 = vrot.slane %v4581_v32, %v6308_v61 }
 0x76f   :  { %v5074_v9 = vpop.f32.mrf.mxu0 }
 0x770   :  { %v4343_v15 = vmax.f32 %v4290_v54, 0.0  ;;  %v4596_v4 = vcombine.low %v4588_v47, %v4595_v25 }
 0x771   :  { %v4292_v58 = vpop.f32.mrf.mxu0 }
 0x772   :  { %4941 = vst.sshfl [vmem:[#allocation4 + $0x60] sm:$0x3 pattern:$0x76325410] %v4343_v15  ;;  %4628 = vst [vmem:[#allocation4 + $0x58] sm:$0xff] %v4596_v4 }
 0x773   :  { %v5075_v27 = vpop.f32.mrf.mxu0 }
 0x774   :  { %5365 = shalt.err (!%p5362_p0)
}
 0x775   :  { %4639 = dma.vmem_to_hbm [thread:$0]  %s4637_s28, 1568, %s6408_s7, [#allocation5]  }
 0x776   :  { %5376 = dma.done.wait [#allocation5], 1568  }
 0x777   :  { %5377 = vsyncadd [#allocation5], 4294965728 }
 0x778   :  { %5378 = dma.done.wait [#allocation7], 32  }
 0x779   :  { %5379 = vsyncadd [#allocation7], 4294967264 }
 0x77a   :  { %4656 = vsyncpa [#allocation5], 1 }
 0x77b   :  { %4657 = vsyncpa [#allocation7], 1 }
 0x77c   :  { %4658 = vsyncmov [#allocation3] }
 0x77f   :  { %s4659_s0 = vpop.sfrf %4658 }
 0x780   :  { %p4942_p1 = scmp.ne.s32.totalorder %s4659_s0, 0 }
 0x782   :  { %4663 = shalt.err (%p4942_p1)  }

</bundles_post_ra>
